<compile_context>
chip_gen: v7x
topology: tpu7x:2x2x1
jax: 0.10.0
libtpu: 0.0.40
codegen_flags: <defaults>
</compile_context>

<pallas_src>
import math

import jax
import jax.numpy as jnp
import numpy as np
from jax import lax
from jax.experimental import pallas as pl
from jax.experimental.pallas import tpu as pltpu

# ---------------- synthetic nhi_config ----------------
N_MFCC = 8
LSTM_HIDDEN_SIZE = 16
LSTM_NUM_LAYERS = 1
BI_LSTM = True
FRAME_AGGREGATION_MEAN = True


# ---------------- fused Pallas kernel ----------------
def rose_kernel(x_ref, w1f_ref, b1f_ref, w1b_ref, b1b_ref,
                w2f_ref, b2f_ref, w2b_ref, b2b_ref, o_ref):
    """Whole Rose forward pass in one invocation.

    x_ref : (T, B, D)   time-major input, fp32
    w*    : (IN+H, 4H)  fused [W_ih; W_hh]^T per direction (prepped outside)
    b*    : (1, 4H)     b_ih + b_hh per direction
    o_ref : (B, 2H)     mean_t(y1 + y2)
    """
    T, B, D = x_ref.shape
    H = o_ref.shape[-1] // 2

    def cell(inp, h, c, w, b):
        # Single fused matmul: [inp, h] @ [W_ih; W_hh]^T  + (b_ih + b_hh)
        gates = jnp.dot(jnp.concatenate([inp, h], axis=-1), w,
                        preferred_element_type=jnp.float32) + b
        # PyTorch gate order: i, f, g, o
        i_g = jax.nn.sigmoid(gates[:, 0 * H:1 * H])
        f_g = jax.nn.sigmoid(gates[:, 1 * H:2 * H])
        g_g = jnp.tanh(gates[:, 2 * H:3 * H])
        o_g = jax.nn.sigmoid(gates[:, 3 * H:4 * H])
        c_new = f_g * c + i_g * g_g
        h_new = o_g * jnp.tanh(c_new)
        return h_new, c_new

    # Load inputs / weights once; everything below stays in vregs.
    x = [x_ref[t] for t in range(T)]                       # T x (B, D)
    w1f = w1f_ref[...]; b1f = b1f_ref[...]
    w1b = w1b_ref[...]; b1b = b1b_ref[...]
    w2f = w2f_ref[...]; b2f = b2f_ref[...]
    w2b = w2b_ref[...]; b2b = b2b_ref[...]

    zero = jnp.zeros((B, H), jnp.float32)

    # ---- LSTM1 forward direction (fully unrolled, T static & small) ----
    h = zero; c = zero
    y1f = []
    for t in range(T):
        h, c = cell(x[t], h, c, w1f, b1f)
        y1f.append(h)

    # ---- LSTM1 backward direction: walk x[T-1] .. x[0] in place ----
    h = zero; c = zero
    y1b = [None] * T
    for t in range(T - 1, -1, -1):
        h, c = cell(x[t], h, c, w1b, b1b)
        y1b[t] = h

    # Bidirectional output y1[t] = [fwd, bwd]  (input to LSTM2, and residual term)
    y1 = [jnp.concatenate([y1f[t], y1b[t]], axis=-1) for t in range(T)]

    # ---- LSTM2 forward direction: only the running sum of h is needed ----
    h = zero; c = zero
    acc2f = zero
    for t in range(T):
        h, c = cell(y1[t], h, c, w2f, b2f)
        acc2f = acc2f + h

    # ---- LSTM2 backward direction ----
    h = zero; c = zero
    acc2b = zero
    for t in range(T - 1, -1, -1):
        h, c = cell(y1[t], h, c, w2b, b2b)
        acc2b = acc2b + h

    # ---- mean over time of (y1 + y2), single lane-contiguous store ----
    acc1 = y1[0]
    for t in range(1, T):
        acc1 = acc1 + y1[t]
    out = (acc1 + jnp.concatenate([acc2f, acc2b], axis=-1)) * (1.0 / T)
    o_ref[...] = out.astype(o_ref.dtype)


# ---------------- one-time parameter prep (hoisted out of the call path) ----------------
def _prep_direction(w_ih, w_hh, b_ih, b_hh):
    """PyTorch (4H,IN),(4H,H),(4H,),(4H,) -> fused (IN+H,4H) weight and (1,4H) bias."""
    w = jnp.concatenate([w_ih, w_hh], axis=1).T.astype(jnp.float32)   # (IN+H, 4H)
    b = (b_ih + b_hh).reshape(1, -1).astype(jnp.float32)              # (1, 4H)
    return w, b


def prep_rose_params(params_lstm1, params_lstm2):
    assert len(params_lstm1) == 1 and len(params_lstm2) == 1, "fused kernel: 1 layer only"
    assert len(params_lstm1[0]) == 2 and len(params_lstm2[0]) == 2, "fused kernel: BI_LSTM only"
    w1f, b1f = _prep_direction(*params_lstm1[0][0])
    w1b, b1b = _prep_direction(*params_lstm1[0][1])
    w2f, b2f = _prep_direction(*params_lstm2[0][0])
    w2b, b2b = _prep_direction(*params_lstm2[0][1])
    return (w1f, b1f, w1b, b1b, w2f, b2f, w2b, b2b)


# ---------------- jitted forward wrapper ----------------
def _rose_forward(x_btd, prepped):
    """Rose.forward: y1 = lstm1(x); y2 = lstm2(y1); return mean_t(y1 + y2)."""
    x_tbd = jnp.transpose(x_btd, (1, 0, 2)).astype(jnp.float32)   # (T, B, D) time-major
    T, B, D = x_tbd.shape
    H = LSTM_HIDDEN_SIZE
    in_specs = [pl.BlockSpec(memory_space=pltpu.MemorySpace.VMEM) for _ in range(9)]
    return pl.pallas_call(
        rose_kernel,
        out_shape=jax.ShapeDtypeStruct((B, 2 * H), jnp.float32),
        in_specs=in_specs,
        out_specs=pl.BlockSpec(memory_space=pltpu.MemorySpace.VMEM),
    )(x_tbd, *prepped)


rose_forward = jax.jit(_rose_forward)


# ---------------- parameter init (deterministic, PyTorch-style shapes) ----------------
def init_lstm_params(key, input_size, hidden_size, num_layers, bidirectional):
    num_dir = 2 if bidirectional else 1
    bound = 1.0 / math.sqrt(hidden_size)
    layers = []
    for layer in range(num_layers):
        in_size = input_size if layer == 0 else hidden_size * num_dir
        dirs = []
        for _ in range(num_dir):
            key, k1, k2, k3, k4 = jax.random.split(key, 5)
            w_ih = jax.random.uniform(k1, (4 * hidden_size, in_size),
                                      minval=-bound, maxval=bound, dtype=jnp.float32)
            w_hh = jax.random.uniform(k2, (4 * hidden_size, hidden_size),
                                      minval=-bound, maxval=bound, dtype=jnp.float32)
            b_ih = jax.random.uniform(k3, (4 * hidden_size,),
                                      minval=-bound, maxval=bound, dtype=jnp.float32)
            b_hh = jax.random.uniform(k4, (4 * hidden_size,),
                                      minval=-bound, maxval=bound, dtype=jnp.float32)
            dirs.append((w_ih, w_hh, b_ih, b_hh))
        layers.append(dirs)
    return layers


# ---------------- pure-JAX reference (correctness check) ----------------
def _lstm_direction_ref(x_tbd, w_ih, w_hh, b_ih, b_hh):
    T, B, D = x_tbd.shape
    H = w_hh.shape[1]
    b = b_ih + b_hh

    def step(carry, x_t):
        h, c = carry
        gates = x_t @ w_ih.T + h @ w_hh.T + b
        i_g, f_g, g_g, o_g = jnp.split(gates, 4, axis=-1)
        i_g = jax.nn.sigmoid(i_g)
        f_g = jax.nn.sigmoid(f_g)
        g_g = jnp.tanh(g_g)
        o_g = jax.nn.sigmoid(o_g)
        c = f_g * c + i_g * g_g
        h = o_g * jnp.tanh(c)
        return (h, c), h

    h0 = jnp.zeros((B, H), jnp.float32)
    c0 = jnp.zeros((B, H), jnp.float32)
    _, ys = lax.scan(step, (h0, c0), x_tbd)
    return ys


def _run_lstm_ref(x_tbd, layer_params):
    x = x_tbd
    for dirs in layer_params:
        outs = []
        for d, (w_ih, w_hh, b_ih, b_hh) in enumerate(dirs):
            xin = x[::-1] if d == 1 else x
            y = _lstm_direction_ref(xin, w_ih, w_hh, b_ih, b_hh)
            if d == 1:
                y = y[::-1]
            outs.append(y)
        x = jnp.concatenate(outs, axis=-1)
    return x


def rose_forward_ref(x_btd, params_lstm1, params_lstm2):
    x_tbd = jnp.transpose(x_btd, (1, 0, 2)).astype(jnp.float32)
    y1 = _run_lstm_ref(x_tbd, params_lstm1)
    y2 = _run_lstm_ref(y1, params_lstm2)
    return jnp.mean(y1 + y2, axis=0)


# ---------------- main ----------------
if __name__ == "__main__":
    B, T = 2, 8
    key = jax.random.PRNGKey(0)
    kx, kp1, kp2 = jax.random.split(key, 3)

    x = jax.random.normal(kx, (B, T, N_MFCC), dtype=jnp.float32)

    params_lstm1 = init_lstm_params(kp1, N_MFCC, LSTM_HIDDEN_SIZE,
                                    LSTM_NUM_LAYERS, BI_LSTM)
    params_lstm2 = init_lstm_params(kp2, 2 * LSTM_HIDDEN_SIZE, LSTM_HIDDEN_SIZE,
                                    LSTM_NUM_LAYERS, BI_LSTM)

    prepped = prep_rose_params(params_lstm1, params_lstm2)   # one-time prep

    out = rose_forward(x, prepped)
    out = jax.block_until_ready(out)

    ref = rose_forward_ref(x, params_lstm1, params_lstm2)
    ref = jax.block_until_ready(ref)

    assert out.shape == (B, 2 * LSTM_HIDDEN_SIZE), out.shape
    np.testing.assert_allclose(np.asarray(out), np.asarray(ref),
                               atol=1e-4, rtol=1e-4)
    print("KERNEL_OK")
</pallas_src>

<mosaic_0001>
module attributes {stable_mosaic.version = 11 : i64} {
  func.func @rose_kernel(%arg0: memref<8x2x8xf32, #tpu.memory_space<vmem>>, %arg1: memref<24x64xf32, #tpu.memory_space<vmem>>, %arg2: memref<1x64xf32, #tpu.memory_space<vmem>>, %arg3: memref<24x64xf32, #tpu.memory_space<vmem>>, %arg4: memref<1x64xf32, #tpu.memory_space<vmem>>, %arg5: memref<48x64xf32, #tpu.memory_space<vmem>>, %arg6: memref<1x64xf32, #tpu.memory_space<vmem>>, %arg7: memref<48x64xf32, #tpu.memory_space<vmem>>, %arg8: memref<1x64xf32, #tpu.memory_space<vmem>>, %arg9: memref<2x32xf32, #tpu.memory_space<vmem>>) attributes {dimension_semantics = [], scalar_prefetch = 0 : i64, scratch_operands = 0 : i64, tpu.core_type = #tpu.core_type<tc>} {
    %c0 = arith.constant 0 : index
    %c0_0 = arith.constant 0 : index
    %c0_1 = arith.constant 0 : index
    %0 = vector.load %arg0[%c0, %c0_0, %c0_1] : memref<8x2x8xf32, #tpu.memory_space<vmem>>, vector<1x2x8xf32>
    %1 = vector.shape_cast %0 : vector<1x2x8xf32> to vector<2x8xf32>
    %c1 = arith.constant 1 : index
    %c0_2 = arith.constant 0 : index
    %c0_3 = arith.constant 0 : index
    %2 = vector.load %arg0[%c1, %c0_2, %c0_3] : memref<8x2x8xf32, #tpu.memory_space<vmem>>, vector<1x2x8xf32>
    %3 = vector.shape_cast %2 : vector<1x2x8xf32> to vector<2x8xf32>
    %c2 = arith.constant 2 : index
    %c0_4 = arith.constant 0 : index
    %c0_5 = arith.constant 0 : index
    %4 = vector.load %arg0[%c2, %c0_4, %c0_5] : memref<8x2x8xf32, #tpu.memory_space<vmem>>, vector<1x2x8xf32>
    %5 = vector.shape_cast %4 : vector<1x2x8xf32> to vector<2x8xf32>
    %c3 = arith.constant 3 : index
    %c0_6 = arith.constant 0 : index
    %c0_7 = arith.constant 0 : index
    %6 = vector.load %arg0[%c3, %c0_6, %c0_7] : memref<8x2x8xf32, #tpu.memory_space<vmem>>, vector<1x2x8xf32>
    %7 = vector.shape_cast %6 : vector<1x2x8xf32> to vector<2x8xf32>
    %c4 = arith.constant 4 : index
    %c0_8 = arith.constant 0 : index
    %c0_9 = arith.constant 0 : index
    %8 = vector.load %arg0[%c4, %c0_8, %c0_9] : memref<8x2x8xf32, #tpu.memory_space<vmem>>, vector<1x2x8xf32>
    %9 = vector.shape_cast %8 : vector<1x2x8xf32> to vector<2x8xf32>
    %c5 = arith.constant 5 : index
    %c0_10 = arith.constant 0 : index
    %c0_11 = arith.constant 0 : index
    %10 = vector.load %arg0[%c5, %c0_10, %c0_11] : memref<8x2x8xf32, #tpu.memory_space<vmem>>, vector<1x2x8xf32>
    %11 = vector.shape_cast %10 : vector<1x2x8xf32> to vector<2x8xf32>
    %c6 = arith.constant 6 : index
    %c0_12 = arith.constant 0 : index
    %c0_13 = arith.constant 0 : index
    %12 = vector.load %arg0[%c6, %c0_12, %c0_13] : memref<8x2x8xf32, #tpu.memory_space<vmem>>, vector<1x2x8xf32>
    %13 = vector.shape_cast %12 : vector<1x2x8xf32> to vector<2x8xf32>
    %c7 = arith.constant 7 : index
    %c0_14 = arith.constant 0 : index
    %c0_15 = arith.constant 0 : index
    %14 = vector.load %arg0[%c7, %c0_14, %c0_15] : memref<8x2x8xf32, #tpu.memory_space<vmem>>, vector<1x2x8xf32>
    %15 = vector.shape_cast %14 : vector<1x2x8xf32> to vector<2x8xf32>
    %c0_16 = arith.constant 0 : index
    %c0_17 = arith.constant 0 : index
    %16 = vector.load %arg1[%c0_16, %c0_17] : memref<24x64xf32, #tpu.memory_space<vmem>>, vector<24x64xf32>
    %c0_18 = arith.constant 0 : index
    %c0_19 = arith.constant 0 : index
    %17 = vector.load %arg2[%c0_18, %c0_19] : memref<1x64xf32, #tpu.memory_space<vmem>>, vector<1x64xf32>
    %c0_20 = arith.constant 0 : index
    %c0_21 = arith.constant 0 : index
    %18 = vector.load %arg3[%c0_20, %c0_21] : memref<24x64xf32, #tpu.memory_space<vmem>>, vector<24x64xf32>
    %c0_22 = arith.constant 0 : index
    %c0_23 = arith.constant 0 : index
    %19 = vector.load %arg4[%c0_22, %c0_23] : memref<1x64xf32, #tpu.memory_space<vmem>>, vector<1x64xf32>
    %c0_24 = arith.constant 0 : index
    %c0_25 = arith.constant 0 : index
    %20 = vector.load %arg5[%c0_24, %c0_25] : memref<48x64xf32, #tpu.memory_space<vmem>>, vector<48x64xf32>
    %c0_26 = arith.constant 0 : index
    %c0_27 = arith.constant 0 : index
    %21 = vector.load %arg6[%c0_26, %c0_27] : memref<1x64xf32, #tpu.memory_space<vmem>>, vector<1x64xf32>
    %c0_28 = arith.constant 0 : index
    %c0_29 = arith.constant 0 : index
    %22 = vector.load %arg7[%c0_28, %c0_29] : memref<48x64xf32, #tpu.memory_space<vmem>>, vector<48x64xf32>
    %c0_30 = arith.constant 0 : index
    %c0_31 = arith.constant 0 : index
    %23 = vector.load %arg8[%c0_30, %c0_31] : memref<1x64xf32, #tpu.memory_space<vmem>>, vector<1x64xf32>
    %cst = arith.constant 0.000000e+00 : f32
    %24 = vector.broadcast %cst : f32 to vector<2x16xf32>
    %25 = tpu.concatenate %1, %24 in 1 : vector<2x8xf32>, vector<2x16xf32> -> vector<2x24xf32>
    %cst_32 = arith.constant dense<0.000000e+00> : vector<2x64xf32>
    %26 = tpu.matmul %25, %16, %cst_32 {dimension_numbers = #tpu.dot_dimension_numbers<[1], [0], [0], [1], [0, 0, 1, 1], [], []>} : vector<2x24xf32>, vector<24x64xf32>, vector<2x64xf32> -> vector<2x64xf32>
    %27 = vector.broadcast %17 : vector<1x64xf32> to vector<2x64xf32>
    %28 = arith.addf %26, %27 : vector<2x64xf32>
    %29 = vector.extract_strided_slice %28 {offsets = [0, 0], sizes = [2, 16], strides = [1, 1]} : vector<2x64xf32> to vector<2x16xf32>
    %30 = arith.negf %29 : vector<2x16xf32>
    %31 = math.exp %30 : vector<2x16xf32>
    %cst_33 = arith.constant 1.000000e+00 : f32
    %32 = vector.broadcast %cst_33 : f32 to vector<2x16xf32>
    %33 = arith.addf %32, %31 : vector<2x16xf32>
    %34 = arith.divf %32, %33 : vector<2x16xf32>
    %35 = vector.extract_strided_slice %28 {offsets = [0, 16], sizes = [2, 16], strides = [1, 1]} : vector<2x64xf32> to vector<2x16xf32>
    %36 = arith.negf %35 : vector<2x16xf32>
    %37 = math.exp %36 : vector<2x16xf32>
    %cst_34 = arith.constant 1.000000e+00 : f32
    %38 = vector.broadcast %cst_34 : f32 to vector<2x16xf32>
    %39 = arith.addf %38, %37 : vector<2x16xf32>
    %40 = arith.divf %38, %39 : vector<2x16xf32>
    %41 = vector.extract_strided_slice %28 {offsets = [0, 32], sizes = [2, 16], strides = [1, 1]} : vector<2x64xf32> to vector<2x16xf32>
    %42 = math.tanh %41 : vector<2x16xf32>
    %43 = vector.extract_strided_slice %28 {offsets = [0, 48], sizes = [2, 16], strides = [1, 1]} : vector<2x64xf32> to vector<2x16xf32>
    %44 = arith.negf %43 : vector<2x16xf32>
    %45 = math.exp %44 : vector<2x16xf32>
    %cst_35 = arith.constant 1.000000e+00 : f32
    %46 = vector.broadcast %cst_35 : f32 to vector<2x16xf32>
    %47 = arith.addf %46, %45 : vector<2x16xf32>
    %48 = arith.divf %46, %47 : vector<2x16xf32>
    %49 = arith.mulf %40, %24 : vector<2x16xf32>
    %50 = arith.mulf %34, %42 : vector<2x16xf32>
    %51 = arith.addf %49, %50 : vector<2x16xf32>
    %52 = math.tanh %51 : vector<2x16xf32>
    %53 = arith.mulf %48, %52 : vector<2x16xf32>
    %54 = tpu.concatenate %3, %53 in 1 : vector<2x8xf32>, vector<2x16xf32> -> vector<2x24xf32>
    %cst_36 = arith.constant dense<0.000000e+00> : vector<2x64xf32>
    %55 = tpu.matmul %54, %16, %cst_36 {dimension_numbers = #tpu.dot_dimension_numbers<[1], [0], [0], [1], [0, 0, 1, 1], [], []>} : vector<2x24xf32>, vector<24x64xf32>, vector<2x64xf32> -> vector<2x64xf32>
    %56 = vector.broadcast %17 : vector<1x64xf32> to vector<2x64xf32>
    %57 = arith.addf %55, %56 : vector<2x64xf32>
    %58 = vector.extract_strided_slice %57 {offsets = [0, 0], sizes = [2, 16], strides = [1, 1]} : vector<2x64xf32> to vector<2x16xf32>
    %59 = arith.negf %58 : vector<2x16xf32>
    %60 = math.exp %59 : vector<2x16xf32>
    %cst_37 = arith.constant 1.000000e+00 : f32
    %61 = vector.broadcast %cst_37 : f32 to vector<2x16xf32>
    %62 = arith.addf %61, %60 : vector<2x16xf32>
    %63 = arith.divf %61, %62 : vector<2x16xf32>
    %64 = vector.extract_strided_slice %57 {offsets = [0, 16], sizes = [2, 16], strides = [1, 1]} : vector<2x64xf32> to vector<2x16xf32>
    %65 = arith.negf %64 : vector<2x16xf32>
    %66 = math.exp %65 : vector<2x16xf32>
    %cst_38 = arith.constant 1.000000e+00 : f32
    %67 = vector.broadcast %cst_38 : f32 to vector<2x16xf32>
    %68 = arith.addf %67, %66 : vector<2x16xf32>
    %69 = arith.divf %67, %68 : vector<2x16xf32>
    %70 = vector.extract_strided_slice %57 {offsets = [0, 32], sizes = [2, 16], strides = [1, 1]} : vector<2x64xf32> to vector<2x16xf32>
    %71 = math.tanh %70 : vector<2x16xf32>
    %72 = vector.extract_strided_slice %57 {offsets = [0, 48], sizes = [2, 16], strides = [1, 1]} : vector<2x64xf32> to vector<2x16xf32>
    %73 = arith.negf %72 : vector<2x16xf32>
    %74 = math.exp %73 : vector<2x16xf32>
    %cst_39 = arith.constant 1.000000e+00 : f32
    %75 = vector.broadcast %cst_39 : f32 to vector<2x16xf32>
    %76 = arith.addf %75, %74 : vector<2x16xf32>
    %77 = arith.divf %75, %76 : vector<2x16xf32>
    %78 = arith.mulf %69, %51 : vector<2x16xf32>
    %79 = arith.mulf %63, %71 : vector<2x16xf32>
    %80 = arith.addf %78, %79 : vector<2x16xf32>
    %81 = math.tanh %80 : vector<2x16xf32>
    %82 = arith.mulf %77, %81 : vector<2x16xf32>
    %83 = tpu.concatenate %5, %82 in 1 : vector<2x8xf32>, vector<2x16xf32> -> vector<2x24xf32>
    %cst_40 = arith.constant dense<0.000000e+00> : vector<2x64xf32>
    %84 = tpu.matmul %83, %16, %cst_40 {dimension_numbers = #tpu.dot_dimension_numbers<[1], [0], [0], [1], [0, 0, 1, 1], [], []>} : vector<2x24xf32>, vector<24x64xf32>, vector<2x64xf32> -> vector<2x64xf32>
    %85 = vector.broadcast %17 : vector<1x64xf32> to vector<2x64xf32>
    %86 = arith.addf %84, %85 : vector<2x64xf32>
    %87 = vector.extract_strided_slice %86 {offsets = [0, 0], sizes = [2, 16], strides = [1, 1]} : vector<2x64xf32> to vector<2x16xf32>
    %88 = arith.negf %87 : vector<2x16xf32>
    %89 = math.exp %88 : vector<2x16xf32>
    %cst_41 = arith.constant 1.000000e+00 : f32
    %90 = vector.broadcast %cst_41 : f32 to vector<2x16xf32>
    %91 = arith.addf %90, %89 : vector<2x16xf32>
    %92 = arith.divf %90, %91 : vector<2x16xf32>
    %93 = vector.extract_strided_slice %86 {offsets = [0, 16], sizes = [2, 16], strides = [1, 1]} : vector<2x64xf32> to vector<2x16xf32>
    %94 = arith.negf %93 : vector<2x16xf32>
    %95 = math.exp %94 : vector<2x16xf32>
    %cst_42 = arith.constant 1.000000e+00 : f32
    %96 = vector.broadcast %cst_42 : f32 to vector<2x16xf32>
    %97 = arith.addf %96, %95 : vector<2x16xf32>
    %98 = arith.divf %96, %97 : vector<2x16xf32>
    %99 = vector.extract_strided_slice %86 {offsets = [0, 32], sizes = [2, 16], strides = [1, 1]} : vector<2x64xf32> to vector<2x16xf32>
    %100 = math.tanh %99 : vector<2x16xf32>
    %101 = vector.extract_strided_slice %86 {offsets = [0, 48], sizes = [2, 16], strides = [1, 1]} : vector<2x64xf32> to vector<2x16xf32>
    %102 = arith.negf %101 : vector<2x16xf32>
    %103 = math.exp %102 : vector<2x16xf32>
    %cst_43 = arith.constant 1.000000e+00 : f32
    %104 = vector.broadcast %cst_43 : f32 to vector<2x16xf32>
    %105 = arith.addf %104, %103 : vector<2x16xf32>
    %106 = arith.divf %104, %105 : vector<2x16xf32>
    %107 = arith.mulf %98, %80 : vector<2x16xf32>
    %108 = arith.mulf %92, %100 : vector<2x16xf32>
    %109 = arith.addf %107, %108 : vector<2x16xf32>
    %110 = math.tanh %109 : vector<2x16xf32>
    %111 = arith.mulf %106, %110 : vector<2x16xf32>
    %112 = tpu.concatenate %7, %111 in 1 : vector<2x8xf32>, vector<2x16xf32> -> vector<2x24xf32>
    %cst_44 = arith.constant dense<0.000000e+00> : vector<2x64xf32>
    %113 = tpu.matmul %112, %16, %cst_44 {dimension_numbers = #tpu.dot_dimension_numbers<[1], [0], [0], [1], [0, 0, 1, 1], [], []>} : vector<2x24xf32>, vector<24x64xf32>, vector<2x64xf32> -> vector<2x64xf32>
    %114 = vector.broadcast %17 : vector<1x64xf32> to vector<2x64xf32>
    %115 = arith.addf %113, %114 : vector<2x64xf32>
    %116 = vector.extract_strided_slice %115 {offsets = [0, 0], sizes = [2, 16], strides = [1, 1]} : vector<2x64xf32> to vector<2x16xf32>
    %117 = arith.negf %116 : vector<2x16xf32>
    %118 = math.exp %117 : vector<2x16xf32>
    %cst_45 = arith.constant 1.000000e+00 : f32
    %119 = vector.broadcast %cst_45 : f32 to vector<2x16xf32>
    %120 = arith.addf %119, %118 : vector<2x16xf32>
    %121 = arith.divf %119, %120 : vector<2x16xf32>
    %122 = vector.extract_strided_slice %115 {offsets = [0, 16], sizes = [2, 16], strides = [1, 1]} : vector<2x64xf32> to vector<2x16xf32>
    %123 = arith.negf %122 : vector<2x16xf32>
    %124 = math.exp %123 : vector<2x16xf32>
    %cst_46 = arith.constant 1.000000e+00 : f32
    %125 = vector.broadcast %cst_46 : f32 to vector<2x16xf32>
    %126 = arith.addf %125, %124 : vector<2x16xf32>
    %127 = arith.divf %125, %126 : vector<2x16xf32>
    %128 = vector.extract_strided_slice %115 {offsets = [0, 32], sizes = [2, 16], strides = [1, 1]} : vector<2x64xf32> to vector<2x16xf32>
    %129 = math.tanh %128 : vector<2x16xf32>
    %130 = vector.extract_strided_slice %115 {offsets = [0, 48], sizes = [2, 16], strides = [1, 1]} : vector<2x64xf32> to vector<2x16xf32>
    %131 = arith.negf %130 : vector<2x16xf32>
    %132 = math.exp %131 : vector<2x16xf32>
    %cst_47 = arith.constant 1.000000e+00 : f32
    %133 = vector.broadcast %cst_47 : f32 to vector<2x16xf32>
    %134 = arith.addf %133, %132 : vector<2x16xf32>
    %135 = arith.divf %133, %134 : vector<2x16xf32>
    %136 = arith.mulf %127, %109 : vector<2x16xf32>
    %137 = arith.mulf %121, %129 : vector<2x16xf32>
    %138 = arith.addf %136, %137 : vector<2x16xf32>
    %139 = math.tanh %138 : vector<2x16xf32>
    %140 = arith.mulf %135, %139 : vector<2x16xf32>
    %141 = tpu.concatenate %9, %140 in 1 : vector<2x8xf32>, vector<2x16xf32> -> vector<2x24xf32>
    %cst_48 = arith.constant dense<0.000000e+00> : vector<2x64xf32>
    %142 = tpu.matmul %141, %16, %cst_48 {dimension_numbers = #tpu.dot_dimension_numbers<[1], [0], [0], [1], [0, 0, 1, 1], [], []>} : vector<2x24xf32>, vector<24x64xf32>, vector<2x64xf32> -> vector<2x64xf32>
    %143 = vector.broadcast %17 : vector<1x64xf32> to vector<2x64xf32>
    %144 = arith.addf %142, %143 : vector<2x64xf32>
    %145 = vector.extract_strided_slice %144 {offsets = [0, 0], sizes = [2, 16], strides = [1, 1]} : vector<2x64xf32> to vector<2x16xf32>
    %146 = arith.negf %145 : vector<2x16xf32>
    %147 = math.exp %146 : vector<2x16xf32>
    %cst_49 = arith.constant 1.000000e+00 : f32
    %148 = vector.broadcast %cst_49 : f32 to vector<2x16xf32>
    %149 = arith.addf %148, %147 : vector<2x16xf32>
    %150 = arith.divf %148, %149 : vector<2x16xf32>
    %151 = vector.extract_strided_slice %144 {offsets = [0, 16], sizes = [2, 16], strides = [1, 1]} : vector<2x64xf32> to vector<2x16xf32>
    %152 = arith.negf %151 : vector<2x16xf32>
    %153 = math.exp %152 : vector<2x16xf32>
    %cst_50 = arith.constant 1.000000e+00 : f32
    %154 = vector.broadcast %cst_50 : f32 to vector<2x16xf32>
    %155 = arith.addf %154, %153 : vector<2x16xf32>
    %156 = arith.divf %154, %155 : vector<2x16xf32>
    %157 = vector.extract_strided_slice %144 {offsets = [0, 32], sizes = [2, 16], strides = [1, 1]} : vector<2x64xf32> to vector<2x16xf32>
    %158 = math.tanh %157 : vector<2x16xf32>
    %159 = vector.extract_strided_slice %144 {offsets = [0, 48], sizes = [2, 16], strides = [1, 1]} : vector<2x64xf32> to vector<2x16xf32>
    %160 = arith.negf %159 : vector<2x16xf32>
    %161 = math.exp %160 : vector<2x16xf32>
    %cst_51 = arith.constant 1.000000e+00 : f32
    %162 = vector.broadcast %cst_51 : f32 to vector<2x16xf32>
    %163 = arith.addf %162, %161 : vector<2x16xf32>
    %164 = arith.divf %162, %163 : vector<2x16xf32>
    %165 = arith.mulf %156, %138 : vector<2x16xf32>
    %166 = arith.mulf %150, %158 : vector<2x16xf32>
    %167 = arith.addf %165, %166 : vector<2x16xf32>
    %168 = math.tanh %167 : vector<2x16xf32>
    %169 = arith.mulf %164, %168 : vector<2x16xf32>
    %170 = tpu.concatenate %11, %169 in 1 : vector<2x8xf32>, vector<2x16xf32> -> vector<2x24xf32>
    %cst_52 = arith.constant dense<0.000000e+00> : vector<2x64xf32>
    %171 = tpu.matmul %170, %16, %cst_52 {dimension_numbers = #tpu.dot_dimension_numbers<[1], [0], [0], [1], [0, 0, 1, 1], [], []>} : vector<2x24xf32>, vector<24x64xf32>, vector<2x64xf32> -> vector<2x64xf32>
    %172 = vector.broadcast %17 : vector<1x64xf32> to vector<2x64xf32>
    %173 = arith.addf %171, %172 : vector<2x64xf32>
    %174 = vector.extract_strided_slice %173 {offsets = [0, 0], sizes = [2, 16], strides = [1, 1]} : vector<2x64xf32> to vector<2x16xf32>
    %175 = arith.negf %174 : vector<2x16xf32>
    %176 = math.exp %175 : vector<2x16xf32>
    %cst_53 = arith.constant 1.000000e+00 : f32
    %177 = vector.broadcast %cst_53 : f32 to vector<2x16xf32>
    %178 = arith.addf %177, %176 : vector<2x16xf32>
    %179 = arith.divf %177, %178 : vector<2x16xf32>
    %180 = vector.extract_strided_slice %173 {offsets = [0, 16], sizes = [2, 16], strides = [1, 1]} : vector<2x64xf32> to vector<2x16xf32>
    %181 = arith.negf %180 : vector<2x16xf32>
    %182 = math.exp %181 : vector<2x16xf32>
    %cst_54 = arith.constant 1.000000e+00 : f32
    %183 = vector.broadcast %cst_54 : f32 to vector<2x16xf32>
    %184 = arith.addf %183, %182 : vector<2x16xf32>
    %185 = arith.divf %183, %184 : vector<2x16xf32>
    %186 = vector.extract_strided_slice %173 {offsets = [0, 32], sizes = [2, 16], strides = [1, 1]} : vector<2x64xf32> to vector<2x16xf32>
    %187 = math.tanh %186 : vector<2x16xf32>
    %188 = vector.extract_strided_slice %173 {offsets = [0, 48], sizes = [2, 16], strides = [1, 1]} : vector<2x64xf32> to vector<2x16xf32>
    %189 = arith.negf %188 : vector<2x16xf32>
    %190 = math.exp %189 : vector<2x16xf32>
    %cst_55 = arith.constant 1.000000e+00 : f32
    %191 = vector.broadcast %cst_55 : f32 to vector<2x16xf32>
    %192 = arith.addf %191, %190 : vector<2x16xf32>
    %193 = arith.divf %191, %192 : vector<2x16xf32>
    %194 = arith.mulf %185, %167 : vector<2x16xf32>
    %195 = arith.mulf %179, %187 : vector<2x16xf32>
    %196 = arith.addf %194, %195 : vector<2x16xf32>
    %197 = math.tanh %196 : vector<2x16xf32>
    %198 = arith.mulf %193, %197 : vector<2x16xf32>
    %199 = tpu.concatenate %13, %198 in 1 : vector<2x8xf32>, vector<2x16xf32> -> vector<2x24xf32>
    %cst_56 = arith.constant dense<0.000000e+00> : vector<2x64xf32>
    %200 = tpu.matmul %199, %16, %cst_56 {dimension_numbers = #tpu.dot_dimension_numbers<[1], [0], [0], [1], [0, 0, 1, 1], [], []>} : vector<2x24xf32>, vector<24x64xf32>, vector<2x64xf32> -> vector<2x64xf32>
    %201 = vector.broadcast %17 : vector<1x64xf32> to vector<2x64xf32>
    %202 = arith.addf %200, %201 : vector<2x64xf32>
    %203 = vector.extract_strided_slice %202 {offsets = [0, 0], sizes = [2, 16], strides = [1, 1]} : vector<2x64xf32> to vector<2x16xf32>
    %204 = arith.negf %203 : vector<2x16xf32>
    %205 = math.exp %204 : vector<2x16xf32>
    %cst_57 = arith.constant 1.000000e+00 : f32
    %206 = vector.broadcast %cst_57 : f32 to vector<2x16xf32>
    %207 = arith.addf %206, %205 : vector<2x16xf32>
    %208 = arith.divf %206, %207 : vector<2x16xf32>
    %209 = vector.extract_strided_slice %202 {offsets = [0, 16], sizes = [2, 16], strides = [1, 1]} : vector<2x64xf32> to vector<2x16xf32>
    %210 = arith.negf %209 : vector<2x16xf32>
    %211 = math.exp %210 : vector<2x16xf32>
    %cst_58 = arith.constant 1.000000e+00 : f32
    %212 = vector.broadcast %cst_58 : f32 to vector<2x16xf32>
    %213 = arith.addf %212, %211 : vector<2x16xf32>
    %214 = arith.divf %212, %213 : vector<2x16xf32>
    %215 = vector.extract_strided_slice %202 {offsets = [0, 32], sizes = [2, 16], strides = [1, 1]} : vector<2x64xf32> to vector<2x16xf32>
    %216 = math.tanh %215 : vector<2x16xf32>
    %217 = vector.extract_strided_slice %202 {offsets = [0, 48], sizes = [2, 16], strides = [1, 1]} : vector<2x64xf32> to vector<2x16xf32>
    %218 = arith.negf %217 : vector<2x16xf32>
    %219 = math.exp %218 : vector<2x16xf32>
    %cst_59 = arith.constant 1.000000e+00 : f32
    %220 = vector.broadcast %cst_59 : f32 to vector<2x16xf32>
    %221 = arith.addf %220, %219 : vector<2x16xf32>
    %222 = arith.divf %220, %221 : vector<2x16xf32>
    %223 = arith.mulf %214, %196 : vector<2x16xf32>
    %224 = arith.mulf %208, %216 : vector<2x16xf32>
    %225 = arith.addf %223, %224 : vector<2x16xf32>
    %226 = math.tanh %225 : vector<2x16xf32>
    %227 = arith.mulf %222, %226 : vector<2x16xf32>
    %228 = tpu.concatenate %15, %227 in 1 : vector<2x8xf32>, vector<2x16xf32> -> vector<2x24xf32>
    %cst_60 = arith.constant dense<0.000000e+00> : vector<2x64xf32>
    %229 = tpu.matmul %228, %16, %cst_60 {dimension_numbers = #tpu.dot_dimension_numbers<[1], [0], [0], [1], [0, 0, 1, 1], [], []>} : vector<2x24xf32>, vector<24x64xf32>, vector<2x64xf32> -> vector<2x64xf32>
    %230 = vector.broadcast %17 : vector<1x64xf32> to vector<2x64xf32>
    %231 = arith.addf %229, %230 : vector<2x64xf32>
    %232 = vector.extract_strided_slice %231 {offsets = [0, 0], sizes = [2, 16], strides = [1, 1]} : vector<2x64xf32> to vector<2x16xf32>
    %233 = arith.negf %232 : vector<2x16xf32>
    %234 = math.exp %233 : vector<2x16xf32>
    %cst_61 = arith.constant 1.000000e+00 : f32
    %235 = vector.broadcast %cst_61 : f32 to vector<2x16xf32>
    %236 = arith.addf %235, %234 : vector<2x16xf32>
    %237 = arith.divf %235, %236 : vector<2x16xf32>
    %238 = vector.extract_strided_slice %231 {offsets = [0, 16], sizes = [2, 16], strides = [1, 1]} : vector<2x64xf32> to vector<2x16xf32>
    %239 = arith.negf %238 : vector<2x16xf32>
    %240 = math.exp %239 : vector<2x16xf32>
    %cst_62 = arith.constant 1.000000e+00 : f32
    %241 = vector.broadcast %cst_62 : f32 to vector<2x16xf32>
    %242 = arith.addf %241, %240 : vector<2x16xf32>
    %243 = arith.divf %241, %242 : vector<2x16xf32>
    %244 = vector.extract_strided_slice %231 {offsets = [0, 32], sizes = [2, 16], strides = [1, 1]} : vector<2x64xf32> to vector<2x16xf32>
    %245 = math.tanh %244 : vector<2x16xf32>
    %246 = vector.extract_strided_slice %231 {offsets = [0, 48], sizes = [2, 16], strides = [1, 1]} : vector<2x64xf32> to vector<2x16xf32>
    %247 = arith.negf %246 : vector<2x16xf32>
    %248 = math.exp %247 : vector<2x16xf32>
    %cst_63 = arith.constant 1.000000e+00 : f32
    %249 = vector.broadcast %cst_63 : f32 to vector<2x16xf32>
    %250 = arith.addf %249, %248 : vector<2x16xf32>
    %251 = arith.divf %249, %250 : vector<2x16xf32>
    %252 = arith.mulf %243, %225 : vector<2x16xf32>
    %253 = arith.mulf %237, %245 : vector<2x16xf32>
    %254 = arith.addf %252, %253 : vector<2x16xf32>
    %255 = math.tanh %254 : vector<2x16xf32>
    %256 = arith.mulf %251, %255 : vector<2x16xf32>
    %257 = tpu.concatenate %15, %24 in 1 : vector<2x8xf32>, vector<2x16xf32> -> vector<2x24xf32>
    %cst_64 = arith.constant dense<0.000000e+00> : vector<2x64xf32>
    %258 = tpu.matmul %257, %18, %cst_64 {dimension_numbers = #tpu.dot_dimension_numbers<[1], [0], [0], [1], [0, 0, 1, 1], [], []>} : vector<2x24xf32>, vector<24x64xf32>, vector<2x64xf32> -> vector<2x64xf32>
    %259 = vector.broadcast %19 : vector<1x64xf32> to vector<2x64xf32>
    %260 = arith.addf %258, %259 : vector<2x64xf32>
    %261 = vector.extract_strided_slice %260 {offsets = [0, 0], sizes = [2, 16], strides = [1, 1]} : vector<2x64xf32> to vector<2x16xf32>
    %262 = arith.negf %261 : vector<2x16xf32>
    %263 = math.exp %262 : vector<2x16xf32>
    %cst_65 = arith.constant 1.000000e+00 : f32
    %264 = vector.broadcast %cst_65 : f32 to vector<2x16xf32>
    %265 = arith.addf %264, %263 : vector<2x16xf32>
    %266 = arith.divf %264, %265 : vector<2x16xf32>
    %267 = vector.extract_strided_slice %260 {offsets = [0, 16], sizes = [2, 16], strides = [1, 1]} : vector<2x64xf32> to vector<2x16xf32>
    %268 = arith.negf %267 : vector<2x16xf32>
    %269 = math.exp %268 : vector<2x16xf32>
    %cst_66 = arith.constant 1.000000e+00 : f32
    %270 = vector.broadcast %cst_66 : f32 to vector<2x16xf32>
    %271 = arith.addf %270, %269 : vector<2x16xf32>
    %272 = arith.divf %270, %271 : vector<2x16xf32>
    %273 = vector.extract_strided_slice %260 {offsets = [0, 32], sizes = [2, 16], strides = [1, 1]} : vector<2x64xf32> to vector<2x16xf32>
    %274 = math.tanh %273 : vector<2x16xf32>
    %275 = vector.extract_strided_slice %260 {offsets = [0, 48], sizes = [2, 16], strides = [1, 1]} : vector<2x64xf32> to vector<2x16xf32>
    %276 = arith.negf %275 : vector<2x16xf32>
    %277 = math.exp %276 : vector<2x16xf32>
    %cst_67 = arith.constant 1.000000e+00 : f32
    %278 = vector.broadcast %cst_67 : f32 to vector<2x16xf32>
    %279 = arith.addf %278, %277 : vector<2x16xf32>
    %280 = arith.divf %278, %279 : vector<2x16xf32>
    %281 = arith.mulf %272, %24 : vector<2x16xf32>
    %282 = arith.mulf %266, %274 : vector<2x16xf32>
    %283 = arith.addf %281, %282 : vector<2x16xf32>
    %284 = math.tanh %283 : vector<2x16xf32>
    %285 = arith.mulf %280, %284 : vector<2x16xf32>
    %286 = tpu.concatenate %13, %285 in 1 : vector<2x8xf32>, vector<2x16xf32> -> vector<2x24xf32>
    %cst_68 = arith.constant dense<0.000000e+00> : vector<2x64xf32>
    %287 = tpu.matmul %286, %18, %cst_68 {dimension_numbers = #tpu.dot_dimension_numbers<[1], [0], [0], [1], [0, 0, 1, 1], [], []>} : vector<2x24xf32>, vector<24x64xf32>, vector<2x64xf32> -> vector<2x64xf32>
    %288 = vector.broadcast %19 : vector<1x64xf32> to vector<2x64xf32>
    %289 = arith.addf %287, %288 : vector<2x64xf32>
    %290 = vector.extract_strided_slice %289 {offsets = [0, 0], sizes = [2, 16], strides = [1, 1]} : vector<2x64xf32> to vector<2x16xf32>
    %291 = arith.negf %290 : vector<2x16xf32>
    %292 = math.exp %291 : vector<2x16xf32>
    %cst_69 = arith.constant 1.000000e+00 : f32
    %293 = vector.broadcast %cst_69 : f32 to vector<2x16xf32>
    %294 = arith.addf %293, %292 : vector<2x16xf32>
    %295 = arith.divf %293, %294 : vector<2x16xf32>
    %296 = vector.extract_strided_slice %289 {offsets = [0, 16], sizes = [2, 16], strides = [1, 1]} : vector<2x64xf32> to vector<2x16xf32>
    %297 = arith.negf %296 : vector<2x16xf32>
    %298 = math.exp %297 : vector<2x16xf32>
    %cst_70 = arith.constant 1.000000e+00 : f32
    %299 = vector.broadcast %cst_70 : f32 to vector<2x16xf32>
    %300 = arith.addf %299, %298 : vector<2x16xf32>
    %301 = arith.divf %299, %300 : vector<2x16xf32>
    %302 = vector.extract_strided_slice %289 {offsets = [0, 32], sizes = [2, 16], strides = [1, 1]} : vector<2x64xf32> to vector<2x16xf32>
    %303 = math.tanh %302 : vector<2x16xf32>
    %304 = vector.extract_strided_slice %289 {offsets = [0, 48], sizes = [2, 16], strides = [1, 1]} : vector<2x64xf32> to vector<2x16xf32>
    %305 = arith.negf %304 : vector<2x16xf32>
    %306 = math.exp %305 : vector<2x16xf32>
    %cst_71 = arith.constant 1.000000e+00 : f32
    %307 = vector.broadcast %cst_71 : f32 to vector<2x16xf32>
    %308 = arith.addf %307, %306 : vector<2x16xf32>
    %309 = arith.divf %307, %308 : vector<2x16xf32>
    %310 = arith.mulf %301, %283 : vector<2x16xf32>
    %311 = arith.mulf %295, %303 : vector<2x16xf32>
    %312 = arith.addf %310, %311 : vector<2x16xf32>
    %313 = math.tanh %312 : vector<2x16xf32>
    %314 = arith.mulf %309, %313 : vector<2x16xf32>
    %315 = tpu.concatenate %11, %314 in 1 : vector<2x8xf32>, vector<2x16xf32> -> vector<2x24xf32>
    %cst_72 = arith.constant dense<0.000000e+00> : vector<2x64xf32>
    %316 = tpu.matmul %315, %18, %cst_72 {dimension_numbers = #tpu.dot_dimension_numbers<[1], [0], [0], [1], [0, 0, 1, 1], [], []>} : vector<2x24xf32>, vector<24x64xf32>, vector<2x64xf32> -> vector<2x64xf32>
    %317 = vector.broadcast %19 : vector<1x64xf32> to vector<2x64xf32>
    %318 = arith.addf %316, %317 : vector<2x64xf32>
    %319 = vector.extract_strided_slice %318 {offsets = [0, 0], sizes = [2, 16], strides = [1, 1]} : vector<2x64xf32> to vector<2x16xf32>
    %320 = arith.negf %319 : vector<2x16xf32>
    %321 = math.exp %320 : vector<2x16xf32>
    %cst_73 = arith.constant 1.000000e+00 : f32
    %322 = vector.broadcast %cst_73 : f32 to vector<2x16xf32>
    %323 = arith.addf %322, %321 : vector<2x16xf32>
    %324 = arith.divf %322, %323 : vector<2x16xf32>
    %325 = vector.extract_strided_slice %318 {offsets = [0, 16], sizes = [2, 16], strides = [1, 1]} : vector<2x64xf32> to vector<2x16xf32>
    %326 = arith.negf %325 : vector<2x16xf32>
    %327 = math.exp %326 : vector<2x16xf32>
    %cst_74 = arith.constant 1.000000e+00 : f32
    %328 = vector.broadcast %cst_74 : f32 to vector<2x16xf32>
    %329 = arith.addf %328, %327 : vector<2x16xf32>
    %330 = arith.divf %328, %329 : vector<2x16xf32>
    %331 = vector.extract_strided_slice %318 {offsets = [0, 32], sizes = [2, 16], strides = [1, 1]} : vector<2x64xf32> to vector<2x16xf32>
    %332 = math.tanh %331 : vector<2x16xf32>
    %333 = vector.extract_strided_slice %318 {offsets = [0, 48], sizes = [2, 16], strides = [1, 1]} : vector<2x64xf32> to vector<2x16xf32>
    %334 = arith.negf %333 : vector<2x16xf32>
    %335 = math.exp %334 : vector<2x16xf32>
    %cst_75 = arith.constant 1.000000e+00 : f32
    %336 = vector.broadcast %cst_75 : f32 to vector<2x16xf32>
    %337 = arith.addf %336, %335 : vector<2x16xf32>
    %338 = arith.divf %336, %337 : vector<2x16xf32>
    %339 = arith.mulf %330, %312 : vector<2x16xf32>
    %340 = arith.mulf %324, %332 : vector<2x16xf32>
    %341 = arith.addf %339, %340 : vector<2x16xf32>
    %342 = math.tanh %341 : vector<2x16xf32>
    %343 = arith.mulf %338, %342 : vector<2x16xf32>
    %344 = tpu.concatenate %9, %343 in 1 : vector<2x8xf32>, vector<2x16xf32> -> vector<2x24xf32>
    %cst_76 = arith.constant dense<0.000000e+00> : vector<2x64xf32>
    %345 = tpu.matmul %344, %18, %cst_76 {dimension_numbers = #tpu.dot_dimension_numbers<[1], [0], [0], [1], [0, 0, 1, 1], [], []>} : vector<2x24xf32>, vector<24x64xf32>, vector<2x64xf32> -> vector<2x64xf32>
    %346 = vector.broadcast %19 : vector<1x64xf32> to vector<2x64xf32>
    %347 = arith.addf %345, %346 : vector<2x64xf32>
    %348 = vector.extract_strided_slice %347 {offsets = [0, 0], sizes = [2, 16], strides = [1, 1]} : vector<2x64xf32> to vector<2x16xf32>
    %349 = arith.negf %348 : vector<2x16xf32>
    %350 = math.exp %349 : vector<2x16xf32>
    %cst_77 = arith.constant 1.000000e+00 : f32
    %351 = vector.broadcast %cst_77 : f32 to vector<2x16xf32>
    %352 = arith.addf %351, %350 : vector<2x16xf32>
    %353 = arith.divf %351, %352 : vector<2x16xf32>
    %354 = vector.extract_strided_slice %347 {offsets = [0, 16], sizes = [2, 16], strides = [1, 1]} : vector<2x64xf32> to vector<2x16xf32>
    %355 = arith.negf %354 : vector<2x16xf32>
    %356 = math.exp %355 : vector<2x16xf32>
    %cst_78 = arith.constant 1.000000e+00 : f32
    %357 = vector.broadcast %cst_78 : f32 to vector<2x16xf32>
    %358 = arith.addf %357, %356 : vector<2x16xf32>
    %359 = arith.divf %357, %358 : vector<2x16xf32>
    %360 = vector.extract_strided_slice %347 {offsets = [0, 32], sizes = [2, 16], strides = [1, 1]} : vector<2x64xf32> to vector<2x16xf32>
    %361 = math.tanh %360 : vector<2x16xf32>
    %362 = vector.extract_strided_slice %347 {offsets = [0, 48], sizes = [2, 16], strides = [1, 1]} : vector<2x64xf32> to vector<2x16xf32>
    %363 = arith.negf %362 : vector<2x16xf32>
    %364 = math.exp %363 : vector<2x16xf32>
    %cst_79 = arith.constant 1.000000e+00 : f32
    %365 = vector.broadcast %cst_79 : f32 to vector<2x16xf32>
    %366 = arith.addf %365, %364 : vector<2x16xf32>
    %367 = arith.divf %365, %366 : vector<2x16xf32>
    %368 = arith.mulf %359, %341 : vector<2x16xf32>
    %369 = arith.mulf %353, %361 : vector<2x16xf32>
    %370 = arith.addf %368, %369 : vector<2x16xf32>
    %371 = math.tanh %370 : vector<2x16xf32>
    %372 = arith.mulf %367, %371 : vector<2x16xf32>
    %373 = tpu.concatenate %7, %372 in 1 : vector<2x8xf32>, vector<2x16xf32> -> vector<2x24xf32>
    %cst_80 = arith.constant dense<0.000000e+00> : vector<2x64xf32>
    %374 = tpu.matmul %373, %18, %cst_80 {dimension_numbers = #tpu.dot_dimension_numbers<[1], [0], [0], [1], [0, 0, 1, 1], [], []>} : vector<2x24xf32>, vector<24x64xf32>, vector<2x64xf32> -> vector<2x64xf32>
    %375 = vector.broadcast %19 : vector<1x64xf32> to vector<2x64xf32>
    %376 = arith.addf %374, %375 : vector<2x64xf32>
    %377 = vector.extract_strided_slice %376 {offsets = [0, 0], sizes = [2, 16], strides = [1, 1]} : vector<2x64xf32> to vector<2x16xf32>
    %378 = arith.negf %377 : vector<2x16xf32>
    %379 = math.exp %378 : vector<2x16xf32>
    %cst_81 = arith.constant 1.000000e+00 : f32
    %380 = vector.broadcast %cst_81 : f32 to vector<2x16xf32>
    %381 = arith.addf %380, %379 : vector<2x16xf32>
    %382 = arith.divf %380, %381 : vector<2x16xf32>
    %383 = vector.extract_strided_slice %376 {offsets = [0, 16], sizes = [2, 16], strides = [1, 1]} : vector<2x64xf32> to vector<2x16xf32>
    %384 = arith.negf %383 : vector<2x16xf32>
    %385 = math.exp %384 : vector<2x16xf32>
    %cst_82 = arith.constant 1.000000e+00 : f32
    %386 = vector.broadcast %cst_82 : f32 to vector<2x16xf32>
    %387 = arith.addf %386, %385 : vector<2x16xf32>
    %388 = arith.divf %386, %387 : vector<2x16xf32>
    %389 = vector.extract_strided_slice %376 {offsets = [0, 32], sizes = [2, 16], strides = [1, 1]} : vector<2x64xf32> to vector<2x16xf32>
    %390 = math.tanh %389 : vector<2x16xf32>
    %391 = vector.extract_strided_slice %376 {offsets = [0, 48], sizes = [2, 16], strides = [1, 1]} : vector<2x64xf32> to vector<2x16xf32>
    %392 = arith.negf %391 : vector<2x16xf32>
    %393 = math.exp %392 : vector<2x16xf32>
    %cst_83 = arith.constant 1.000000e+00 : f32
    %394 = vector.broadcast %cst_83 : f32 to vector<2x16xf32>
    %395 = arith.addf %394, %393 : vector<2x16xf32>
    %396 = arith.divf %394, %395 : vector<2x16xf32>
    %397 = arith.mulf %388, %370 : vector<2x16xf32>
    %398 = arith.mulf %382, %390 : vector<2x16xf32>
    %399 = arith.addf %397, %398 : vector<2x16xf32>
    %400 = math.tanh %399 : vector<2x16xf32>
    %401 = arith.mulf %396, %400 : vector<2x16xf32>
    %402 = tpu.concatenate %5, %401 in 1 : vector<2x8xf32>, vector<2x16xf32> -> vector<2x24xf32>
    %cst_84 = arith.constant dense<0.000000e+00> : vector<2x64xf32>
    %403 = tpu.matmul %402, %18, %cst_84 {dimension_numbers = #tpu.dot_dimension_numbers<[1], [0], [0], [1], [0, 0, 1, 1], [], []>} : vector<2x24xf32>, vector<24x64xf32>, vector<2x64xf32> -> vector<2x64xf32>
    %404 = vector.broadcast %19 : vector<1x64xf32> to vector<2x64xf32>
    %405 = arith.addf %403, %404 : vector<2x64xf32>
    %406 = vector.extract_strided_slice %405 {offsets = [0, 0], sizes = [2, 16], strides = [1, 1]} : vector<2x64xf32> to vector<2x16xf32>
    %407 = arith.negf %406 : vector<2x16xf32>
    %408 = math.exp %407 : vector<2x16xf32>
    %cst_85 = arith.constant 1.000000e+00 : f32
    %409 = vector.broadcast %cst_85 : f32 to vector<2x16xf32>
    %410 = arith.addf %409, %408 : vector<2x16xf32>
    %411 = arith.divf %409, %410 : vector<2x16xf32>
    %412 = vector.extract_strided_slice %405 {offsets = [0, 16], sizes = [2, 16], strides = [1, 1]} : vector<2x64xf32> to vector<2x16xf32>
    %413 = arith.negf %412 : vector<2x16xf32>
    %414 = math.exp %413 : vector<2x16xf32>
    %cst_86 = arith.constant 1.000000e+00 : f32
    %415 = vector.broadcast %cst_86 : f32 to vector<2x16xf32>
    %416 = arith.addf %415, %414 : vector<2x16xf32>
    %417 = arith.divf %415, %416 : vector<2x16xf32>
    %418 = vector.extract_strided_slice %405 {offsets = [0, 32], sizes = [2, 16], strides = [1, 1]} : vector<2x64xf32> to vector<2x16xf32>
    %419 = math.tanh %418 : vector<2x16xf32>
    %420 = vector.extract_strided_slice %405 {offsets = [0, 48], sizes = [2, 16], strides = [1, 1]} : vector<2x64xf32> to vector<2x16xf32>
    %421 = arith.negf %420 : vector<2x16xf32>
    %422 = math.exp %421 : vector<2x16xf32>
    %cst_87 = arith.constant 1.000000e+00 : f32
    %423 = vector.broadcast %cst_87 : f32 to vector<2x16xf32>
    %424 = arith.addf %423, %422 : vector<2x16xf32>
    %425 = arith.divf %423, %424 : vector<2x16xf32>
    %426 = arith.mulf %417, %399 : vector<2x16xf32>
    %427 = arith.mulf %411, %419 : vector<2x16xf32>
    %428 = arith.addf %426, %427 : vector<2x16xf32>
    %429 = math.tanh %428 : vector<2x16xf32>
    %430 = arith.mulf %425, %429 : vector<2x16xf32>
    %431 = tpu.concatenate %3, %430 in 1 : vector<2x8xf32>, vector<2x16xf32> -> vector<2x24xf32>
    %cst_88 = arith.constant dense<0.000000e+00> : vector<2x64xf32>
    %432 = tpu.matmul %431, %18, %cst_88 {dimension_numbers = #tpu.dot_dimension_numbers<[1], [0], [0], [1], [0, 0, 1, 1], [], []>} : vector<2x24xf32>, vector<24x64xf32>, vector<2x64xf32> -> vector<2x64xf32>
    %433 = vector.broadcast %19 : vector<1x64xf32> to vector<2x64xf32>
    %434 = arith.addf %432, %433 : vector<2x64xf32>
    %435 = vector.extract_strided_slice %434 {offsets = [0, 0], sizes = [2, 16], strides = [1, 1]} : vector<2x64xf32> to vector<2x16xf32>
    %436 = arith.negf %435 : vector<2x16xf32>
    %437 = math.exp %436 : vector<2x16xf32>
    %cst_89 = arith.constant 1.000000e+00 : f32
    %438 = vector.broadcast %cst_89 : f32 to vector<2x16xf32>
    %439 = arith.addf %438, %437 : vector<2x16xf32>
    %440 = arith.divf %438, %439 : vector<2x16xf32>
    %441 = vector.extract_strided_slice %434 {offsets = [0, 16], sizes = [2, 16], strides = [1, 1]} : vector<2x64xf32> to vector<2x16xf32>
    %442 = arith.negf %441 : vector<2x16xf32>
    %443 = math.exp %442 : vector<2x16xf32>
    %cst_90 = arith.constant 1.000000e+00 : f32
    %444 = vector.broadcast %cst_90 : f32 to vector<2x16xf32>
    %445 = arith.addf %444, %443 : vector<2x16xf32>
    %446 = arith.divf %444, %445 : vector<2x16xf32>
    %447 = vector.extract_strided_slice %434 {offsets = [0, 32], sizes = [2, 16], strides = [1, 1]} : vector<2x64xf32> to vector<2x16xf32>
    %448 = math.tanh %447 : vector<2x16xf32>
    %449 = vector.extract_strided_slice %434 {offsets = [0, 48], sizes = [2, 16], strides = [1, 1]} : vector<2x64xf32> to vector<2x16xf32>
    %450 = arith.negf %449 : vector<2x16xf32>
    %451 = math.exp %450 : vector<2x16xf32>
    %cst_91 = arith.constant 1.000000e+00 : f32
    %452 = vector.broadcast %cst_91 : f32 to vector<2x16xf32>
    %453 = arith.addf %452, %451 : vector<2x16xf32>
    %454 = arith.divf %452, %453 : vector<2x16xf32>
    %455 = arith.mulf %446, %428 : vector<2x16xf32>
    %456 = arith.mulf %440, %448 : vector<2x16xf32>
    %457 = arith.addf %455, %456 : vector<2x16xf32>
    %458 = math.tanh %457 : vector<2x16xf32>
    %459 = arith.mulf %454, %458 : vector<2x16xf32>
    %460 = tpu.concatenate %1, %459 in 1 : vector<2x8xf32>, vector<2x16xf32> -> vector<2x24xf32>
    %cst_92 = arith.constant dense<0.000000e+00> : vector<2x64xf32>
    %461 = tpu.matmul %460, %18, %cst_92 {dimension_numbers = #tpu.dot_dimension_numbers<[1], [0], [0], [1], [0, 0, 1, 1], [], []>} : vector<2x24xf32>, vector<24x64xf32>, vector<2x64xf32> -> vector<2x64xf32>
    %462 = vector.broadcast %19 : vector<1x64xf32> to vector<2x64xf32>
    %463 = arith.addf %461, %462 : vector<2x64xf32>
    %464 = vector.extract_strided_slice %463 {offsets = [0, 0], sizes = [2, 16], strides = [1, 1]} : vector<2x64xf32> to vector<2x16xf32>
    %465 = arith.negf %464 : vector<2x16xf32>
    %466 = math.exp %465 : vector<2x16xf32>
    %cst_93 = arith.constant 1.000000e+00 : f32
    %467 = vector.broadcast %cst_93 : f32 to vector<2x16xf32>
    %468 = arith.addf %467, %466 : vector<2x16xf32>
    %469 = arith.divf %467, %468 : vector<2x16xf32>
    %470 = vector.extract_strided_slice %463 {offsets = [0, 16], sizes = [2, 16], strides = [1, 1]} : vector<2x64xf32> to vector<2x16xf32>
    %471 = arith.negf %470 : vector<2x16xf32>
    %472 = math.exp %471 : vector<2x16xf32>
    %cst_94 = arith.constant 1.000000e+00 : f32
    %473 = vector.broadcast %cst_94 : f32 to vector<2x16xf32>
    %474 = arith.addf %473, %472 : vector<2x16xf32>
    %475 = arith.divf %473, %474 : vector<2x16xf32>
    %476 = vector.extract_strided_slice %463 {offsets = [0, 32], sizes = [2, 16], strides = [1, 1]} : vector<2x64xf32> to vector<2x16xf32>
    %477 = math.tanh %476 : vector<2x16xf32>
    %478 = vector.extract_strided_slice %463 {offsets = [0, 48], sizes = [2, 16], strides = [1, 1]} : vector<2x64xf32> to vector<2x16xf32>
    %479 = arith.negf %478 : vector<2x16xf32>
    %480 = math.exp %479 : vector<2x16xf32>
    %cst_95 = arith.constant 1.000000e+00 : f32
    %481 = vector.broadcast %cst_95 : f32 to vector<2x16xf32>
    %482 = arith.addf %481, %480 : vector<2x16xf32>
    %483 = arith.divf %481, %482 : vector<2x16xf32>
    %484 = arith.mulf %475, %457 : vector<2x16xf32>
    %485 = arith.mulf %469, %477 : vector<2x16xf32>
    %486 = arith.addf %484, %485 : vector<2x16xf32>
    %487 = math.tanh %486 : vector<2x16xf32>
    %488 = arith.mulf %483, %487 : vector<2x16xf32>
    %489 = tpu.concatenate %53, %488 in 1 : vector<2x16xf32>, vector<2x16xf32> -> vector<2x32xf32>
    %490 = tpu.concatenate %82, %459 in 1 : vector<2x16xf32>, vector<2x16xf32> -> vector<2x32xf32>
    %491 = tpu.concatenate %111, %430 in 1 : vector<2x16xf32>, vector<2x16xf32> -> vector<2x32xf32>
    %492 = tpu.concatenate %140, %401 in 1 : vector<2x16xf32>, vector<2x16xf32> -> vector<2x32xf32>
    %493 = tpu.concatenate %169, %372 in 1 : vector<2x16xf32>, vector<2x16xf32> -> vector<2x32xf32>
    %494 = tpu.concatenate %198, %343 in 1 : vector<2x16xf32>, vector<2x16xf32> -> vector<2x32xf32>
    %495 = tpu.concatenate %227, %314 in 1 : vector<2x16xf32>, vector<2x16xf32> -> vector<2x32xf32>
    %496 = tpu.concatenate %256, %285 in 1 : vector<2x16xf32>, vector<2x16xf32> -> vector<2x32xf32>
    %497 = tpu.concatenate %489, %24 in 1 : vector<2x32xf32>, vector<2x16xf32> -> vector<2x48xf32>
    %cst_96 = arith.constant dense<0.000000e+00> : vector<2x64xf32>
    %498 = tpu.matmul %497, %20, %cst_96 {dimension_numbers = #tpu.dot_dimension_numbers<[1], [0], [0], [1], [0, 0, 1, 1], [], []>} : vector<2x48xf32>, vector<48x64xf32>, vector<2x64xf32> -> vector<2x64xf32>
    %499 = vector.broadcast %21 : vector<1x64xf32> to vector<2x64xf32>
    %500 = arith.addf %498, %499 : vector<2x64xf32>
    %501 = vector.extract_strided_slice %500 {offsets = [0, 0], sizes = [2, 16], strides = [1, 1]} : vector<2x64xf32> to vector<2x16xf32>
    %502 = arith.negf %501 : vector<2x16xf32>
    %503 = math.exp %502 : vector<2x16xf32>
    %cst_97 = arith.constant 1.000000e+00 : f32
    %504 = vector.broadcast %cst_97 : f32 to vector<2x16xf32>
    %505 = arith.addf %504, %503 : vector<2x16xf32>
    %506 = arith.divf %504, %505 : vector<2x16xf32>
    %507 = vector.extract_strided_slice %500 {offsets = [0, 16], sizes = [2, 16], strides = [1, 1]} : vector<2x64xf32> to vector<2x16xf32>
    %508 = arith.negf %507 : vector<2x16xf32>
    %509 = math.exp %508 : vector<2x16xf32>
    %cst_98 = arith.constant 1.000000e+00 : f32
    %510 = vector.broadcast %cst_98 : f32 to vector<2x16xf32>
    %511 = arith.addf %510, %509 : vector<2x16xf32>
    %512 = arith.divf %510, %511 : vector<2x16xf32>
    %513 = vector.extract_strided_slice %500 {offsets = [0, 32], sizes = [2, 16], strides = [1, 1]} : vector<2x64xf32> to vector<2x16xf32>
    %514 = math.tanh %513 : vector<2x16xf32>
    %515 = vector.extract_strided_slice %500 {offsets = [0, 48], sizes = [2, 16], strides = [1, 1]} : vector<2x64xf32> to vector<2x16xf32>
    %516 = arith.negf %515 : vector<2x16xf32>
    %517 = math.exp %516 : vector<2x16xf32>
    %cst_99 = arith.constant 1.000000e+00 : f32
    %518 = vector.broadcast %cst_99 : f32 to vector<2x16xf32>
    %519 = arith.addf %518, %517 : vector<2x16xf32>
    %520 = arith.divf %518, %519 : vector<2x16xf32>
    %521 = arith.mulf %512, %24 : vector<2x16xf32>
    %522 = arith.mulf %506, %514 : vector<2x16xf32>
    %523 = arith.addf %521, %522 : vector<2x16xf32>
    %524 = math.tanh %523 : vector<2x16xf32>
    %525 = arith.mulf %520, %524 : vector<2x16xf32>
    %526 = arith.addf %24, %525 : vector<2x16xf32>
    %527 = tpu.concatenate %490, %525 in 1 : vector<2x32xf32>, vector<2x16xf32> -> vector<2x48xf32>
    %cst_100 = arith.constant dense<0.000000e+00> : vector<2x64xf32>
    %528 = tpu.matmul %527, %20, %cst_100 {dimension_numbers = #tpu.dot_dimension_numbers<[1], [0], [0], [1], [0, 0, 1, 1], [], []>} : vector<2x48xf32>, vector<48x64xf32>, vector<2x64xf32> -> vector<2x64xf32>
    %529 = vector.broadcast %21 : vector<1x64xf32> to vector<2x64xf32>
    %530 = arith.addf %528, %529 : vector<2x64xf32>
    %531 = vector.extract_strided_slice %530 {offsets = [0, 0], sizes = [2, 16], strides = [1, 1]} : vector<2x64xf32> to vector<2x16xf32>
    %532 = arith.negf %531 : vector<2x16xf32>
    %533 = math.exp %532 : vector<2x16xf32>
    %cst_101 = arith.constant 1.000000e+00 : f32
    %534 = vector.broadcast %cst_101 : f32 to vector<2x16xf32>
    %535 = arith.addf %534, %533 : vector<2x16xf32>
    %536 = arith.divf %534, %535 : vector<2x16xf32>
    %537 = vector.extract_strided_slice %530 {offsets = [0, 16], sizes = [2, 16], strides = [1, 1]} : vector<2x64xf32> to vector<2x16xf32>
    %538 = arith.negf %537 : vector<2x16xf32>
    %539 = math.exp %538 : vector<2x16xf32>
    %cst_102 = arith.constant 1.000000e+00 : f32
    %540 = vector.broadcast %cst_102 : f32 to vector<2x16xf32>
    %541 = arith.addf %540, %539 : vector<2x16xf32>
    %542 = arith.divf %540, %541 : vector<2x16xf32>
    %543 = vector.extract_strided_slice %530 {offsets = [0, 32], sizes = [2, 16], strides = [1, 1]} : vector<2x64xf32> to vector<2x16xf32>
    %544 = math.tanh %543 : vector<2x16xf32>
    %545 = vector.extract_strided_slice %530 {offsets = [0, 48], sizes = [2, 16], strides = [1, 1]} : vector<2x64xf32> to vector<2x16xf32>
    %546 = arith.negf %545 : vector<2x16xf32>
    %547 = math.exp %546 : vector<2x16xf32>
    %cst_103 = arith.constant 1.000000e+00 : f32
    %548 = vector.broadcast %cst_103 : f32 to vector<2x16xf32>
    %549 = arith.addf %548, %547 : vector<2x16xf32>
    %550 = arith.divf %548, %549 : vector<2x16xf32>
    %551 = arith.mulf %542, %523 : vector<2x16xf32>
    %552 = arith.mulf %536, %544 : vector<2x16xf32>
    %553 = arith.addf %551, %552 : vector<2x16xf32>
    %554 = math.tanh %553 : vector<2x16xf32>
    %555 = arith.mulf %550, %554 : vector<2x16xf32>
    %556 = arith.addf %526, %555 : vector<2x16xf32>
    %557 = tpu.concatenate %491, %555 in 1 : vector<2x32xf32>, vector<2x16xf32> -> vector<2x48xf32>
    %cst_104 = arith.constant dense<0.000000e+00> : vector<2x64xf32>
    %558 = tpu.matmul %557, %20, %cst_104 {dimension_numbers = #tpu.dot_dimension_numbers<[1], [0], [0], [1], [0, 0, 1, 1], [], []>} : vector<2x48xf32>, vector<48x64xf32>, vector<2x64xf32> -> vector<2x64xf32>
    %559 = vector.broadcast %21 : vector<1x64xf32> to vector<2x64xf32>
    %560 = arith.addf %558, %559 : vector<2x64xf32>
    %561 = vector.extract_strided_slice %560 {offsets = [0, 0], sizes = [2, 16], strides = [1, 1]} : vector<2x64xf32> to vector<2x16xf32>
    %562 = arith.negf %561 : vector<2x16xf32>
    %563 = math.exp %562 : vector<2x16xf32>
    %cst_105 = arith.constant 1.000000e+00 : f32
    %564 = vector.broadcast %cst_105 : f32 to vector<2x16xf32>
    %565 = arith.addf %564, %563 : vector<2x16xf32>
    %566 = arith.divf %564, %565 : vector<2x16xf32>
    %567 = vector.extract_strided_slice %560 {offsets = [0, 16], sizes = [2, 16], strides = [1, 1]} : vector<2x64xf32> to vector<2x16xf32>
    %568 = arith.negf %567 : vector<2x16xf32>
    %569 = math.exp %568 : vector<2x16xf32>
    %cst_106 = arith.constant 1.000000e+00 : f32
    %570 = vector.broadcast %cst_106 : f32 to vector<2x16xf32>
    %571 = arith.addf %570, %569 : vector<2x16xf32>
    %572 = arith.divf %570, %571 : vector<2x16xf32>
    %573 = vector.extract_strided_slice %560 {offsets = [0, 32], sizes = [2, 16], strides = [1, 1]} : vector<2x64xf32> to vector<2x16xf32>
    %574 = math.tanh %573 : vector<2x16xf32>
    %575 = vector.extract_strided_slice %560 {offsets = [0, 48], sizes = [2, 16], strides = [1, 1]} : vector<2x64xf32> to vector<2x16xf32>
    %576 = arith.negf %575 : vector<2x16xf32>
    %577 = math.exp %576 : vector<2x16xf32>
    %cst_107 = arith.constant 1.000000e+00 : f32
    %578 = vector.broadcast %cst_107 : f32 to vector<2x16xf32>
    %579 = arith.addf %578, %577 : vector<2x16xf32>
    %580 = arith.divf %578, %579 : vector<2x16xf32>
    %581 = arith.mulf %572, %553 : vector<2x16xf32>
    %582 = arith.mulf %566, %574 : vector<2x16xf32>
    %583 = arith.addf %581, %582 : vector<2x16xf32>
    %584 = math.tanh %583 : vector<2x16xf32>
    %585 = arith.mulf %580, %584 : vector<2x16xf32>
    %586 = arith.addf %556, %585 : vector<2x16xf32>
    %587 = tpu.concatenate %492, %585 in 1 : vector<2x32xf32>, vector<2x16xf32> -> vector<2x48xf32>
    %cst_108 = arith.constant dense<0.000000e+00> : vector<2x64xf32>
    %588 = tpu.matmul %587, %20, %cst_108 {dimension_numbers = #tpu.dot_dimension_numbers<[1], [0], [0], [1], [0, 0, 1, 1], [], []>} : vector<2x48xf32>, vector<48x64xf32>, vector<2x64xf32> -> vector<2x64xf32>
    %589 = vector.broadcast %21 : vector<1x64xf32> to vector<2x64xf32>
    %590 = arith.addf %588, %589 : vector<2x64xf32>
    %591 = vector.extract_strided_slice %590 {offsets = [0, 0], sizes = [2, 16], strides = [1, 1]} : vector<2x64xf32> to vector<2x16xf32>
    %592 = arith.negf %591 : vector<2x16xf32>
    %593 = math.exp %592 : vector<2x16xf32>
    %cst_109 = arith.constant 1.000000e+00 : f32
    %594 = vector.broadcast %cst_109 : f32 to vector<2x16xf32>
    %595 = arith.addf %594, %593 : vector<2x16xf32>
    %596 = arith.divf %594, %595 : vector<2x16xf32>
    %597 = vector.extract_strided_slice %590 {offsets = [0, 16], sizes = [2, 16], strides = [1, 1]} : vector<2x64xf32> to vector<2x16xf32>
    %598 = arith.negf %597 : vector<2x16xf32>
    %599 = math.exp %598 : vector<2x16xf32>
    %cst_110 = arith.constant 1.000000e+00 : f32
    %600 = vector.broadcast %cst_110 : f32 to vector<2x16xf32>
    %601 = arith.addf %600, %599 : vector<2x16xf32>
    %602 = arith.divf %600, %601 : vector<2x16xf32>
    %603 = vector.extract_strided_slice %590 {offsets = [0, 32], sizes = [2, 16], strides = [1, 1]} : vector<2x64xf32> to vector<2x16xf32>
    %604 = math.tanh %603 : vector<2x16xf32>
    %605 = vector.extract_strided_slice %590 {offsets = [0, 48], sizes = [2, 16], strides = [1, 1]} : vector<2x64xf32> to vector<2x16xf32>
    %606 = arith.negf %605 : vector<2x16xf32>
    %607 = math.exp %606 : vector<2x16xf32>
    %cst_111 = arith.constant 1.000000e+00 : f32
    %608 = vector.broadcast %cst_111 : f32 to vector<2x16xf32>
    %609 = arith.addf %608, %607 : vector<2x16xf32>
    %610 = arith.divf %608, %609 : vector<2x16xf32>
    %611 = arith.mulf %602, %583 : vector<2x16xf32>
    %612 = arith.mulf %596, %604 : vector<2x16xf32>
    %613 = arith.addf %611, %612 : vector<2x16xf32>
    %614 = math.tanh %613 : vector<2x16xf32>
    %615 = arith.mulf %610, %614 : vector<2x16xf32>
    %616 = arith.addf %586, %615 : vector<2x16xf32>
    %617 = tpu.concatenate %493, %615 in 1 : vector<2x32xf32>, vector<2x16xf32> -> vector<2x48xf32>
    %cst_112 = arith.constant dense<0.000000e+00> : vector<2x64xf32>
    %618 = tpu.matmul %617, %20, %cst_112 {dimension_numbers = #tpu.dot_dimension_numbers<[1], [0], [0], [1], [0, 0, 1, 1], [], []>} : vector<2x48xf32>, vector<48x64xf32>, vector<2x64xf32> -> vector<2x64xf32>
    %619 = vector.broadcast %21 : vector<1x64xf32> to vector<2x64xf32>
    %620 = arith.addf %618, %619 : vector<2x64xf32>
    %621 = vector.extract_strided_slice %620 {offsets = [0, 0], sizes = [2, 16], strides = [1, 1]} : vector<2x64xf32> to vector<2x16xf32>
    %622 = arith.negf %621 : vector<2x16xf32>
    %623 = math.exp %622 : vector<2x16xf32>
    %cst_113 = arith.constant 1.000000e+00 : f32
    %624 = vector.broadcast %cst_113 : f32 to vector<2x16xf32>
    %625 = arith.addf %624, %623 : vector<2x16xf32>
    %626 = arith.divf %624, %625 : vector<2x16xf32>
    %627 = vector.extract_strided_slice %620 {offsets = [0, 16], sizes = [2, 16], strides = [1, 1]} : vector<2x64xf32> to vector<2x16xf32>
    %628 = arith.negf %627 : vector<2x16xf32>
    %629 = math.exp %628 : vector<2x16xf32>
    %cst_114 = arith.constant 1.000000e+00 : f32
    %630 = vector.broadcast %cst_114 : f32 to vector<2x16xf32>
    %631 = arith.addf %630, %629 : vector<2x16xf32>
    %632 = arith.divf %630, %631 : vector<2x16xf32>
    %633 = vector.extract_strided_slice %620 {offsets = [0, 32], sizes = [2, 16], strides = [1, 1]} : vector<2x64xf32> to vector<2x16xf32>
    %634 = math.tanh %633 : vector<2x16xf32>
    %635 = vector.extract_strided_slice %620 {offsets = [0, 48], sizes = [2, 16], strides = [1, 1]} : vector<2x64xf32> to vector<2x16xf32>
    %636 = arith.negf %635 : vector<2x16xf32>
    %637 = math.exp %636 : vector<2x16xf32>
    %cst_115 = arith.constant 1.000000e+00 : f32
    %638 = vector.broadcast %cst_115 : f32 to vector<2x16xf32>
    %639 = arith.addf %638, %637 : vector<2x16xf32>
    %640 = arith.divf %638, %639 : vector<2x16xf32>
    %641 = arith.mulf %632, %613 : vector<2x16xf32>
    %642 = arith.mulf %626, %634 : vector<2x16xf32>
    %643 = arith.addf %641, %642 : vector<2x16xf32>
    %644 = math.tanh %643 : vector<2x16xf32>
    %645 = arith.mulf %640, %644 : vector<2x16xf32>
    %646 = arith.addf %616, %645 : vector<2x16xf32>
    %647 = tpu.concatenate %494, %645 in 1 : vector<2x32xf32>, vector<2x16xf32> -> vector<2x48xf32>
    %cst_116 = arith.constant dense<0.000000e+00> : vector<2x64xf32>
    %648 = tpu.matmul %647, %20, %cst_116 {dimension_numbers = #tpu.dot_dimension_numbers<[1], [0], [0], [1], [0, 0, 1, 1], [], []>} : vector<2x48xf32>, vector<48x64xf32>, vector<2x64xf32> -> vector<2x64xf32>
    %649 = vector.broadcast %21 : vector<1x64xf32> to vector<2x64xf32>
    %650 = arith.addf %648, %649 : vector<2x64xf32>
    %651 = vector.extract_strided_slice %650 {offsets = [0, 0], sizes = [2, 16], strides = [1, 1]} : vector<2x64xf32> to vector<2x16xf32>
    %652 = arith.negf %651 : vector<2x16xf32>
    %653 = math.exp %652 : vector<2x16xf32>
    %cst_117 = arith.constant 1.000000e+00 : f32
    %654 = vector.broadcast %cst_117 : f32 to vector<2x16xf32>
    %655 = arith.addf %654, %653 : vector<2x16xf32>
    %656 = arith.divf %654, %655 : vector<2x16xf32>
    %657 = vector.extract_strided_slice %650 {offsets = [0, 16], sizes = [2, 16], strides = [1, 1]} : vector<2x64xf32> to vector<2x16xf32>
    %658 = arith.negf %657 : vector<2x16xf32>
    %659 = math.exp %658 : vector<2x16xf32>
    %cst_118 = arith.constant 1.000000e+00 : f32
    %660 = vector.broadcast %cst_118 : f32 to vector<2x16xf32>
    %661 = arith.addf %660, %659 : vector<2x16xf32>
    %662 = arith.divf %660, %661 : vector<2x16xf32>
    %663 = vector.extract_strided_slice %650 {offsets = [0, 32], sizes = [2, 16], strides = [1, 1]} : vector<2x64xf32> to vector<2x16xf32>
    %664 = math.tanh %663 : vector<2x16xf32>
    %665 = vector.extract_strided_slice %650 {offsets = [0, 48], sizes = [2, 16], strides = [1, 1]} : vector<2x64xf32> to vector<2x16xf32>
    %666 = arith.negf %665 : vector<2x16xf32>
    %667 = math.exp %666 : vector<2x16xf32>
    %cst_119 = arith.constant 1.000000e+00 : f32
    %668 = vector.broadcast %cst_119 : f32 to vector<2x16xf32>
    %669 = arith.addf %668, %667 : vector<2x16xf32>
    %670 = arith.divf %668, %669 : vector<2x16xf32>
    %671 = arith.mulf %662, %643 : vector<2x16xf32>
    %672 = arith.mulf %656, %664 : vector<2x16xf32>
    %673 = arith.addf %671, %672 : vector<2x16xf32>
    %674 = math.tanh %673 : vector<2x16xf32>
    %675 = arith.mulf %670, %674 : vector<2x16xf32>
    %676 = arith.addf %646, %675 : vector<2x16xf32>
    %677 = tpu.concatenate %495, %675 in 1 : vector<2x32xf32>, vector<2x16xf32> -> vector<2x48xf32>
    %cst_120 = arith.constant dense<0.000000e+00> : vector<2x64xf32>
    %678 = tpu.matmul %677, %20, %cst_120 {dimension_numbers = #tpu.dot_dimension_numbers<[1], [0], [0], [1], [0, 0, 1, 1], [], []>} : vector<2x48xf32>, vector<48x64xf32>, vector<2x64xf32> -> vector<2x64xf32>
    %679 = vector.broadcast %21 : vector<1x64xf32> to vector<2x64xf32>
    %680 = arith.addf %678, %679 : vector<2x64xf32>
    %681 = vector.extract_strided_slice %680 {offsets = [0, 0], sizes = [2, 16], strides = [1, 1]} : vector<2x64xf32> to vector<2x16xf32>
    %682 = arith.negf %681 : vector<2x16xf32>
    %683 = math.exp %682 : vector<2x16xf32>
    %cst_121 = arith.constant 1.000000e+00 : f32
    %684 = vector.broadcast %cst_121 : f32 to vector<2x16xf32>
    %685 = arith.addf %684, %683 : vector<2x16xf32>
    %686 = arith.divf %684, %685 : vector<2x16xf32>
    %687 = vector.extract_strided_slice %680 {offsets = [0, 16], sizes = [2, 16], strides = [1, 1]} : vector<2x64xf32> to vector<2x16xf32>
    %688 = arith.negf %687 : vector<2x16xf32>
    %689 = math.exp %688 : vector<2x16xf32>
    %cst_122 = arith.constant 1.000000e+00 : f32
    %690 = vector.broadcast %cst_122 : f32 to vector<2x16xf32>
    %691 = arith.addf %690, %689 : vector<2x16xf32>
    %692 = arith.divf %690, %691 : vector<2x16xf32>
    %693 = vector.extract_strided_slice %680 {offsets = [0, 32], sizes = [2, 16], strides = [1, 1]} : vector<2x64xf32> to vector<2x16xf32>
    %694 = math.tanh %693 : vector<2x16xf32>
    %695 = vector.extract_strided_slice %680 {offsets = [0, 48], sizes = [2, 16], strides = [1, 1]} : vector<2x64xf32> to vector<2x16xf32>
    %696 = arith.negf %695 : vector<2x16xf32>
    %697 = math.exp %696 : vector<2x16xf32>
    %cst_123 = arith.constant 1.000000e+00 : f32
    %698 = vector.broadcast %cst_123 : f32 to vector<2x16xf32>
    %699 = arith.addf %698, %697 : vector<2x16xf32>
    %700 = arith.divf %698, %699 : vector<2x16xf32>
    %701 = arith.mulf %692, %673 : vector<2x16xf32>
    %702 = arith.mulf %686, %694 : vector<2x16xf32>
    %703 = arith.addf %701, %702 : vector<2x16xf32>
    %704 = math.tanh %703 : vector<2x16xf32>
    %705 = arith.mulf %700, %704 : vector<2x16xf32>
    %706 = arith.addf %676, %705 : vector<2x16xf32>
    %707 = tpu.concatenate %496, %705 in 1 : vector<2x32xf32>, vector<2x16xf32> -> vector<2x48xf32>
    %cst_124 = arith.constant dense<0.000000e+00> : vector<2x64xf32>
    %708 = tpu.matmul %707, %20, %cst_124 {dimension_numbers = #tpu.dot_dimension_numbers<[1], [0], [0], [1], [0, 0, 1, 1], [], []>} : vector<2x48xf32>, vector<48x64xf32>, vector<2x64xf32> -> vector<2x64xf32>
    %709 = vector.broadcast %21 : vector<1x64xf32> to vector<2x64xf32>
    %710 = arith.addf %708, %709 : vector<2x64xf32>
    %711 = vector.extract_strided_slice %710 {offsets = [0, 0], sizes = [2, 16], strides = [1, 1]} : vector<2x64xf32> to vector<2x16xf32>
    %712 = arith.negf %711 : vector<2x16xf32>
    %713 = math.exp %712 : vector<2x16xf32>
    %cst_125 = arith.constant 1.000000e+00 : f32
    %714 = vector.broadcast %cst_125 : f32 to vector<2x16xf32>
    %715 = arith.addf %714, %713 : vector<2x16xf32>
    %716 = arith.divf %714, %715 : vector<2x16xf32>
    %717 = vector.extract_strided_slice %710 {offsets = [0, 16], sizes = [2, 16], strides = [1, 1]} : vector<2x64xf32> to vector<2x16xf32>
    %718 = arith.negf %717 : vector<2x16xf32>
    %719 = math.exp %718 : vector<2x16xf32>
    %cst_126 = arith.constant 1.000000e+00 : f32
    %720 = vector.broadcast %cst_126 : f32 to vector<2x16xf32>
    %721 = arith.addf %720, %719 : vector<2x16xf32>
    %722 = arith.divf %720, %721 : vector<2x16xf32>
    %723 = vector.extract_strided_slice %710 {offsets = [0, 32], sizes = [2, 16], strides = [1, 1]} : vector<2x64xf32> to vector<2x16xf32>
    %724 = math.tanh %723 : vector<2x16xf32>
    %725 = vector.extract_strided_slice %710 {offsets = [0, 48], sizes = [2, 16], strides = [1, 1]} : vector<2x64xf32> to vector<2x16xf32>
    %726 = arith.negf %725 : vector<2x16xf32>
    %727 = math.exp %726 : vector<2x16xf32>
    %cst_127 = arith.constant 1.000000e+00 : f32
    %728 = vector.broadcast %cst_127 : f32 to vector<2x16xf32>
    %729 = arith.addf %728, %727 : vector<2x16xf32>
    %730 = arith.divf %728, %729 : vector<2x16xf32>
    %731 = arith.mulf %722, %703 : vector<2x16xf32>
    %732 = arith.mulf %716, %724 : vector<2x16xf32>
    %733 = arith.addf %731, %732 : vector<2x16xf32>
    %734 = math.tanh %733 : vector<2x16xf32>
    %735 = arith.mulf %730, %734 : vector<2x16xf32>
    %736 = arith.addf %706, %735 : vector<2x16xf32>
    %737 = tpu.concatenate %496, %24 in 1 : vector<2x32xf32>, vector<2x16xf32> -> vector<2x48xf32>
    %cst_128 = arith.constant dense<0.000000e+00> : vector<2x64xf32>
    %738 = tpu.matmul %737, %22, %cst_128 {dimension_numbers = #tpu.dot_dimension_numbers<[1], [0], [0], [1], [0, 0, 1, 1], [], []>} : vector<2x48xf32>, vector<48x64xf32>, vector<2x64xf32> -> vector<2x64xf32>
    %739 = vector.broadcast %23 : vector<1x64xf32> to vector<2x64xf32>
    %740 = arith.addf %738, %739 : vector<2x64xf32>
    %741 = vector.extract_strided_slice %740 {offsets = [0, 0], sizes = [2, 16], strides = [1, 1]} : vector<2x64xf32> to vector<2x16xf32>
    %742 = arith.negf %741 : vector<2x16xf32>
    %743 = math.exp %742 : vector<2x16xf32>
    %cst_129 = arith.constant 1.000000e+00 : f32
    %744 = vector.broadcast %cst_129 : f32 to vector<2x16xf32>
    %745 = arith.addf %744, %743 : vector<2x16xf32>
    %746 = arith.divf %744, %745 : vector<2x16xf32>
    %747 = vector.extract_strided_slice %740 {offsets = [0, 16], sizes = [2, 16], strides = [1, 1]} : vector<2x64xf32> to vector<2x16xf32>
    %748 = arith.negf %747 : vector<2x16xf32>
    %749 = math.exp %748 : vector<2x16xf32>
    %cst_130 = arith.constant 1.000000e+00 : f32
    %750 = vector.broadcast %cst_130 : f32 to vector<2x16xf32>
    %751 = arith.addf %750, %749 : vector<2x16xf32>
    %752 = arith.divf %750, %751 : vector<2x16xf32>
    %753 = vector.extract_strided_slice %740 {offsets = [0, 32], sizes = [2, 16], strides = [1, 1]} : vector<2x64xf32> to vector<2x16xf32>
    %754 = math.tanh %753 : vector<2x16xf32>
    %755 = vector.extract_strided_slice %740 {offsets = [0, 48], sizes = [2, 16], strides = [1, 1]} : vector<2x64xf32> to vector<2x16xf32>
    %756 = arith.negf %755 : vector<2x16xf32>
    %757 = math.exp %756 : vector<2x16xf32>
    %cst_131 = arith.constant 1.000000e+00 : f32
    %758 = vector.broadcast %cst_131 : f32 to vector<2x16xf32>
    %759 = arith.addf %758, %757 : vector<2x16xf32>
    %760 = arith.divf %758, %759 : vector<2x16xf32>
    %761 = arith.mulf %752, %24 : vector<2x16xf32>
    %762 = arith.mulf %746, %754 : vector<2x16xf32>
    %763 = arith.addf %761, %762 : vector<2x16xf32>
    %764 = math.tanh %763 : vector<2x16xf32>
    %765 = arith.mulf %760, %764 : vector<2x16xf32>
    %766 = arith.addf %24, %765 : vector<2x16xf32>
    %767 = tpu.concatenate %495, %765 in 1 : vector<2x32xf32>, vector<2x16xf32> -> vector<2x48xf32>
    %cst_132 = arith.constant dense<0.000000e+00> : vector<2x64xf32>
    %768 = tpu.matmul %767, %22, %cst_132 {dimension_numbers = #tpu.dot_dimension_numbers<[1], [0], [0], [1], [0, 0, 1, 1], [], []>} : vector<2x48xf32>, vector<48x64xf32>, vector<2x64xf32> -> vector<2x64xf32>
    %769 = vector.broadcast %23 : vector<1x64xf32> to vector<2x64xf32>
    %770 = arith.addf %768, %769 : vector<2x64xf32>
    %771 = vector.extract_strided_slice %770 {offsets = [0, 0], sizes = [2, 16], strides = [1, 1]} : vector<2x64xf32> to vector<2x16xf32>
    %772 = arith.negf %771 : vector<2x16xf32>
    %773 = math.exp %772 : vector<2x16xf32>
    %cst_133 = arith.constant 1.000000e+00 : f32
    %774 = vector.broadcast %cst_133 : f32 to vector<2x16xf32>
    %775 = arith.addf %774, %773 : vector<2x16xf32>
    %776 = arith.divf %774, %775 : vector<2x16xf32>
    %777 = vector.extract_strided_slice %770 {offsets = [0, 16], sizes = [2, 16], strides = [1, 1]} : vector<2x64xf32> to vector<2x16xf32>
    %778 = arith.negf %777 : vector<2x16xf32>
    %779 = math.exp %778 : vector<2x16xf32>
    %cst_134 = arith.constant 1.000000e+00 : f32
    %780 = vector.broadcast %cst_134 : f32 to vector<2x16xf32>
    %781 = arith.addf %780, %779 : vector<2x16xf32>
    %782 = arith.divf %780, %781 : vector<2x16xf32>
    %783 = vector.extract_strided_slice %770 {offsets = [0, 32], sizes = [2, 16], strides = [1, 1]} : vector<2x64xf32> to vector<2x16xf32>
    %784 = math.tanh %783 : vector<2x16xf32>
    %785 = vector.extract_strided_slice %770 {offsets = [0, 48], sizes = [2, 16], strides = [1, 1]} : vector<2x64xf32> to vector<2x16xf32>
    %786 = arith.negf %785 : vector<2x16xf32>
    %787 = math.exp %786 : vector<2x16xf32>
    %cst_135 = arith.constant 1.000000e+00 : f32
    %788 = vector.broadcast %cst_135 : f32 to vector<2x16xf32>
    %789 = arith.addf %788, %787 : vector<2x16xf32>
    %790 = arith.divf %788, %789 : vector<2x16xf32>
    %791 = arith.mulf %782, %763 : vector<2x16xf32>
    %792 = arith.mulf %776, %784 : vector<2x16xf32>
    %793 = arith.addf %791, %792 : vector<2x16xf32>
    %794 = math.tanh %793 : vector<2x16xf32>
    %795 = arith.mulf %790, %794 : vector<2x16xf32>
    %796 = arith.addf %766, %795 : vector<2x16xf32>
    %797 = tpu.concatenate %494, %795 in 1 : vector<2x32xf32>, vector<2x16xf32> -> vector<2x48xf32>
    %cst_136 = arith.constant dense<0.000000e+00> : vector<2x64xf32>
    %798 = tpu.matmul %797, %22, %cst_136 {dimension_numbers = #tpu.dot_dimension_numbers<[1], [0], [0], [1], [0, 0, 1, 1], [], []>} : vector<2x48xf32>, vector<48x64xf32>, vector<2x64xf32> -> vector<2x64xf32>
    %799 = vector.broadcast %23 : vector<1x64xf32> to vector<2x64xf32>
    %800 = arith.addf %798, %799 : vector<2x64xf32>
    %801 = vector.extract_strided_slice %800 {offsets = [0, 0], sizes = [2, 16], strides = [1, 1]} : vector<2x64xf32> to vector<2x16xf32>
    %802 = arith.negf %801 : vector<2x16xf32>
    %803 = math.exp %802 : vector<2x16xf32>
    %cst_137 = arith.constant 1.000000e+00 : f32
    %804 = vector.broadcast %cst_137 : f32 to vector<2x16xf32>
    %805 = arith.addf %804, %803 : vector<2x16xf32>
    %806 = arith.divf %804, %805 : vector<2x16xf32>
    %807 = vector.extract_strided_slice %800 {offsets = [0, 16], sizes = [2, 16], strides = [1, 1]} : vector<2x64xf32> to vector<2x16xf32>
    %808 = arith.negf %807 : vector<2x16xf32>
    %809 = math.exp %808 : vector<2x16xf32>
    %cst_138 = arith.constant 1.000000e+00 : f32
    %810 = vector.broadcast %cst_138 : f32 to vector<2x16xf32>
    %811 = arith.addf %810, %809 : vector<2x16xf32>
    %812 = arith.divf %810, %811 : vector<2x16xf32>
    %813 = vector.extract_strided_slice %800 {offsets = [0, 32], sizes = [2, 16], strides = [1, 1]} : vector<2x64xf32> to vector<2x16xf32>
    %814 = math.tanh %813 : vector<2x16xf32>
    %815 = vector.extract_strided_slice %800 {offsets = [0, 48], sizes = [2, 16], strides = [1, 1]} : vector<2x64xf32> to vector<2x16xf32>
    %816 = arith.negf %815 : vector<2x16xf32>
    %817 = math.exp %816 : vector<2x16xf32>
    %cst_139 = arith.constant 1.000000e+00 : f32
    %818 = vector.broadcast %cst_139 : f32 to vector<2x16xf32>
    %819 = arith.addf %818, %817 : vector<2x16xf32>
    %820 = arith.divf %818, %819 : vector<2x16xf32>
    %821 = arith.mulf %812, %793 : vector<2x16xf32>
    %822 = arith.mulf %806, %814 : vector<2x16xf32>
    %823 = arith.addf %821, %822 : vector<2x16xf32>
    %824 = math.tanh %823 : vector<2x16xf32>
    %825 = arith.mulf %820, %824 : vector<2x16xf32>
    %826 = arith.addf %796, %825 : vector<2x16xf32>
    %827 = tpu.concatenate %493, %825 in 1 : vector<2x32xf32>, vector<2x16xf32> -> vector<2x48xf32>
    %cst_140 = arith.constant dense<0.000000e+00> : vector<2x64xf32>
    %828 = tpu.matmul %827, %22, %cst_140 {dimension_numbers = #tpu.dot_dimension_numbers<[1], [0], [0], [1], [0, 0, 1, 1], [], []>} : vector<2x48xf32>, vector<48x64xf32>, vector<2x64xf32> -> vector<2x64xf32>
    %829 = vector.broadcast %23 : vector<1x64xf32> to vector<2x64xf32>
    %830 = arith.addf %828, %829 : vector<2x64xf32>
    %831 = vector.extract_strided_slice %830 {offsets = [0, 0], sizes = [2, 16], strides = [1, 1]} : vector<2x64xf32> to vector<2x16xf32>
    %832 = arith.negf %831 : vector<2x16xf32>
    %833 = math.exp %832 : vector<2x16xf32>
    %cst_141 = arith.constant 1.000000e+00 : f32
    %834 = vector.broadcast %cst_141 : f32 to vector<2x16xf32>
    %835 = arith.addf %834, %833 : vector<2x16xf32>
    %836 = arith.divf %834, %835 : vector<2x16xf32>
    %837 = vector.extract_strided_slice %830 {offsets = [0, 16], sizes = [2, 16], strides = [1, 1]} : vector<2x64xf32> to vector<2x16xf32>
    %838 = arith.negf %837 : vector<2x16xf32>
    %839 = math.exp %838 : vector<2x16xf32>
    %cst_142 = arith.constant 1.000000e+00 : f32
    %840 = vector.broadcast %cst_142 : f32 to vector<2x16xf32>
    %841 = arith.addf %840, %839 : vector<2x16xf32>
    %842 = arith.divf %840, %841 : vector<2x16xf32>
    %843 = vector.extract_strided_slice %830 {offsets = [0, 32], sizes = [2, 16], strides = [1, 1]} : vector<2x64xf32> to vector<2x16xf32>
    %844 = math.tanh %843 : vector<2x16xf32>
    %845 = vector.extract_strided_slice %830 {offsets = [0, 48], sizes = [2, 16], strides = [1, 1]} : vector<2x64xf32> to vector<2x16xf32>
    %846 = arith.negf %845 : vector<2x16xf32>
    %847 = math.exp %846 : vector<2x16xf32>
    %cst_143 = arith.constant 1.000000e+00 : f32
    %848 = vector.broadcast %cst_143 : f32 to vector<2x16xf32>
    %849 = arith.addf %848, %847 : vector<2x16xf32>
    %850 = arith.divf %848, %849 : vector<2x16xf32>
    %851 = arith.mulf %842, %823 : vector<2x16xf32>
    %852 = arith.mulf %836, %844 : vector<2x16xf32>
    %853 = arith.addf %851, %852 : vector<2x16xf32>
    %854 = math.tanh %853 : vector<2x16xf32>
    %855 = arith.mulf %850, %854 : vector<2x16xf32>
    %856 = arith.addf %826, %855 : vector<2x16xf32>
    %857 = tpu.concatenate %492, %855 in 1 : vector<2x32xf32>, vector<2x16xf32> -> vector<2x48xf32>
    %cst_144 = arith.constant dense<0.000000e+00> : vector<2x64xf32>
    %858 = tpu.matmul %857, %22, %cst_144 {dimension_numbers = #tpu.dot_dimension_numbers<[1], [0], [0], [1], [0, 0, 1, 1], [], []>} : vector<2x48xf32>, vector<48x64xf32>, vector<2x64xf32> -> vector<2x64xf32>
    %859 = vector.broadcast %23 : vector<1x64xf32> to vector<2x64xf32>
    %860 = arith.addf %858, %859 : vector<2x64xf32>
    %861 = vector.extract_strided_slice %860 {offsets = [0, 0], sizes = [2, 16], strides = [1, 1]} : vector<2x64xf32> to vector<2x16xf32>
    %862 = arith.negf %861 : vector<2x16xf32>
    %863 = math.exp %862 : vector<2x16xf32>
    %cst_145 = arith.constant 1.000000e+00 : f32
    %864 = vector.broadcast %cst_145 : f32 to vector<2x16xf32>
    %865 = arith.addf %864, %863 : vector<2x16xf32>
    %866 = arith.divf %864, %865 : vector<2x16xf32>
    %867 = vector.extract_strided_slice %860 {offsets = [0, 16], sizes = [2, 16], strides = [1, 1]} : vector<2x64xf32> to vector<2x16xf32>
    %868 = arith.negf %867 : vector<2x16xf32>
    %869 = math.exp %868 : vector<2x16xf32>
    %cst_146 = arith.constant 1.000000e+00 : f32
    %870 = vector.broadcast %cst_146 : f32 to vector<2x16xf32>
    %871 = arith.addf %870, %869 : vector<2x16xf32>
    %872 = arith.divf %870, %871 : vector<2x16xf32>
    %873 = vector.extract_strided_slice %860 {offsets = [0, 32], sizes = [2, 16], strides = [1, 1]} : vector<2x64xf32> to vector<2x16xf32>
    %874 = math.tanh %873 : vector<2x16xf32>
    %875 = vector.extract_strided_slice %860 {offsets = [0, 48], sizes = [2, 16], strides = [1, 1]} : vector<2x64xf32> to vector<2x16xf32>
    %876 = arith.negf %875 : vector<2x16xf32>
    %877 = math.exp %876 : vector<2x16xf32>
    %cst_147 = arith.constant 1.000000e+00 : f32
    %878 = vector.broadcast %cst_147 : f32 to vector<2x16xf32>
    %879 = arith.addf %878, %877 : vector<2x16xf32>
    %880 = arith.divf %878, %879 : vector<2x16xf32>
    %881 = arith.mulf %872, %853 : vector<2x16xf32>
    %882 = arith.mulf %866, %874 : vector<2x16xf32>
    %883 = arith.addf %881, %882 : vector<2x16xf32>
    %884 = math.tanh %883 : vector<2x16xf32>
    %885 = arith.mulf %880, %884 : vector<2x16xf32>
    %886 = arith.addf %856, %885 : vector<2x16xf32>
    %887 = tpu.concatenate %491, %885 in 1 : vector<2x32xf32>, vector<2x16xf32> -> vector<2x48xf32>
    %cst_148 = arith.constant dense<0.000000e+00> : vector<2x64xf32>
    %888 = tpu.matmul %887, %22, %cst_148 {dimension_numbers = #tpu.dot_dimension_numbers<[1], [0], [0], [1], [0, 0, 1, 1], [], []>} : vector<2x48xf32>, vector<48x64xf32>, vector<2x64xf32> -> vector<2x64xf32>
    %889 = vector.broadcast %23 : vector<1x64xf32> to vector<2x64xf32>
    %890 = arith.addf %888, %889 : vector<2x64xf32>
    %891 = vector.extract_strided_slice %890 {offsets = [0, 0], sizes = [2, 16], strides = [1, 1]} : vector<2x64xf32> to vector<2x16xf32>
    %892 = arith.negf %891 : vector<2x16xf32>
    %893 = math.exp %892 : vector<2x16xf32>
    %cst_149 = arith.constant 1.000000e+00 : f32
    %894 = vector.broadcast %cst_149 : f32 to vector<2x16xf32>
    %895 = arith.addf %894, %893 : vector<2x16xf32>
    %896 = arith.divf %894, %895 : vector<2x16xf32>
    %897 = vector.extract_strided_slice %890 {offsets = [0, 16], sizes = [2, 16], strides = [1, 1]} : vector<2x64xf32> to vector<2x16xf32>
    %898 = arith.negf %897 : vector<2x16xf32>
    %899 = math.exp %898 : vector<2x16xf32>
    %cst_150 = arith.constant 1.000000e+00 : f32
    %900 = vector.broadcast %cst_150 : f32 to vector<2x16xf32>
    %901 = arith.addf %900, %899 : vector<2x16xf32>
    %902 = arith.divf %900, %901 : vector<2x16xf32>
    %903 = vector.extract_strided_slice %890 {offsets = [0, 32], sizes = [2, 16], strides = [1, 1]} : vector<2x64xf32> to vector<2x16xf32>
    %904 = math.tanh %903 : vector<2x16xf32>
    %905 = vector.extract_strided_slice %890 {offsets = [0, 48], sizes = [2, 16], strides = [1, 1]} : vector<2x64xf32> to vector<2x16xf32>
    %906 = arith.negf %905 : vector<2x16xf32>
    %907 = math.exp %906 : vector<2x16xf32>
    %cst_151 = arith.constant 1.000000e+00 : f32
    %908 = vector.broadcast %cst_151 : f32 to vector<2x16xf32>
    %909 = arith.addf %908, %907 : vector<2x16xf32>
    %910 = arith.divf %908, %909 : vector<2x16xf32>
    %911 = arith.mulf %902, %883 : vector<2x16xf32>
    %912 = arith.mulf %896, %904 : vector<2x16xf32>
    %913 = arith.addf %911, %912 : vector<2x16xf32>
    %914 = math.tanh %913 : vector<2x16xf32>
    %915 = arith.mulf %910, %914 : vector<2x16xf32>
    %916 = arith.addf %886, %915 : vector<2x16xf32>
    %917 = tpu.concatenate %490, %915 in 1 : vector<2x32xf32>, vector<2x16xf32> -> vector<2x48xf32>
    %cst_152 = arith.constant dense<0.000000e+00> : vector<2x64xf32>
    %918 = tpu.matmul %917, %22, %cst_152 {dimension_numbers = #tpu.dot_dimension_numbers<[1], [0], [0], [1], [0, 0, 1, 1], [], []>} : vector<2x48xf32>, vector<48x64xf32>, vector<2x64xf32> -> vector<2x64xf32>
    %919 = vector.broadcast %23 : vector<1x64xf32> to vector<2x64xf32>
    %920 = arith.addf %918, %919 : vector<2x64xf32>
    %921 = vector.extract_strided_slice %920 {offsets = [0, 0], sizes = [2, 16], strides = [1, 1]} : vector<2x64xf32> to vector<2x16xf32>
    %922 = arith.negf %921 : vector<2x16xf32>
    %923 = math.exp %922 : vector<2x16xf32>
    %cst_153 = arith.constant 1.000000e+00 : f32
    %924 = vector.broadcast %cst_153 : f32 to vector<2x16xf32>
    %925 = arith.addf %924, %923 : vector<2x16xf32>
    %926 = arith.divf %924, %925 : vector<2x16xf32>
    %927 = vector.extract_strided_slice %920 {offsets = [0, 16], sizes = [2, 16], strides = [1, 1]} : vector<2x64xf32> to vector<2x16xf32>
    %928 = arith.negf %927 : vector<2x16xf32>
    %929 = math.exp %928 : vector<2x16xf32>
    %cst_154 = arith.constant 1.000000e+00 : f32
    %930 = vector.broadcast %cst_154 : f32 to vector<2x16xf32>
    %931 = arith.addf %930, %929 : vector<2x16xf32>
    %932 = arith.divf %930, %931 : vector<2x16xf32>
    %933 = vector.extract_strided_slice %920 {offsets = [0, 32], sizes = [2, 16], strides = [1, 1]} : vector<2x64xf32> to vector<2x16xf32>
    %934 = math.tanh %933 : vector<2x16xf32>
    %935 = vector.extract_strided_slice %920 {offsets = [0, 48], sizes = [2, 16], strides = [1, 1]} : vector<2x64xf32> to vector<2x16xf32>
    %936 = arith.negf %935 : vector<2x16xf32>
    %937 = math.exp %936 : vector<2x16xf32>
    %cst_155 = arith.constant 1.000000e+00 : f32
    %938 = vector.broadcast %cst_155 : f32 to vector<2x16xf32>
    %939 = arith.addf %938, %937 : vector<2x16xf32>
    %940 = arith.divf %938, %939 : vector<2x16xf32>
    %941 = arith.mulf %932, %913 : vector<2x16xf32>
    %942 = arith.mulf %926, %934 : vector<2x16xf32>
    %943 = arith.addf %941, %942 : vector<2x16xf32>
    %944 = math.tanh %943 : vector<2x16xf32>
    %945 = arith.mulf %940, %944 : vector<2x16xf32>
    %946 = arith.addf %916, %945 : vector<2x16xf32>
    %947 = tpu.concatenate %489, %945 in 1 : vector<2x32xf32>, vector<2x16xf32> -> vector<2x48xf32>
    %cst_156 = arith.constant dense<0.000000e+00> : vector<2x64xf32>
    %948 = tpu.matmul %947, %22, %cst_156 {dimension_numbers = #tpu.dot_dimension_numbers<[1], [0], [0], [1], [0, 0, 1, 1], [], []>} : vector<2x48xf32>, vector<48x64xf32>, vector<2x64xf32> -> vector<2x64xf32>
    %949 = vector.broadcast %23 : vector<1x64xf32> to vector<2x64xf32>
    %950 = arith.addf %948, %949 : vector<2x64xf32>
    %951 = vector.extract_strided_slice %950 {offsets = [0, 0], sizes = [2, 16], strides = [1, 1]} : vector<2x64xf32> to vector<2x16xf32>
    %952 = arith.negf %951 : vector<2x16xf32>
    %953 = math.exp %952 : vector<2x16xf32>
    %cst_157 = arith.constant 1.000000e+00 : f32
    %954 = vector.broadcast %cst_157 : f32 to vector<2x16xf32>
    %955 = arith.addf %954, %953 : vector<2x16xf32>
    %956 = arith.divf %954, %955 : vector<2x16xf32>
    %957 = vector.extract_strided_slice %950 {offsets = [0, 16], sizes = [2, 16], strides = [1, 1]} : vector<2x64xf32> to vector<2x16xf32>
    %958 = arith.negf %957 : vector<2x16xf32>
    %959 = math.exp %958 : vector<2x16xf32>
    %cst_158 = arith.constant 1.000000e+00 : f32
    %960 = vector.broadcast %cst_158 : f32 to vector<2x16xf32>
    %961 = arith.addf %960, %959 : vector<2x16xf32>
    %962 = arith.divf %960, %961 : vector<2x16xf32>
    %963 = vector.extract_strided_slice %950 {offsets = [0, 32], sizes = [2, 16], strides = [1, 1]} : vector<2x64xf32> to vector<2x16xf32>
    %964 = math.tanh %963 : vector<2x16xf32>
    %965 = vector.extract_strided_slice %950 {offsets = [0, 48], sizes = [2, 16], strides = [1, 1]} : vector<2x64xf32> to vector<2x16xf32>
    %966 = arith.negf %965 : vector<2x16xf32>
    %967 = math.exp %966 : vector<2x16xf32>
    %cst_159 = arith.constant 1.000000e+00 : f32
    %968 = vector.broadcast %cst_159 : f32 to vector<2x16xf32>
    %969 = arith.addf %968, %967 : vector<2x16xf32>
    %970 = arith.divf %968, %969 : vector<2x16xf32>
    %971 = arith.mulf %962, %943 : vector<2x16xf32>
    %972 = arith.mulf %956, %964 : vector<2x16xf32>
    %973 = arith.addf %971, %972 : vector<2x16xf32>
    %974 = math.tanh %973 : vector<2x16xf32>
    %975 = arith.mulf %970, %974 : vector<2x16xf32>
    %976 = arith.addf %946, %975 : vector<2x16xf32>
    %977 = arith.addf %489, %490 : vector<2x32xf32>
    %978 = arith.addf %977, %491 : vector<2x32xf32>
    %979 = arith.addf %978, %492 : vector<2x32xf32>
    %980 = arith.addf %979, %493 : vector<2x32xf32>
    %981 = arith.addf %980, %494 : vector<2x32xf32>
    %982 = arith.addf %981, %495 : vector<2x32xf32>
    %983 = arith.addf %982, %496 : vector<2x32xf32>
    %984 = tpu.concatenate %736, %976 in 1 : vector<2x16xf32>, vector<2x16xf32> -> vector<2x32xf32>
    %985 = arith.addf %983, %984 : vector<2x32xf32>
    %cst_160 = arith.constant 1.250000e-01 : f32
    %986 = vector.broadcast %cst_160 : f32 to vector<2x32xf32>
    %987 = arith.mulf %985, %986 : vector<2x32xf32>
    %c0_161 = arith.constant 0 : index
    %c0_162 = arith.constant 0 : index
    %988 = vector.load %arg9[%c0_161, %c0_162] : memref<2x32xf32, #tpu.memory_space<vmem>>, vector<2x32xf32>
    tpu.vector_store %arg9[%c0_161, %c0_162], %987 {strides = array<i32>} : memref<2x32xf32, #tpu.memory_space<vmem>>, vector<2x32xf32>,
    return
  }
}

</mosaic_0001>

<bundles_post_ra>
// kernel: _rose_forward.1
= control target key start
LH: loop header
LB: loop body
LE: loop exit
PB: predicated region body
PF: predicated region fallthrough
CT: control target
= control target key end

     0   :  { %14 = vsyncpa [#allocation3], 0  ;;  %s5538_s0 = inlined_call_operand.vmem [shape: f32[8,2,8], index: 0, kind: input, shape index: {}]   ;;  %s5539_s1 = inlined_call_operand.hbm [shape: f32[24,64], index: 1, kind: input, shape index: {}]   ;;  %s5540_s2 = inlined_call_operand.vmem [shape: f32[1,64], index: 2, kind: input, shape index: {}]   ;;  %s5541_s3 = inlined_call_operand.hbm [shape: f32[24,64], index: 3, kind: input, shape index: {}]   ;;  %s5542_s4 = inlined_call_operand.vmem [shape: f32[1,64], index: 4, kind: input, shape index: {}]   ;;  %s5543_s5 = inlined_call_operand.vmem [shape: f32[48,64], index: 5, kind: input, shape index: {}]   ;;  %s5544_s6 = inlined_call_operand.vmem [shape: f32[1,64], index: 6, kind: input, shape index: {}]   ;;  %s5545_s7 = inlined_call_operand.hbm [shape: f32[48,64], index: 7, kind: input, shape index: {}]   ;;  %s5546_s8 = inlined_call_operand.vmem [shape: f32[1,64], index: 8, kind: input, shape index: {}]   ;;  %s5547_s9 = inlined_call_operand.hbm [shape: f32[2,32], index: 9, kind: output, shape index: {}]  }
   0x1   :  { %15 = vsyncpa [#allocation6], 0 }
   0x2   :  { %16 = vsyncpa [#allocation4], 0  ;;  %s4692_s30 = smov [#allocation5]   ;;  %s4693_s11 = smov [#allocation2]  }
   0x3   :  { %s38_s10 = sshll.u32 %s4692_s30, 4  ;;  %s24_s12 = sshll.u32 %s4693_s11, 4  ;;  %s39_s10 = int_to_ptr.vmem [resolvable:$true] %s38_s10  ;;  %s4757_s12 = int_to_ptr.vmem [resolvable:$true] %s24_s12 }
   0x4   :  { %s4598_s15 = scalar_lea.hbm %s5541_s3, 384 }
   0x5   :  { %p4599_p0 = scmp.ne.s32.totalorder %s5541_s3, %s4598_s15  ;;  %p4602_p1 = scmp.lt.u32.totalorder %s4598_s15, %s5541_s3 }
   0x7   :  { %p4604_p2 = pnand %p4602_p1, %p4599_p0 }
   0x9   :  { %4607 = shalt.err (!%p4604_p2)
}
   0xa   :  { %s4608_s20 = scalar_lea.vmem %s39_s10, 384  ;;  %p4613_p4 = scmp.lt.s32.totalorder %s39_s10, %s39_s10 }
   0xb   :  { %p4609_p3 = scmp.ne.s32.totalorder %s39_s10, %s4608_s20  ;;  %p4614_p5 = scmp.lt.s32.totalorder %s4608_s20, %s4608_s20 }
   0xd   :  { %p4615_p6 = por %p4614_p5, %p4613_p4 }
   0xf   :  { %p4616_p7 = pnand %p4615_p6, %p4609_p3 }
  0x11   :  { %4619 = shalt.err (!%p4616_p7)
}
  0x12   :  { %s4694_s21 = smov 128   ;;  %s4695_s22 = smov 8  }
  0x13   :  { %44 = dma.hbm_to_vmem [thread:$0]  %s5541_s3, 384, %s39_s10, [#allocation6], %s4694_s21, %s4694_s21, %s4695_s22  }
  0x14   :  { %s4620_s27 = scalar_lea.hbm %s5539_s1, 384 }
  0x15   :  { %p4621_p8 = scmp.ne.s32.totalorder %s5539_s1, %s4620_s27  ;;  %p4624_p9 = scmp.lt.u32.totalorder %s4620_s27, %s5539_s1 }
  0x17   :  { %p4626_p10 = pnand %p4624_p9, %p4621_p8 }
  0x19   :  { %4629 = shalt.err (!%p4626_p10)
}
  0x1a   :  { %s4630_s13 = scalar_lea.vmem %s4757_s12, 384  ;;  %p4635_p12 = scmp.lt.s32.totalorder %s4757_s12, %s4757_s12 }
  0x1b   :  { %p4631_p11 = scmp.ne.s32.totalorder %s4757_s12, %s4630_s13  ;;  %p4636_p13 = scmp.lt.s32.totalorder %s4630_s13, %s4630_s13 }
  0x1d   :  { %p4637_p0 = por %p4636_p13, %p4635_p12 }
  0x1f   :  { %p4638_p1 = pnand %p4637_p0, %p4631_p11 }
  0x21   :  { %4641 = shalt.err (!%p4638_p1)
}
  0x22   :  { %30 = dma.hbm_to_vmem [thread:$0]  %s5539_s1, 384, %s4757_s12, [#allocation3], %s4694_s21, %s4694_s21, %s4695_s22  }
  0x23   :  { %s4696_s14 = smov [#allocation7]   ;;  %s4642_s18 = scalar_lea.hbm %s5545_s7, 768 }
  0x24   :  { %s56_s15 = sshll.u32 %s4696_s14, 4  ;;  %p4643_p2 = scmp.ne.s32.totalorder %s5545_s7, %s4642_s18  ;;  %s57_s15 = int_to_ptr.vmem [resolvable:$true] %s56_s15 }
  0x25   :  { %p4646_p3 = scmp.lt.u32.totalorder %s4642_s18, %s5545_s7 }
  0x27   :  { %p4648_p4 = pnand %p4646_p3, %p4643_p2 }
  0x29   :  { %4651 = shalt.err (!%p4648_p4)
}
  0x2a   :  { %s4652_s25 = scalar_lea.vmem %s57_s15, 768  ;;  %p4657_p6 = scmp.lt.s32.totalorder %s57_s15, %s57_s15 }
  0x2b   :  { %p4653_p5 = scmp.ne.s32.totalorder %s57_s15, %s4652_s25  ;;  %p4658_p7 = scmp.lt.s32.totalorder %s4652_s25, %s4652_s25 }
  0x2d   :  { %p4659_p8 = por %p4658_p7, %p4657_p6 }
  0x2f   :  { %p4660_p9 = pnand %p4659_p8, %p4653_p5 }
  0x31   :  { %4663 = shalt.err (!%p4660_p9)
}
  0x32   :  { %62 = dma.hbm_to_vmem [thread:$0]  %s5545_s7, 768, %s57_s15, [#allocation6], %s4694_s21, %s4694_s21, %s4695_s22  }
  0x33   :  { %4686 = dma.done.wait [#allocation3], 384  }
  0x34   :  { %4687 = vsyncadd [#allocation3], 4294966912 }
  0x35   :  { %4688 = dma.done.wait [#allocation6], 1152  }
  0x36   :  { %4689 = vsyncadd [#allocation6], 4294966144  ;;  %v4697_v0 = vmov 0.0|0.0   ;;  %vm4698_vm0 = vmmov 0   ;;  %v4699_v1 = vmov 0.0   ;;  %v89_v2 = vld [vmem:[#allocation2] sm:$0xff] }
  0x37   :  { %4133 = vmatprep.subr.bf16.mxu0 %v4697_v0  ;;  %3755 = vmatprep.mubr.msk.f32.mxu0 %vm4698_vm0, %v4699_v1  ;;  %v90_v3 = vld [vmem:[#allocation2 + $0x8] sm:$0xff]  ;;  %v4820_v5 = vld [vmem:[%s5538_s0] sm:$0x3]  ;;  %vm111_vm1 = vcmask 64512   ;;  %v4825_v6 = vld [vmem:[#allocation2 + $0x10] sm:$0xff]  ;;  %vm119_vm2 = vcmask 195584  }
  0x38   :  { %4136 = vmatprep.subr.bf16.mxu1 %v4697_v0  ;;  %3764 = vmatprep.mubr.msk.f32.mxu1 %vm4698_vm0, %v4699_v1  ;;  %v4815_v4 = vpack.c.bf16 %v90_v3, %v89_v2  ;;  %v112_v7 = vsel %vm111_vm1, %v4820_v5, 0.0  ;;  %v4844_v8 = vld [vmem:[%s5540_s2] ss:$0 sm:$0xff]  ;;  %s4700_s27 = smov 96   ;;  %s4701_s28 = smov 16   ;;  %vm1756_vm3 = vcmask 130048  }
  0x39   :  { %s4702_s29 = smov 32   ;;  %s4703_s30 = smov 88   ;;  %v4857_v25 = vld [vmem:[%s5538_s0 + $0x2] sm:$0x3]  ;;  %v4879_v44 = vld [vmem:[%s5538_s0 + $0x4] sm:$0x3] }
  0x3a   :  { %4135 = vmatpush3.bf16.msra.mxu0 %v4815_v4  ;;  %4138 = vmatpush3.bf16.msra.mxu1 %v4815_v4  ;;  %v4901_v63 = vld [vmem:[%s5538_s0 + $0x6] sm:$0x3]  ;;  %vm1808_vm4 = vcmask 261120   ;;  %vm1816_vm5 = vcmask 392192   ;;  %s4705_s17 = smov 112   ;;  %vm3480_vm6 = vcmask 254976  }
  0x3b   :  { %3753 = vmatprep.subr.mxu0 %v4699_v1  ;;  %3762 = vmatprep.subr.mxu1 %v4699_v1 }
  0x3e   :  { %3754 = vmatpush3.msra.mxu0 %v4825_v6  ;;  %3763 = vmatpush3.msra.mxu1 %v4825_v6 }
  0x3f   :  { %3756 = vmatmul.mubr.msk.f32.vlgmr.msra.gmra.mrb[0].mxu0 %vm119_vm2, %v112_v7  ;;  %4139 = vmatprep.subr.bf16.mxu0 %v4697_v0 }
  0x40   :  { %4141 = vmatpush3.bf16.msra.mxu0 %v4815_v4  ;;  %3773 = vmatprep.mubr.msk.f32.mxu0 %vm4698_vm0, %v4699_v1 }
  0x41   :  { %3771 = vmatprep.subr.mxu0 %v4699_v1  ;;  %4142 = vmatprep.subr.bf16.mxu1 %v4697_v0 }
  0x44   :  { %3772 = vmatpush3.msra.mxu0 %v4825_v6 }
  0x45   :  { %4145 = vmatprep.subr.bf16.mxu0 %v4697_v0 }
 0x112   :  { %v189_v9 = vpop.f32.mrb[0].mxu0 }
 0x113   :  { %v190_v10 = vadd.f32 %v4844_v8, %v189_v9  ;;  %v3757_v11 = vpop.f32.mrb[1].mxu0 }
 0x115   :  { %4340 = vtanh.f32 %v190_v10  ;;  %v3507_v13 = vmul.f32 -1.442695, %v190_v10 }
 0x117   :  { %4342 = vpow2.f32 %v3507_v13 }
 0x11f   :  { %v4341_v12 = vpop.eup %4340 }
 0x120   :  { %202 = vrot.lane.b32.xlu0 %v4341_v12, %s4700_s27 }
 0x121   :  { %v4343_v14 = vpop.eup %4342 }
 0x122   :  { %v196_v15 = vadd.f32 1.0, %v4343_v14 }
 0x124   :  { %4344 = vrcp.f32 %v196_v15 }
 0x12e   :  { %v4345_v16 = vpop.eup %4344 }
 0x12f   :  { %v200_v19 = vmul.f32 0.0, %v4345_v16 }
 0x192   :  { %v203_v17 = vpop.permute.xlu0 %202 }
 0x193   :  { %v205_v18 = vmul.f32 %v4345_v16, %v203_v17 }
 0x195   :  { %207 = vrot.lane.b32.xlu0 %v205_v18, %s4701_s28 }
 0x207   :  { %v208_v20 = vpop.permute.xlu0 %207 }
 0x208   :  { %v210_v21 = vadd.f32 %v208_v20, %v200_v19 }
 0x20a   :  { %4346 = vtanh.f32 %v210_v21 }
 0x214   :  { %v4347_v22 = vpop.eup %4346 }
 0x215   :  { %213 = vrot.lane.b32.xlu1 %v4347_v22, %s4702_s29 }
 0x287   :  { %v214_v23 = vpop.permute.xlu1 %213 }
 0x288   :  { %v4850_v24 = vmul.f32 %v4345_v16, %v214_v23 }
 0x28a   :  { %218 = vrot.lane.b32.xlu1 %v4850_v24, %s4703_s30 }
 0x2fc   :  { %v219_v26 = vpop.permute.xlu1 %218 }
 0x2fd   :  { %v221_v27 = vsel %vm111_vm1, %v4857_v25, %v219_v26  ;;  %v4923_v26 = vld [vmem:[%s5538_s0 + $0x8] sm:$0x3] }
 0x2fe   :  { %3765 = vmatmul.mubr.msk.f32.vlgmr.msra.gmra.mrb[0].mxu1 %vm119_vm2, %v221_v27 }
 0x2ff   :  { %4144 = vmatpush3.bf16.msra.mxu1 %v4815_v4  ;;  %3782 = vmatprep.mubr.msk.f32.mxu1 %vm4698_vm0, %v4699_v1 }
 0x300   :  { %3780 = vmatprep.subr.mxu1 %v4699_v1 }
 0x303   :  { %3781 = vmatpush3.msra.mxu1 %v4825_v6 }
 0x304   :  { %4148 = vmatprep.subr.bf16.mxu1 %v4697_v0 }
 0x3d1   :  { %v291_v28 = vpop.f32.mrb[0].mxu1 }
 0x3d2   :  { %v292_v29 = vadd.f32 %v4844_v8, %v291_v28  ;;  %v3766_v30 = vpop.f32.mrb[1].mxu1 }
 0x3d4   :  { %4348 = vtanh.f32 %v292_v29  ;;  %v3509_v32 = vmul.f32 -1.442695, %v292_v29 }
 0x3d6   :  { %4350 = vpow2.f32 %v3509_v32 }
 0x3de   :  { %v4349_v31 = vpop.eup %4348 }
 0x3df   :  { %304 = vrot.lane.b32.xlu0 %v4349_v31, %s4700_s27 }
 0x3e0   :  { %v4351_v33 = vpop.eup %4350 }
 0x3e1   :  { %v298_v34 = vadd.f32 1.0, %v4351_v33 }
 0x3e3   :  { %4352 = vrcp.f32 %v298_v34 }
 0x3ed   :  { %v4353_v35 = vpop.eup %4352 }
 0x3ee   :  { %v302_v38 = vmul.f32 %v4353_v35, %v210_v21 }
 0x451   :  { %v305_v36 = vpop.permute.xlu0 %304 }
 0x452   :  { %v307_v37 = vmul.f32 %v4353_v35, %v305_v36 }
 0x454   :  { %309 = vrot.lane.b32.xlu1 %v307_v37, %s4701_s28 }
 0x4c6   :  { %v310_v39 = vpop.permute.xlu1 %309 }
 0x4c7   :  { %v312_v40 = vadd.f32 %v310_v39, %v302_v38 }
 0x4c9   :  { %4354 = vtanh.f32 %v312_v40 }
 0x4d3   :  { %v4355_v41 = vpop.eup %4354 }
 0x4d4   :  { %315 = vrot.lane.b32.xlu0 %v4355_v41, %s4702_s29 }
 0x546   :  { %v316_v42 = vpop.permute.xlu0 %315 }
 0x547   :  { %v4872_v43 = vmul.f32 %v4353_v35, %v316_v42 }
 0x549   :  { %320 = vrot.lane.b32.xlu1 %v4872_v43, %s4703_s30 }
 0x5bb   :  { %v321_v45 = vpop.permute.xlu1 %320 }
 0x5bc   :  { %v323_v46 = vsel %vm111_vm1, %v4879_v44, %v321_v45 }
 0x5bd   :  { %3774 = vmatmul.mubr.msk.f32.vlgmr.msra.gmra.mrb[2].mxu0 %vm119_vm2, %v323_v46 }
 0x5be   :  { %4147 = vmatpush3.bf16.msra.mxu0 %v4815_v4  ;;  %3791 = vmatprep.mubr.msk.f32.mxu0 %vm4698_vm0, %v4699_v1 }
 0x5bf   :  { %3789 = vmatprep.subr.mxu0 %v4699_v1 }
 0x5c2   :  { %3790 = vmatpush3.msra.mxu0 %v4825_v6 }
 0x5c3   :  { %4151 = vmatprep.subr.bf16.mxu0 %v4697_v0 }
 0x690   :  { %v393_v47 = vpop.f32.mrb[2].mxu0 }
 0x691   :  { %v394_v48 = vadd.f32 %v4844_v8, %v393_v47  ;;  %v3775_v49 = vpop.f32.mrb[3].mxu0  ;;  %v4945_v47 = vld [vmem:[%s5538_s0 + $0xa] sm:$0x3] }
 0x693   :  { %4356 = vtanh.f32 %v394_v48  ;;  %v3511_v51 = vmul.f32 -1.442695, %v394_v48 }
 0x695   :  { %4358 = vpow2.f32 %v3511_v51 }
 0x69d   :  { %v4357_v50 = vpop.eup %4356 }
 0x69e   :  { %406 = vrot.lane.b32.xlu0 %v4357_v50, %s4700_s27 }
 0x69f   :  { %v4359_v52 = vpop.eup %4358 }
 0x6a0   :  { %v400_v53 = vadd.f32 1.0, %v4359_v52 }
 0x6a2   :  { %4360 = vrcp.f32 %v400_v53 }
 0x6ac   :  { %v4361_v54 = vpop.eup %4360 }
 0x6ad   :  { %v404_v57 = vmul.f32 %v4361_v54, %v312_v40 }
 0x710   :  { %v407_v55 = vpop.permute.xlu0 %406 }
 0x711   :  { %v409_v56 = vmul.f32 %v4361_v54, %v407_v55 }
 0x713   :  { %411 = vrot.lane.b32.xlu1 %v409_v56, %s4701_s28 }
 0x785   :  { %v412_v58 = vpop.permute.xlu1 %411 }
 0x786   :  { %v414_v59 = vadd.f32 %v412_v58, %v404_v57 }
 0x788   :  { %4362 = vtanh.f32 %v414_v59 }
 0x792   :  { %v4363_v60 = vpop.eup %4362 }
 0x793   :  { %417 = vrot.lane.b32.xlu0 %v4363_v60, %s4702_s29 }
 0x805   :  { %v418_v61 = vpop.permute.xlu0 %417 }
 0x806   :  { %v4894_v62 = vmul.f32 %v4361_v54, %v418_v61 }
 0x808   :  { %422 = vrot.lane.b32.xlu1 %v4894_v62, %s4703_s30 }
 0x87a   :  { %v423_v2 = vpop.permute.xlu1 %422 }
 0x87b   :  { %v425_v3 = vsel %vm111_vm1, %v4901_v63, %v423_v2 }
 0x87c   :  { %3783 = vmatmul.mubr.msk.f32.vlgmr.msra.gmra.mrb[2].mxu1 %vm119_vm2, %v425_v3 }
 0x87d   :  { %4150 = vmatpush3.bf16.msra.mxu1 %v4815_v4  ;;  %3800 = vmatprep.mubr.msk.f32.mxu1 %vm4698_vm0, %v4699_v1 }
 0x87e   :  { %3798 = vmatprep.subr.mxu1 %v4699_v1 }
 0x881   :  { %3799 = vmatpush3.msra.mxu1 %v4825_v6 }
 0x882   :  { %4154 = vmatprep.subr.bf16.mxu1 %v4697_v0 }
 0x94f   :  { %v495_v7 = vpop.f32.mrb[2].mxu1 }
 0x950   :  { %v496_v9 = vadd.f32 %v4844_v8, %v495_v7  ;;  %v3784_v10 = vpop.f32.mrb[3].mxu1  ;;  %v93_v7 = vld [vmem:[#allocation5] sm:$0xff] }
 0x951   :  { %v4967_v10 = vld [vmem:[%s5538_s0 + $0xc] sm:$0x3] }
 0x952   :  { %4364 = vtanh.f32 %v496_v9  ;;  %v3513_v12 = vmul.f32 -1.442695, %v496_v9  ;;  %v94_v9 = vld [vmem:[#allocation5 + $0x8] sm:$0xff] }
 0x954   :  { %4366 = vpow2.f32 %v3513_v12 }
 0x95c   :  { %v4365_v11 = vpop.eup %4364 }
 0x95d   :  { %508 = vrot.lane.b32.xlu0 %v4365_v11, %s4700_s27  ;;  %v4969_v11 = vpack.c.bf16 %v94_v9, %v93_v7 }
 0x95e   :  { %v4367_v13 = vpop.eup %4366 }
 0x95f   :  { %v502_v14 = vadd.f32 1.0, %v4367_v13 }
 0x961   :  { %4368 = vrcp.f32 %v502_v14  ;;  %v4977_v14 = vld [vmem:[%s5538_s0 + $0xe] sm:$0x3] }
 0x96b   :  { %v4369_v15 = vpop.eup %4368 }
 0x96c   :  { %v506_v18 = vmul.f32 %v4369_v15, %v414_v59 }
 0x9cf   :  { %v509_v16 = vpop.permute.xlu0 %508 }
 0x9d0   :  { %v511_v17 = vmul.f32 %v4369_v15, %v509_v16  ;;  %v931_v16 = vsel %vm111_vm1, %v4977_v14, 0.0 }
 0x9d2   :  { %513 = vrot.lane.b32.xlu1 %v511_v17, %s4701_s28 }
 0xa44   :  { %v514_v19 = vpop.permute.xlu1 %513 }
 0xa45   :  { %v516_v20 = vadd.f32 %v514_v19, %v506_v18 }
 0xa47   :  { %4370 = vtanh.f32 %v516_v20 }
 0xa51   :  { %v4371_v21 = vpop.eup %4370 }
 0xa52   :  { %519 = vrot.lane.b32.xlu0 %v4371_v21, %s4702_s29 }
 0xac4   :  { %v520_v22 = vpop.permute.xlu0 %519 }
 0xac5   :  { %v4916_v23 = vmul.f32 %v4369_v15, %v520_v22  ;;  %v4983_v15 = vld [vmem:[#allocation5 + $0x10] sm:$0xff] }
 0xac7   :  { %524 = vrot.lane.b32.xlu1 %v4916_v23, %s4703_s30 }
 0xb39   :  { %v525_v27 = vpop.permute.xlu1 %524 }
 0xb3a   :  { %v527_v28 = vsel %vm111_vm1, %v4923_v26, %v525_v27 }
 0xb3b   :  { %3792 = vmatmul.mubr.msk.f32.vlgmr.msra.gmra.mrb[4].mxu0 %vm119_vm2, %v527_v28 }
 0xb3c   :  { %4153 = vmatpush3.bf16.msra.mxu0 %v4815_v4  ;;  %3809 = vmatprep.mubr.msk.f32.mxu0 %vm4698_vm0, %v4699_v1 }
 0xb3d   :  { %3807 = vmatprep.subr.mxu0 %v4699_v1 }
 0xb40   :  { %3808 = vmatpush3.msra.mxu0 %v4825_v6 }
 0xb41   :  { %4157 = vmatprep.subr.bf16.mxu0 %v4697_v0 }
 0xc0e   :  { %v597_v29 = vpop.f32.mrb[4].mxu0 }
 0xc0f   :  { %v598_v30 = vadd.f32 %v4844_v8, %v597_v29  ;;  %v3793_v31 = vpop.f32.mrb[5].mxu0 }
 0xc11   :  { %4372 = vtanh.f32 %v598_v30  ;;  %v3515_v33 = vmul.f32 -1.442695, %v598_v30 }
 0xc13   :  { %4374 = vpow2.f32 %v3515_v33 }
 0xc1b   :  { %v4373_v32 = vpop.eup %4372 }
 0xc1c   :  { %610 = vrot.lane.b32.xlu0 %v4373_v32, %s4700_s27 }
 0xc1d   :  { %v4375_v34 = vpop.eup %4374 }
 0xc1e   :  { %v604_v35 = vadd.f32 1.0, %v4375_v34 }
 0xc20   :  { %4376 = vrcp.f32 %v604_v35 }
 0xc2a   :  { %v4377_v36 = vpop.eup %4376 }
 0xc2b   :  { %v608_v39 = vmul.f32 %v4377_v36, %v516_v20  ;;  %v5000_v20 = vld [vmem:[%s5542_s4] ss:$0 sm:$0xff]  ;;  %s4704_s4 = smov 80  }
 0xc8e   :  { %v611_v37 = vpop.permute.xlu0 %610 }
 0xc8f   :  { %v613_v38 = vmul.f32 %v4377_v36, %v611_v37 }
 0xc91   :  { %615 = vrot.lane.b32.xlu1 %v613_v38, %s4701_s28 }
 0xd03   :  { %v616_v40 = vpop.permute.xlu1 %615 }
 0xd04   :  { %v618_v41 = vadd.f32 %v616_v40, %v608_v39 }
 0xd06   :  { %4378 = vtanh.f32 %v618_v41 }
 0xd10   :  { %v4379_v42 = vpop.eup %4378 }
 0xd11   :  { %621 = vrot.lane.b32.xlu0 %v4379_v42, %s4702_s29 }
 0xd83   :  { %v622_v45 = vpop.permute.xlu0 %621 }
 0xd84   :  { %v4938_v46 = vmul.f32 %v4377_v36, %v622_v45 }
 0xd86   :  { %626 = vrot.lane.b32.xlu1 %v4938_v46, %s4703_s30 }
 0xdf8   :  { %v627_v48 = vpop.permute.xlu1 %626 }
 0xdf9   :  { %v629_v49 = vsel %vm111_vm1, %v4945_v47, %v627_v48 }
 0xdfa   :  { %3801 = vmatmul.mubr.msk.f32.vlgmr.msra.gmra.mrb[4].mxu1 %vm119_vm2, %v629_v49 }
 0xdfb   :  { %4156 = vmatpush3.bf16.msra.mxu1 %v4815_v4  ;;  %3818 = vmatprep.mubr.msk.f32.mxu1 %vm4698_vm0, %v4699_v1 }
 0xdfc   :  { %3816 = vmatprep.subr.mxu1 %v4699_v1 }
 0xdff   :  { %3817 = vmatpush3.msra.mxu1 %v4825_v6 }
 0xe00   :  { %4160 = vmatprep.subr.bf16.mxu1 %v4697_v0 }
 0xecd   :  { %v699_v50 = vpop.f32.mrb[4].mxu1 }
 0xece   :  { %v700_v51 = vadd.f32 %v4844_v8, %v699_v50  ;;  %v3802_v52 = vpop.f32.mrb[5].mxu1 }
 0xed0   :  { %4380 = vtanh.f32 %v700_v51  ;;  %v3517_v54 = vmul.f32 -1.442695, %v700_v51 }
 0xed2   :  { %4382 = vpow2.f32 %v3517_v54 }
 0xeda   :  { %v4381_v53 = vpop.eup %4380 }
 0xedb   :  { %712 = vrot.lane.b32.xlu0 %v4381_v53, %s4700_s27 }
 0xedc   :  { %v4383_v4 = vpop.eup %4382 }
 0xedd   :  { %v706_v55 = vadd.f32 1.0, %v4383_v4 }
 0xedf   :  { %4384 = vrcp.f32 %v706_v55 }
 0xee9   :  { %v4385_v56 = vpop.eup %4384 }
 0xeea   :  { %v710_v6 = vmul.f32 %v4385_v56, %v618_v41 }
 0xf4d   :  { %v713_v57 = vpop.permute.xlu0 %712 }
 0xf4e   :  { %v715_v58 = vmul.f32 %v4385_v56, %v713_v57 }
 0xf50   :  { %717 = vrot.lane.b32.xlu1 %v715_v58, %s4701_s28 }
 0xfc2   :  { %v718_v59 = vpop.permute.xlu1 %717 }
 0xfc3   :  { %v720_v60 = vadd.f32 %v718_v59, %v710_v6 }
 0xfc5   :  { %4386 = vtanh.f32 %v720_v60 }
 0xfcf   :  { %v4387_v61 = vpop.eup %4386 }
 0xfd0   :  { %723 = vrot.lane.b32.xlu0 %v4387_v61, %s4702_s29 }
0x1042   :  { %v724_v2 = vpop.permute.xlu0 %723 }
0x1043   :  { %v4960_v3 = vmul.f32 %v4385_v56, %v724_v2 }
0x1045   :  { %728 = vrot.lane.b32.xlu1 %v4960_v3, %s4703_s30 }
0x10b7   :  { %v729_v12 = vpop.permute.xlu1 %728 }
0x10b8   :  { %v731_v13 = vsel %vm111_vm1, %v4967_v10, %v729_v12 }
0x10b9   :  { %3810 = vmatmul.mubr.msk.f32.vlgmr.msra.gmra.mrb[6].mxu0 %vm119_vm2, %v731_v13 }
0x10ba   :  { %4159 = vmatpush3.bf16.msra.mxu0 %v4969_v11  ;;  %3827 = vmatprep.mubr.msk.f32.mxu0 %vm4698_vm0, %v4699_v1 }
0x10bb   :  { %3825 = vmatprep.subr.mxu0 %v4699_v1 }
0x10be   :  { %3826 = vmatpush3.msra.mxu0 %v4983_v15 }
0x10bf   :  { %3828 = vmatmul.mubr.msk.f32.vlgmr.msra.gmra.mrb[8].mxu0 %vm119_vm2, %v931_v16  ;;  %4163 = vmatprep.subr.bf16.mxu0 %v4697_v0 }
0x10c0   :  { %4165 = vmatpush3.bf16.msra.mxu0 %v4969_v11  ;;  %3845 = vmatprep.mubr.msk.f32.mxu0 %vm4698_vm0, %v4699_v1 }
0x10c1   :  { %3843 = vmatprep.subr.mxu0 %v4699_v1 }
0x10c4   :  { %3844 = vmatpush3.msra.mxu0 %v4983_v15 }
0x10c5   :  { %4169 = vmatprep.subr.bf16.mxu0 %v4697_v0 }
0x118c   :  { %v801_v17 = vpop.f32.mrb[6].mxu0 }
0x118d   :  { %v802_v18 = vadd.f32 %v4844_v8, %v801_v17  ;;  %v3811_v19 = vpop.f32.mrb[7].mxu0 }
0x118f   :  { %4388 = vtanh.f32 %v802_v18  ;;  %v3519_v30 = vmul.f32 -1.442695, %v802_v18 }
0x1192   :  { %v1007_v21 = vpop.f32.mrb[8].mxu0 }
0x1193   :  { %v1008_v22 = vadd.f32 %v5000_v20, %v1007_v21  ;;  %v3829_v27 = vpop.f32.mrb[9].mxu0 }
0x1195   :  { %4390 = vtanh.f32 %v1008_v22  ;;  %v3524_v8 = vmul.f32 -1.442695, %v1008_v22 }
0x1196   :  { %4392 = vpow2.f32 %v3519_v30 }
0x1197   :  { %4394 = vpow2.f32 %v3524_v8 }
0x1199   :  { %v4389_v28 = vpop.eup %4388 }
0x119a   :  { %814 = vrot.lane.b32.xlu0 %v4389_v28, %s4700_s27 }
0x119f   :  { %v4391_v29 = vpop.eup %4390 }
0x11a0   :  { %1020 = vrot.lane.b32.xlu1 %v4391_v29, %s4700_s27  ;;  %v4393_v31 = vpop.eup %4392 }
0x11a1   :  { %v808_v32 = vadd.f32 1.0, %v4393_v31  ;;  %v4395_v33 = vpop.eup %4394 }
0x11a2   :  { %v1014_v34 = vadd.f32 1.0, %v4395_v33 }
0x11a3   :  { %4396 = vrcp.f32 %v808_v32 }
0x11a4   :  { %4398 = vrcp.f32 %v1014_v34 }
0x11ad   :  { %v4397_v35 = vpop.eup %4396 }
0x11ae   :  { %v4399_v38 = vpop.eup %4398  ;;  %v812_v41 = vmul.f32 %v4397_v35, %v720_v60 }
0x11af   :  { %v1018_v48 = vmul.f32 0.0, %v4399_v38 }
0x120c   :  { %v815_v36 = vpop.permute.xlu0 %814 }
0x120d   :  { %v817_v37 = vmul.f32 %v4397_v35, %v815_v36 }
0x120f   :  { %819 = vrot.lane.b32.xlu0 %v817_v37, %s4701_s28 }
0x1212   :  { %v1021_v39 = vpop.permute.xlu1 %1020 }
0x1213   :  { %v1023_v40 = vmul.f32 %v4399_v38, %v1021_v39 }
0x1215   :  { %1025 = vrot.lane.b32.xlu1 %v1023_v40, %s4701_s28 }
0x1281   :  { %v820_v42 = vpop.permute.xlu0 %819 }
0x1282   :  { %v5007_v45 = vadd.f32 %v820_v42, %v812_v41 }
0x1284   :  { %4400 = vtanh.f32 %v5007_v45 }
0x1287   :  { %v1026_v49 = vpop.permute.xlu1 %1025 }
0x1288   :  { %v1028_v50 = vadd.f32 %v1026_v49, %v1018_v48 }
0x128a   :  { %4402 = vtanh.f32 %v1028_v50 }
0x128e   :  { %v4401_v51 = vpop.eup %4400 }
0x128f   :  { %825 = vrot.lane.b32.xlu0 %v4401_v51, %s4702_s29 }
0x1294   :  { %v4403_v52 = vpop.eup %4402 }
0x1295   :  { %1031 = vrot.lane.b32.xlu1 %v4403_v52, %s4702_s29 }
0x1301   :  { %v826_v53 = vpop.permute.xlu0 %825 }
0x1302   :  { %v5012_v54 = vmul.f32 %v4397_v35, %v826_v53 }
0x1304   :  { %830 = vrot.lane.b32.xlu0 %v5012_v54, %s4703_s30 }
0x1307   :  { %v1032_v4 = vpop.permute.xlu1 %1031 }
0x1308   :  { %v5016_v55 = vmul.f32 %v4399_v38, %v1032_v4 }
0x130a   :  { %1036 = vrot.lane.b32.xlu1 %v5016_v55, %s4703_s30 }
0x1376   :  { %v831_v56 = vpop.permute.xlu0 %830 }
0x1377   :  { %v833_v57 = vsel %vm111_vm1, %v4977_v14, %v831_v56 }
0x1378   :  { %3819 = vmatmul.mubr.msk.f32.vlgmr.msra.gmra.mrb[6].mxu1 %vm119_vm2, %v833_v57 }
0x1379   :  { %4162 = vmatpush3.bf16.msra.mxu1 %v4969_v11  ;;  %3836 = vmatprep.mubr.msk.f32.mxu1 %vm4698_vm0, %v4699_v1 }
0x137a   :  { %3834 = vmatprep.subr.mxu1 %v4699_v1 }
0x137c   :  { %v1037_v58 = vpop.permute.xlu1 %1036 }
0x137d   :  { %v1039_v6 = vsel %vm111_vm1, %v4967_v10, %v1037_v58  ;;  %3835 = vmatpush3.msra.mxu1 %v4983_v15 }
0x137e   :  { %3837 = vmatmul.mubr.msk.f32.vlgmr.msra.gmra.mrb[8].mxu1 %vm119_vm2, %v1039_v6  ;;  %4166 = vmatprep.subr.bf16.mxu1 %v4697_v0 }
0x137f   :  { %4168 = vmatpush3.bf16.msra.mxu1 %v4969_v11  ;;  %3854 = vmatprep.mubr.msk.f32.mxu1 %vm4698_vm0, %v4699_v1 }
0x1380   :  { %3852 = vmatprep.subr.mxu1 %v4699_v1 }
0x1383   :  { %3853 = vmatpush3.msra.mxu1 %v4983_v15 }
0x1384   :  { %4172 = vmatprep.subr.bf16.mxu1 %v4697_v0 }
0x144b   :  { %v5038_v59 = vpop.f32.mrb[6].mxu1 }
0x144c   :  { %v3820_v60 = vpop.f32.mrb[7].mxu1 }
0x1451   :  { %v1109_v61 = vpop.f32.mrb[8].mxu1 }
0x1452   :  { %v1110_v2 = vadd.f32 %v5000_v20, %v1109_v61  ;;  %v3838_v7 = vpop.f32.mrb[9].mxu1 }
0x1454   :  { %4404 = vtanh.f32 %v1110_v2  ;;  %v3526_v10 = vmul.f32 -1.442695, %v1110_v2 }
0x1456   :  { %4406 = vpow2.f32 %v3526_v10 }
0x145e   :  { %v4405_v9 = vpop.eup %4404 }
0x145f   :  { %1122 = vrot.lane.b32.xlu0 %v4405_v9, %s4700_s27 }
0x1460   :  { %v4407_v12 = vpop.eup %4406 }
0x1461   :  { %v1116_v13 = vadd.f32 1.0, %v4407_v12 }
0x1463   :  { %4408 = vrcp.f32 %v1116_v13 }
0x146d   :  { %v4409_v14 = vpop.eup %4408 }
0x146e   :  { %v1120_v18 = vmul.f32 %v4409_v14, %v1028_v50 }
0x14d1   :  { %v1123_v16 = vpop.permute.xlu0 %1122 }
0x14d2   :  { %v1125_v17 = vmul.f32 %v4409_v14, %v1123_v16 }
0x14d4   :  { %1127 = vrot.lane.b32.xlu1 %v1125_v17, %s4701_s28 }
0x1546   :  { %v1128_v19 = vpop.permute.xlu1 %1127 }
0x1547   :  { %v1130_v21 = vadd.f32 %v1128_v19, %v1120_v18 }
0x1549   :  { %4410 = vtanh.f32 %v1130_v21 }
0x1553   :  { %v4411_v22 = vpop.eup %4410 }
0x1554   :  { %1133 = vrot.lane.b32.xlu0 %v4411_v22, %s4702_s29 }
0x15c6   :  { %v1134_v27 = vpop.permute.xlu0 %1133 }
0x15c7   :  { %v5044_v28 = vmul.f32 %v4409_v14, %v1134_v27 }
0x15c9   :  { %1138 = vrot.lane.b32.xlu1 %v5044_v28, %s4703_s30 }
0x163b   :  { %v1139_v29 = vpop.permute.xlu1 %1138 }
0x163c   :  { %v1141_v30 = vsel %vm111_vm1, %v4945_v47, %v1139_v29 }
0x163d   :  { %3846 = vmatmul.mubr.msk.f32.vlgmr.msra.gmra.mrb[10].mxu0 %vm119_vm2, %v1141_v30 }
0x163e   :  { %4171 = vmatpush3.bf16.msra.mxu0 %v4969_v11  ;;  %3863 = vmatprep.mubr.msk.f32.mxu0 %vm4698_vm0, %v4699_v1 }
0x163f   :  { %3861 = vmatprep.subr.mxu0 %v4699_v1 }
0x1642   :  { %3862 = vmatpush3.msra.mxu0 %v4983_v15 }
0x1643   :  { %4175 = vmatprep.subr.bf16.mxu0 %v4697_v0 }
0x1710   :  { %v1211_v8 = vpop.f32.mrb[10].mxu0 }
0x1711   :  { %v1212_v31 = vadd.f32 %v5000_v20, %v1211_v8  ;;  %v3847_v32 = vpop.f32.mrb[11].mxu0 }
0x1713   :  { %4412 = vtanh.f32 %v1212_v31  ;;  %v3528_v47 = vmul.f32 -1.442695, %v1212_v31 }
0x1715   :  { %4414 = vpow2.f32 %v3528_v47 }
0x171d   :  { %v4413_v33 = vpop.eup %4412 }
0x171e   :  { %1224 = vrot.lane.b32.xlu0 %v4413_v33, %s4700_s27 }
0x171f   :  { %v4415_v34 = vpop.eup %4414 }
0x1720   :  { %v1218_v35 = vadd.f32 1.0, %v4415_v34 }
0x1722   :  { %4416 = vrcp.f32 %v1218_v35 }
0x172c   :  { %v4417_v36 = vpop.eup %4416 }
0x172d   :  { %v1222_v39 = vmul.f32 %v4417_v36, %v1130_v21 }
0x1790   :  { %v1225_v37 = vpop.permute.xlu0 %1224 }
0x1791   :  { %v1227_v38 = vmul.f32 %v4417_v36, %v1225_v37 }
0x1793   :  { %1229 = vrot.lane.b32.xlu1 %v1227_v38, %s4701_s28 }
0x1805   :  { %v1230_v40 = vpop.permute.xlu1 %1229 }
0x1806   :  { %v1232_v41 = vadd.f32 %v1230_v40, %v1222_v39 }
0x1808   :  { %4418 = vtanh.f32 %v1232_v41 }
0x1812   :  { %v4419_v42 = vpop.eup %4418 }
0x1813   :  { %1235 = vrot.lane.b32.xlu0 %v4419_v42, %s4702_s29 }
0x1885   :  { %v1236_v48 = vpop.permute.xlu0 %1235 }
0x1886   :  { %v5061_v49 = vmul.f32 %v4417_v36, %v1236_v48 }
0x1888   :  { %1240 = vrot.lane.b32.xlu1 %v5061_v49, %s4703_s30 }
0x18fa   :  { %v1241_v50 = vpop.permute.xlu1 %1240 }
0x18fb   :  { %v1243_v51 = vsel %vm111_vm1, %v4923_v26, %v1241_v50 }
0x18fc   :  { %3855 = vmatmul.mubr.msk.f32.vlgmr.msra.gmra.mrb[10].mxu1 %vm119_vm2, %v1243_v51 }
0x18fd   :  { %4174 = vmatpush3.bf16.msra.mxu1 %v4969_v11  ;;  %3872 = vmatprep.mubr.msk.f32.mxu1 %vm4698_vm0, %v4699_v1 }
0x18fe   :  { %3870 = vmatprep.subr.mxu1 %v4699_v1 }
0x1901   :  { %3871 = vmatpush3.msra.mxu1 %v4983_v15 }
0x1902   :  { %4178 = vmatprep.subr.bf16.mxu1 %v4697_v0 }
0x19cf   :  { %v1313_v52 = vpop.f32.mrb[10].mxu1 }
0x19d0   :  { %v1314_v53 = vadd.f32 %v5000_v20, %v1313_v52  ;;  %v3856_v4 = vpop.f32.mrb[11].mxu1 }
0x19d2   :  { %4420 = vtanh.f32 %v1314_v53  ;;  %v3530_v26 = vmul.f32 -1.442695, %v1314_v53 }
0x19d4   :  { %4422 = vpow2.f32 %v3530_v26 }
0x19dc   :  { %v4421_v56 = vpop.eup %4420 }
0x19dd   :  { %1326 = vrot.lane.b32.xlu0 %v4421_v56, %s4700_s27 }
0x19de   :  { %v4423_v57 = vpop.eup %4422 }
0x19df   :  { %v1320_v58 = vadd.f32 1.0, %v4423_v57 }
0x19e1   :  { %4424 = vrcp.f32 %v1320_v58 }
0x19eb   :  { %v4425_v6 = vpop.eup %4424 }
0x19ec   :  { %v1324_v2 = vmul.f32 %v4425_v6, %v1232_v41 }
0x1a4f   :  { %v1327_v60 = vpop.permute.xlu0 %1326 }
0x1a50   :  { %v1329_v61 = vmul.f32 %v4425_v6, %v1327_v60 }
0x1a52   :  { %1331 = vrot.lane.b32.xlu1 %v1329_v61, %s4701_s28 }
0x1ac4   :  { %v1332_v7 = vpop.permute.xlu1 %1331 }
0x1ac5   :  { %v1334_v9 = vadd.f32 %v1332_v7, %v1324_v2 }
0x1ac7   :  { %4426 = vtanh.f32 %v1334_v9 }
0x1ad1   :  { %v4427_v10 = vpop.eup %4426 }
0x1ad2   :  { %1337 = vrot.lane.b32.xlu0 %v4427_v10, %s4702_s29 }
0x1b44   :  { %v1338_v12 = vpop.permute.xlu0 %1337 }
0x1b45   :  { %v5078_v13 = vmul.f32 %v4425_v6, %v1338_v12 }
0x1b47   :  { %1342 = vrot.lane.b32.xlu1 %v5078_v13, %s4703_s30 }
0x1bb9   :  { %v1343_v14 = vpop.permute.xlu1 %1342 }
0x1bba   :  { %v1345_v16 = vsel %vm111_vm1, %v4901_v63, %v1343_v14 }
0x1bbb   :  { %3864 = vmatmul.mubr.msk.f32.vlgmr.msra.gmra.mrb[12].mxu0 %vm119_vm2, %v1345_v16 }
0x1bbc   :  { %4177 = vmatpush3.bf16.msra.mxu0 %v4969_v11  ;;  %3881 = vmatprep.mubr.msk.f32.mxu0 %vm4698_vm0, %v4699_v1 }
0x1bbd   :  { %3879 = vmatprep.subr.mxu0 %v4699_v1 }
0x1bc0   :  { %3880 = vmatpush3.msra.mxu0 %v4983_v15 }
0x1bc1   :  { %4181 = vmatprep.subr.bf16.mxu0 %v4697_v0 }
0x1c8e   :  { %v1415_v17 = vpop.f32.mrb[12].mxu0 }
0x1c8f   :  { %v1416_v18 = vadd.f32 %v5000_v20, %v1415_v17  ;;  %v3865_v19 = vpop.f32.mrb[13].mxu0 }
0x1c91   :  { %4428 = vtanh.f32 %v1416_v18  ;;  %v3532_v63 = vmul.f32 -1.442695, %v1416_v18 }
0x1c93   :  { %4430 = vpow2.f32 %v3532_v63 }
0x1c9b   :  { %v4429_v21 = vpop.eup %4428 }
0x1c9c   :  { %1428 = vrot.lane.b32.xlu0 %v4429_v21, %s4700_s27 }
0x1c9d   :  { %v4431_v22 = vpop.eup %4430 }
0x1c9e   :  { %v1422_v27 = vadd.f32 1.0, %v4431_v22 }
0x1ca0   :  { %4432 = vrcp.f32 %v1422_v27 }
0x1caa   :  { %v4433_v29 = vpop.eup %4432 }
0x1cab   :  { %v1426_v31 = vmul.f32 %v4433_v29, %v1334_v9 }
0x1d0e   :  { %v1429_v30 = vpop.permute.xlu0 %1428 }
0x1d0f   :  { %v1431_v8 = vmul.f32 %v4433_v29, %v1429_v30 }
0x1d11   :  { %1433 = vrot.lane.b32.xlu1 %v1431_v8, %s4701_s28 }
0x1d83   :  { %v1434_v32 = vpop.permute.xlu1 %1433 }
0x1d84   :  { %v1436_v33 = vadd.f32 %v1434_v32, %v1426_v31 }
0x1d86   :  { %4434 = vtanh.f32 %v1436_v33 }
0x1d90   :  { %v4435_v47 = vpop.eup %4434 }
0x1d91   :  { %1439 = vrot.lane.b32.xlu0 %v4435_v47, %s4702_s29 }
0x1e03   :  { %v1440_v34 = vpop.permute.xlu0 %1439 }
0x1e04   :  { %v5095_v35 = vmul.f32 %v4433_v29, %v1440_v34 }
0x1e06   :  { %1444 = vrot.lane.b32.xlu1 %v5095_v35, %s4703_s30 }
0x1e78   :  { %v1445_v36 = vpop.permute.xlu1 %1444 }
0x1e79   :  { %v1447_v37 = vsel %vm111_vm1, %v4879_v44, %v1445_v36 }
0x1e7a   :  { %3873 = vmatmul.mubr.msk.f32.vlgmr.msra.gmra.mrb[12].mxu1 %vm119_vm2, %v1447_v37 }
0x1e7b   :  { %4180 = vmatpush3.bf16.msra.mxu1 %v4969_v11  ;;  %3890 = vmatprep.mubr.msk.f32.mxu1 %vm4698_vm0, %v4699_v1 }
0x1e7c   :  { %3888 = vmatprep.subr.mxu1 %v4699_v1 }
0x1e7f   :  { %3889 = vmatpush3.msra.mxu1 %v4983_v15 }
0x1e80   :  { %4190 = vmatprep.subr.bf16.mxu1 %v4697_v0 }
0x1f4d   :  { %v1517_v38 = vpop.f32.mrb[12].mxu1 }
0x1f4e   :  { %v1518_v39 = vadd.f32 %v5000_v20, %v1517_v38  ;;  %v3874_v40 = vpop.f32.mrb[13].mxu1 }
0x1f4f   :  { %v98_v40 = vld [vmem:[%s5543_s5 + $0x8] sm:$0xff] }
0x1f50   :  { %4436 = vtanh.f32 %v1518_v39  ;;  %v3534_v44 = vmul.f32 -1.442695, %v1518_v39  ;;  %v97_v39 = vld [vmem:[%s5543_s5] sm:$0xff] }
0x1f52   :  { %4438 = vpow2.f32 %v3534_v44  ;;  %v5148_v44 = vpack.c.bf16 %v98_v40, %v97_v39 }
0x1f5a   :  { %v4437_v41 = vpop.eup %4436 }
0x1f5b   :  { %1530 = vrot.lane.b32.xlu0 %v4437_v41, %s4700_s27  ;;  %v99_v41 = vld [vmem:[%s5543_s5 + $0x10] sm:$0xff] }
0x1f5c   :  { %v4439_v11 = vpop.eup %4438 }
0x1f5d   :  { %v1524_v42 = vadd.f32 1.0, %v4439_v11 }
0x1f5f   :  { %4440 = vrcp.f32 %v1524_v42  ;;  %v101_v42 = vld [vmem:[%s5543_s5 + $0x20] sm:$0xff] }
0x1f69   :  { %v4441_v48 = vpop.eup %4440 }
0x1f6a   :  { %v1528_v15 = vmul.f32 %v4441_v48, %v1436_v33 }
0x1fcd   :  { %v1531_v50 = vpop.permute.xlu0 %1530 }
0x1fce   :  { %v1533_v51 = vmul.f32 %v4441_v48, %v1531_v50 }
0x1fd0   :  { %1535 = vrot.lane.b32.xlu1 %v1533_v51, %s4701_s28 }
0x2042   :  { %v1536_v52 = vpop.permute.xlu1 %1535 }
0x2043   :  { %v1538_v53 = vadd.f32 %v1536_v52, %v1528_v15 }
0x2045   :  { %4442 = vtanh.f32 %v1538_v53 }
0x204f   :  { %v4443_v4 = vpop.eup %4442 }
0x2050   :  { %1541 = vrot.lane.b32.xlu0 %v4443_v4, %s4702_s29 }
0x20c2   :  { %v1542_v56 = vpop.permute.xlu0 %1541 }
0x20c3   :  { %v5112_v26 = vmul.f32 %v4441_v48, %v1542_v56  ;;  %v102_v48 = vld [vmem:[%s5543_s5 + $0x28] sm:$0xff] }
0x20c4   :  { %v5166_v50 = vpack.c.bf16 %v102_v48, %v101_v42 }
0x20c5   :  { %1546 = vrot.lane.b32.xlu1 %v5112_v26, %s4703_s30 }
0x2137   :  { %v1547_v57 = vpop.permute.xlu1 %1546 }
0x2138   :  { %v1549_v58 = vsel %vm111_vm1, %v4857_v25, %v1547_v57 }
0x2139   :  { %3882 = vmatmul.mubr.msk.f32.vlgmr.msra.gmra.mrb[14].mxu0 %vm119_vm2, %v1549_v58  ;;  %v5194_v58 = vld [vmem:[%s5544_s6] ss:$0 sm:$0xff] }
0x213a   :  { %3905 = vmatprep.mubr.msk.f32.mxu0 %vm4698_vm0, %v4699_v1  ;;  %4183 = vmatpush3.bf16.msra.mxu0 %v5148_v44 }
0x213b   :  { %4184 = vmatprep.subr.bf16.mxu0 %v4697_v0 }
0x220c   :  { %v1619_v6 = vpop.f32.mrb[14].mxu0 }
0x220d   :  { %v1620_v60 = vadd.f32 %v5000_v20, %v1619_v6  ;;  %v3883_v61 = vpop.f32.mrb[15].mxu0 }
0x220f   :  { %4444 = vtanh.f32 %v1620_v60  ;;  %v3536_v7 = vmul.f32 -1.442695, %v1620_v60 }
0x2211   :  { %4446 = vpow2.f32 %v3536_v7 }
0x2219   :  { %v4445_v2 = vpop.eup %4444 }
0x221a   :  { %1632 = vrot.lane.b32.xlu0 %v4445_v2, %s4700_s27 }
0x221b   :  { %v4447_v9 = vpop.eup %4446 }
0x221c   :  { %v1626_v10 = vadd.f32 1.0, %v4447_v9 }
0x221e   :  { %4448 = vrcp.f32 %v1626_v10 }
0x2228   :  { %v4449_v12 = vpop.eup %4448 }
0x2229   :  { %v1630_v16 = vmul.f32 %v4449_v12, %v1538_v53 }
0x228c   :  { %v1633_v25 = vpop.permute.xlu0 %1632 }
0x228d   :  { %v1635_v14 = vmul.f32 %v4449_v12, %v1633_v25 }
0x228f   :  { %1637 = vrot.lane.b32.xlu1 %v1635_v14, %s4701_s28 }
0x2301   :  { %v1638_v17 = vpop.permute.xlu1 %1637 }
0x2302   :  { %v1640_v18 = vadd.f32 %v1638_v17, %v1630_v16 }
0x2304   :  { %4450 = vtanh.f32 %v1640_v18 }
0x230e   :  { %v4451_v19 = vpop.eup %4450 }
0x230f   :  { %1643 = vrot.lane.b32.xlu0 %v4451_v19, %s4702_s29 }
0x2381   :  { %v1644_v21 = vpop.permute.xlu0 %1643 }
0x2382   :  { %v5125_v63 = vmul.f32 %v4449_v12, %v1644_v21 }
0x2384   :  { %1648 = vrot.lane.b32.xlu1 %v5125_v63, %s4703_s30 }
0x23f6   :  { %v1649_v22 = vpop.permute.xlu1 %1648 }
0x23f7   :  { %v1651_v27 = vsel %vm111_vm1, %v4820_v5, %v1649_v22 }
0x23f8   :  { %3891 = vmatmul.mubr.msk.f32.vlgmr.msra.gmra.mrb[14].mxu1 %vm119_vm2, %v1651_v27 }
0x23f9   :  { %3920 = vmatprep.mubr.msk.f32.mxu1 %vm4698_vm0, %v4699_v1  ;;  %4192 = vmatpush3.bf16.msra.mxu1 %v5148_v44 }
0x23fa   :  { %4193 = vmatprep.subr.bf16.mxu1 %v4697_v0 }
0x24cb   :  { %v1721_v29 = vpop.f32.mrb[14].mxu1 }
0x24cc   :  { %v1722_v30 = vadd.f32 %v5000_v20, %v1721_v29  ;;  %v3892_v8 = vpop.f32.mrb[15].mxu1 }
0x24ce   :  { %4452 = vtanh.f32 %v1722_v30  ;;  %v3538_v32 = vmul.f32 -1.442695, %v1722_v30 }
0x24d0   :  { %4454 = vpow2.f32 %v3538_v32 }
0x24d8   :  { %v4453_v31 = vpop.eup %4452 }
0x24d9   :  { %1734 = vrot.lane.b32.xlu0 %v4453_v31, %s4700_s27 }
0x24da   :  { %v4455_v33 = vpop.eup %4454 }
0x24db   :  { %v1728_v47 = vadd.f32 1.0, %v4455_v33 }
0x24dd   :  { %4456 = vrcp.f32 %v1728_v47 }
0x24e7   :  { %v4457_v34 = vpop.eup %4456 }
0x24e8   :  { %v1732_v20 = vmul.f32 %v4457_v34, %v1640_v18 }
0x254b   :  { %v1735_v5 = vpop.permute.xlu0 %1734 }
0x254c   :  { %v1737_v36 = vmul.f32 %v4457_v34, %v1735_v5 }
0x254e   :  { %1739 = vrot.lane.b32.xlu1 %v1737_v36, %s4701_s28 }
0x2552   :  { %1749 = vrot.lane.b32.xlu1 %v4850_v24, %s4704_s4  ;;  %v100_v24 = vld [vmem:[%s5543_s5 + $0x18] sm:$0xff] }
0x2553   :  { %v5154_v11 = vpack.c.bf16 %v100_v24, %v99_v41 }
0x2555   :  { %4186 = vmatpush3.bf16.msra.mxu0 %v5154_v11  ;;  %4195 = vmatpush3.bf16.msra.mxu1 %v5154_v11 }
0x2556   :  { %4187 = vmatprep.subr.bf16.mxu0 %v4697_v0  ;;  %4196 = vmatprep.subr.bf16.mxu1 %v4697_v0 }
0x2559   :  { %4189 = vmatpush3.bf16.msra.mxu0 %v5166_v50  ;;  %4198 = vmatpush3.bf16.msra.mxu1 %v5166_v50 }
0x255a   :  { %4199 = vmatprep.subr.bf16.mxu0 %v4697_v0  ;;  %4208 = vmatprep.subr.bf16.mxu1 %v4697_v0 }
0x25c0   :  { %v1740_v37 = vpop.permute.xlu1 %1739 }
0x25c1   :  { %v1742_v38 = vadd.f32 %v1740_v37, %v1732_v20 }
0x25c3   :  { %4458 = vtanh.f32 %v1742_v38 }
0x25c4   :  { %v1750_v53 = vpop.permute.xlu1 %1749 }
0x25cd   :  { %v4459_v51 = vpop.eup %4458 }
0x25ce   :  { %1745 = vrot.lane.b32.xlu0 %v4459_v51, %s4702_s29 }
0x2640   :  { %v1746_v15 = vpop.permute.xlu0 %1745 }
0x2641   :  { %v1748_v52 = vmul.f32 %v4457_v34, %v1746_v15 }
0x2643   :  { %1753 = vrot.lane.b32.xlu0 %v1748_v52, %s4700_s27 }
0x26b5   :  { %v1754_v4 = vpop.permute.xlu0 %1753 }
0x26b6   :  { %v5178_v56 = vsel %vm1756_vm3, %v1750_v53, %v1754_v4 }
0x26b7   :  { %v1809_v57 = vsel %vm1808_vm4, %v5178_v56, 0.0 }
0x26b8   :  { %3906 = vmatmul.mubr.msk.f32.vlgmr.msra.gmra.mrb[16].mxu0 %vm1816_vm5, %v1809_v57 }
0x26b9   :  { %4201 = vmatpush3.bf16.msra.mxu0 %v5148_v44  ;;  %3935 = vmatprep.mubr.msk.f32.mxu0 %vm4698_vm0, %v4699_v1 }
0x26ba   :  { %4202 = vmatprep.subr.bf16.mxu0 %v4697_v0 }
0x26bd   :  { %4204 = vmatpush3.bf16.msra.mxu0 %v5154_v11 }
0x26be   :  { %4205 = vmatprep.subr.bf16.mxu0 %v4697_v0 }
0x26c1   :  { %4207 = vmatpush3.bf16.msra.mxu0 %v5166_v50 }
0x26c2   :  { %4217 = vmatprep.subr.bf16.mxu0 %v4697_v0 }
0x278b   :  { %v1886_v6 = vpop.f32.mrb[16].mxu0 }
0x278c   :  { %v1887_v60 = vadd.f32 %v5194_v58, %v1886_v6  ;;  %v3907_v61 = vpop.f32.mrb[17].mxu0 }
0x278e   :  { %4460 = vtanh.f32 %v1887_v60  ;;  %v3541_v7 = vmul.f32 -1.442695, %v1887_v60 }
0x2790   :  { %4462 = vpow2.f32 %v3541_v7 }
0x2798   :  { %v4461_v2 = vpop.eup %4460 }
0x2799   :  { %1899 = vrot.lane.b32.xlu1 %v4461_v2, %s4700_s27 }
0x279a   :  { %v4463_v9 = vpop.eup %4462 }
0x279b   :  { %v1893_v10 = vadd.f32 1.0, %v4463_v9 }
0x279d   :  { %4464 = vrcp.f32 %v1893_v10 }
0x27a7   :  { %v4465_v12 = vpop.eup %4464 }
0x27a8   :  { %v1897_v16 = vmul.f32 0.0, %v4465_v12 }
0x280b   :  { %v1900_v25 = vpop.permute.xlu1 %1899 }
0x280c   :  { %v1902_v14 = vmul.f32 %v4465_v12, %v1900_v25 }
0x280e   :  { %1904 = vrot.lane.b32.xlu0 %v1902_v14, %s4701_s28 }
0x2812   :  { %1758 = vrot.lane.b32.xlu0 %v4872_v43, %s4704_s4 }
0x2880   :  { %v1905_v17 = vpop.permute.xlu0 %1904 }
0x2881   :  { %v1907_v18 = vadd.f32 %v1905_v17, %v1897_v16 }
0x2883   :  { %4466 = vtanh.f32 %v1907_v18 }
0x2884   :  { %v1759_v27 = vpop.permute.xlu0 %1758 }
0x288d   :  { %v4467_v19 = vpop.eup %4466 }
0x288e   :  { %1910 = vrot.lane.b32.xlu1 %v4467_v19, %s4702_s29 }
0x2892   :  { %1761 = vrot.lane.b32.xlu1 %v5125_v63, %s4700_s27 }
0x2900   :  { %v1911_v21 = vpop.permute.xlu1 %1910 }
0x2901   :  { %v5204_v22 = vmul.f32 %v4465_v12, %v1911_v21 }
0x2903   :  { %1916 = vrot.lane.b32.xlu0 %v5204_v22, %s4705_s17 }
0x2904   :  { %v1762_v29 = vpop.permute.xlu1 %1761 }
0x2905   :  { %v5209_v43 = vsel %vm1756_vm3, %v1759_v27, %v1762_v29 }
0x2975   :  { %v1917_v30 = vpop.permute.xlu0 %1916 }
0x2976   :  { %v1919_v8 = vsel %vm1808_vm4, %v5209_v43, %v1917_v30 }
0x2977   :  { %3921 = vmatmul.mubr.msk.f32.vlgmr.msra.gmra.mrb[16].mxu1 %vm1816_vm5, %v1919_v8 }
0x2978   :  { %4210 = vmatpush3.bf16.msra.mxu1 %v5148_v44  ;;  %3950 = vmatprep.mubr.msk.f32.mxu1 %vm4698_vm0, %v4699_v1 }
0x2979   :  { %4211 = vmatprep.subr.bf16.mxu1 %v4697_v0 }
0x297c   :  { %4213 = vmatpush3.bf16.msra.mxu1 %v5154_v11 }
0x297d   :  { %4214 = vmatprep.subr.bf16.mxu1 %v4697_v0 }
0x2980   :  { %4216 = vmatpush3.bf16.msra.mxu1 %v5166_v50 }
0x2981   :  { %4226 = vmatprep.subr.bf16.mxu1 %v4697_v0 }
0x2a4a   :  { %v1989_v63 = vpop.f32.mrb[16].mxu1 }
0x2a4b   :  { %v1990_v31 = vadd.f32 %v5194_v58, %v1989_v63  ;;  %v3922_v32 = vpop.f32.mrb[17].mxu1 }
0x2a4d   :  { %4468 = vtanh.f32 %v1990_v31  ;;  %v3543_v47 = vmul.f32 -1.442695, %v1990_v31 }
0x2a4f   :  { %4470 = vpow2.f32 %v3543_v47 }
0x2a57   :  { %v4469_v33 = vpop.eup %4468 }
0x2a58   :  { %2002 = vrot.lane.b32.xlu1 %v4469_v33, %s4700_s27 }
0x2a59   :  { %v4471_v34 = vpop.eup %4470 }
0x2a5a   :  { %v1996_v5 = vadd.f32 1.0, %v4471_v34 }
0x2a5c   :  { %4472 = vrcp.f32 %v1996_v5 }
0x2a66   :  { %v4473_v36 = vpop.eup %4472 }
0x2a67   :  { %v2000_v38 = vmul.f32 %v4473_v36, %v1907_v18 }
0x2aca   :  { %v2003_v20 = vpop.permute.xlu1 %2002 }
0x2acb   :  { %v2005_v37 = vmul.f32 %v4473_v36, %v2003_v20 }
0x2acd   :  { %2007 = vrot.lane.b32.xlu0 %v2005_v37, %s4701_s28 }
0x2ad1   :  { %1765 = vrot.lane.b32.xlu0 %v4894_v62, %s4704_s4 }
0x2b3f   :  { %v2008_v39 = vpop.permute.xlu0 %2007 }
0x2b40   :  { %v2010_v40 = vadd.f32 %v2008_v39, %v2000_v38 }
0x2b42   :  { %4474 = vtanh.f32 %v2010_v40 }
0x2b43   :  { %v1766_v48 = vpop.permute.xlu0 %1765 }
0x2b4c   :  { %v4475_v41 = vpop.eup %4474 }
0x2b4d   :  { %2013 = vrot.lane.b32.xlu1 %v4475_v41, %s4702_s29 }
0x2b51   :  { %1768 = vrot.lane.b32.xlu1 %v5112_v26, %s4700_s27 }
0x2bbf   :  { %v2014_v24 = vpop.permute.xlu1 %2013 }
0x2bc0   :  { %v2016_v42 = vmul.f32 %v4473_v36, %v2014_v24 }
0x2bc2   :  { %2019 = vrot.lane.b32.xlu0 %v2016_v42, %s4705_s17  ;;  %v2017_v17 = vadd.f32 %v2016_v42, %v5204_v22 }
0x2bc3   :  { %v1769_v51 = vpop.permute.xlu1 %1768 }
0x2bc4   :  { %v5232_v15 = vsel %vm1756_vm3, %v1766_v48, %v1769_v51 }
0x2c34   :  { %v2020_v62 = vpop.permute.xlu0 %2019 }
0x2c35   :  { %v2022_v52 = vsel %vm1808_vm4, %v5232_v15, %v2020_v62 }
0x2c36   :  { %3936 = vmatmul.mubr.msk.f32.vlgmr.msra.gmra.mrb[18].mxu0 %vm1816_vm5, %v2022_v52 }
0x2c37   :  { %4219 = vmatpush3.bf16.msra.mxu0 %v5148_v44  ;;  %3965 = vmatprep.mubr.msk.f32.mxu0 %vm4698_vm0, %v4699_v1 }
0x2c38   :  { %4220 = vmatprep.subr.bf16.mxu0 %v4697_v0 }
0x2c3b   :  { %4222 = vmatpush3.bf16.msra.mxu0 %v5154_v11 }
0x2c3c   :  { %4223 = vmatprep.subr.bf16.mxu0 %v4697_v0 }
0x2c3f   :  { %4225 = vmatpush3.bf16.msra.mxu0 %v5166_v50 }
0x2c40   :  { %4235 = vmatprep.subr.bf16.mxu0 %v4697_v0 }
0x2d09   :  { %v2092_v26 = vpop.f32.mrb[18].mxu0 }
0x2d0a   :  { %v2093_v53 = vadd.f32 %v5194_v58, %v2092_v26  ;;  %v3937_v4 = vpop.f32.mrb[19].mxu0 }
0x2d0c   :  { %4476 = vtanh.f32 %v2093_v53  ;;  %v3545_v6 = vmul.f32 -1.442695, %v2093_v53 }
0x2d0e   :  { %4478 = vpow2.f32 %v3545_v6 }
0x2d16   :  { %v4477_v57 = vpop.eup %4476 }
0x2d17   :  { %2105 = vrot.lane.b32.xlu1 %v4477_v57, %s4700_s27 }
0x2d18   :  { %v4479_v60 = vpop.eup %4478 }
0x2d19   :  { %v2099_v61 = vadd.f32 1.0, %v4479_v60 }
0x2d1b   :  { %4480 = vrcp.f32 %v2099_v61 }
0x2d25   :  { %v4481_v2 = vpop.eup %4480 }
0x2d26   :  { %v2103_v10 = vmul.f32 %v4481_v2, %v2010_v40 }
0x2d89   :  { %v2106_v7 = vpop.permute.xlu1 %2105 }
0x2d8a   :  { %v2108_v9 = vmul.f32 %v4481_v2, %v2106_v7 }
0x2d8c   :  { %2110 = vrot.lane.b32.xlu0 %v2108_v9, %s4701_s28 }
0x2d90   :  { %1772 = vrot.lane.b32.xlu0 %v4916_v23, %s4704_s4 }
0x2dfe   :  { %v2111_v12 = vpop.permute.xlu0 %2110 }
0x2dff   :  { %v2113_v25 = vadd.f32 %v2111_v12, %v2103_v10  ;;  %v4596_v12 = vld [vmem:[%s5540_s2] ss:$0 sm:$0xff] }
0x2e01   :  { %4482 = vtanh.f32 %v2113_v25 }
0x2e02   :  { %v1773_v21 = vpop.permute.xlu0 %1772 }
0x2e0b   :  { %v4483_v14 = vpop.eup %4482 }
0x2e0c   :  { %2116 = vrot.lane.b32.xlu1 %v4483_v14, %s4702_s29 }
0x2e10   :  { %1775 = vrot.lane.b32.xlu1 %v5095_v35, %s4700_s27 }
0x2e7e   :  { %v2117_v16 = vpop.permute.xlu1 %2116 }
0x2e7f   :  { %v2119_v18 = vmul.f32 %v4481_v2, %v2117_v16 }
0x2e81   :  { %v2120_v19 = vadd.f32 %v2119_v18, %v2017_v17  ;;  %2122 = vrot.lane.b32.xlu0 %v2119_v18, %s4705_s17 }
0x2e82   :  { %v1776_v27 = vpop.permute.xlu1 %1775 }
0x2e83   :  { %v5256_v23 = vsel %vm1756_vm3, %v1773_v21, %v1776_v27 }
0x2ef3   :  { %v2123_v29 = vpop.permute.xlu0 %2122 }
0x2ef4   :  { %v2125_v30 = vsel %vm1808_vm4, %v5256_v23, %v2123_v29 }
0x2ef5   :  { %3951 = vmatmul.mubr.msk.f32.vlgmr.msra.gmra.mrb[18].mxu1 %vm1816_vm5, %v2125_v30 }
0x2ef6   :  { %4228 = vmatpush3.bf16.msra.mxu1 %v5148_v44  ;;  %3980 = vmatprep.mubr.msk.f32.mxu1 %vm4698_vm0, %v4699_v1 }
0x2ef7   :  { %4229 = vmatprep.subr.bf16.mxu1 %v4697_v0 }
0x2efa   :  { %4231 = vmatpush3.bf16.msra.mxu1 %v5154_v11 }
0x2efb   :  { %4232 = vmatprep.subr.bf16.mxu1 %v4697_v0 }
0x2efe   :  { %4234 = vmatpush3.bf16.msra.mxu1 %v5166_v50 }
0x2eff   :  { %4244 = vmatprep.subr.bf16.mxu1 %v4697_v0 }
0x2fc8   :  { %v2195_v35 = vpop.f32.mrb[18].mxu1 }
0x2fc9   :  { %v2196_v22 = vadd.f32 %v5194_v58, %v2195_v35  ;;  %v3952_v8 = vpop.f32.mrb[19].mxu1 }
0x2fcb   :  { %4484 = vtanh.f32 %v2196_v22  ;;  %v3547_v31 = vmul.f32 -1.442695, %v2196_v22 }
0x2fcd   :  { %4486 = vpow2.f32 %v3547_v31 }
0x2fd5   :  { %v4485_v63 = vpop.eup %4484 }
0x2fd6   :  { %2208 = vrot.lane.b32.xlu1 %v4485_v63, %s4700_s27 }
0x2fd7   :  { %v4487_v32 = vpop.eup %4486 }
0x2fd8   :  { %v2202_v33 = vadd.f32 1.0, %v4487_v32 }
0x2fda   :  { %4488 = vrcp.f32 %v2202_v33 }
0x2fe4   :  { %v4489_v47 = vpop.eup %4488 }
0x2fe5   :  { %v2206_v36 = vmul.f32 %v4489_v47, %v2113_v25  ;;  %v904_v25 = vadd.f32 %v4596_v12, %v5038_v59 }
0x2fe7   :  { %v3521_v18 = vmul.f32 -1.442695, %v904_v25 }
0x3048   :  { %v2209_v34 = vpop.permute.xlu1 %2208 }
0x3049   :  { %v2211_v5 = vmul.f32 %v4489_v47, %v2209_v34 }
0x304b   :  { %2213 = vrot.lane.b32.xlu0 %v2211_v5, %s4701_s28 }
0x304f   :  { %1779 = vrot.lane.b32.xlu0 %v4938_v46, %s4704_s4 }
0x30bd   :  { %v2214_v20 = vpop.permute.xlu0 %2213 }
0x30be   :  { %v2216_v37 = vadd.f32 %v2214_v20, %v2206_v36 }
0x30c0   :  { %4490 = vtanh.f32 %v2216_v37 }
0x30c1   :  { %v1780_v24 = vpop.permute.xlu0 %1779 }
0x30ca   :  { %v4491_v38 = vpop.eup %4490 }
0x30cb   :  { %2219 = vrot.lane.b32.xlu1 %v4491_v38, %s4702_s29 }
0x30cf   :  { %1782 = vrot.lane.b32.xlu1 %v5078_v13, %s4700_s27 }
0x313d   :  { %v2220_v39 = vpop.permute.xlu1 %2219 }
0x313e   :  { %v2222_v40 = vmul.f32 %v4489_v47, %v2220_v39 }
0x3140   :  { %v2223_v41 = vadd.f32 %v2222_v40, %v2120_v19  ;;  %2225 = vrot.lane.b32.xlu0 %v2222_v40, %s4705_s17 }
0x3141   :  { %v1783_v42 = vpop.permute.xlu1 %1782 }
0x3142   :  { %v5279_v48 = vsel %vm1756_vm3, %v1780_v24, %v1783_v42 }
0x31b2   :  { %v2226_v46 = vpop.permute.xlu0 %2225 }
0x31b3   :  { %v2228_v51 = vsel %vm1808_vm4, %v5279_v48, %v2226_v46 }
0x31b4   :  { %3966 = vmatmul.mubr.msk.f32.vlgmr.msra.gmra.mrb[20].mxu0 %vm1816_vm5, %v2228_v51 }
0x31b5   :  { %4237 = vmatpush3.bf16.msra.mxu0 %v5148_v44  ;;  %3995 = vmatprep.mubr.msk.f32.mxu0 %vm4698_vm0, %v4699_v1 }
0x31b6   :  { %4238 = vmatprep.subr.bf16.mxu0 %v4697_v0 }
0x31b9   :  { %4240 = vmatpush3.bf16.msra.mxu0 %v5154_v11 }
0x31ba   :  { %4241 = vmatprep.subr.bf16.mxu0 %v4697_v0 }
0x31bd   :  { %4243 = vmatpush3.bf16.msra.mxu0 %v5166_v50 }
0x31be   :  { %4253 = vmatprep.subr.bf16.mxu0 %v4697_v0 }
0x3287   :  { %v2298_v13 = vpop.f32.mrb[20].mxu0 }
0x3288   :  { %v2299_v62 = vadd.f32 %v5194_v58, %v2298_v13  ;;  %v3967_v52 = vpop.f32.mrb[21].mxu0 }
0x3289   :  { %v105_v52 = vld [vmem:[#allocation7 + $0x8] sm:$0xff] }
0x328a   :  { %4492 = vtanh.f32 %v2299_v62  ;;  %v3549_v53 = vmul.f32 -1.442695, %v2299_v62  ;;  %v104_v62 = vld [vmem:[#allocation7] sm:$0xff] }
0x328c   :  { %4494 = vpow2.f32 %v3549_v53  ;;  %v5340_v53 = vpack.c.bf16 %v105_v52, %v104_v62 }
0x3294   :  { %v4493_v26 = vpop.eup %4492 }
0x3295   :  { %2311 = vrot.lane.b32.xlu1 %v4493_v26, %s4700_s27 }
0x3296   :  { %v4495_v4 = vpop.eup %4494 }
0x3297   :  { %v2305_v57 = vadd.f32 1.0, %v4495_v4 }
0x3299   :  { %4496 = vrcp.f32 %v2305_v57 }
0x32a3   :  { %v4497_v6 = vpop.eup %4496 }
0x32a4   :  { %v2309_v2 = vmul.f32 %v4497_v6, %v2216_v37 }
0x3307   :  { %v2312_v60 = vpop.permute.xlu1 %2311 }
0x3308   :  { %v2314_v61 = vmul.f32 %v4497_v6, %v2312_v60 }
0x330a   :  { %2316 = vrot.lane.b32.xlu0 %v2314_v61, %s4701_s28  ;;  %v108_v61 = vld [vmem:[#allocation7 + $0x20] sm:$0xff] }
0x330e   :  { %1786 = vrot.lane.b32.xlu0 %v4960_v3, %s4704_s4 }
0x337c   :  { %v2317_v7 = vpop.permute.xlu0 %2316 }
0x337d   :  { %v2319_v9 = vadd.f32 %v2317_v7, %v2309_v2  ;;  %v109_v2 = vld [vmem:[#allocation7 + $0x28] sm:$0xff] }
0x337f   :  { %4498 = vtanh.f32 %v2319_v9 }
0x3380   :  { %4500 = vtanh.f32 %v904_v25 }
0x3381   :  { %4502 = vpow2.f32 %v3521_v18 }
0x3389   :  { %v4499_v10 = vpop.eup %4498 }
0x338a   :  { %2322 = vrot.lane.b32.xlu1 %v4499_v10, %s4702_s29  ;;  %v4501_v17 = vpop.eup %4500 }
0x338b   :  { %v4503_v19 = vpop.eup %4502 }
0x338c   :  { %v910_v21 = vadd.f32 1.0, %v4503_v19 }
0x338e   :  { %1789 = vrot.lane.b32.xlu1 %v5061_v49, %s4700_s27  ;;  %4504 = vrcp.f32 %v910_v21  ;;  %v1787_v49 = vpop.permute.xlu0 %1786 }
0x3398   :  { %v4505_v35 = vpop.eup %4504 }
0x33fc   :  { %v2323_v14 = vpop.permute.xlu1 %2322 }
0x33fd   :  { %v2325_v16 = vmul.f32 %v4497_v6, %v2323_v14  ;;  %v107_v6 = vld [vmem:[#allocation7 + $0x18] sm:$0xff] }
0x33ff   :  { %v2326_v3 = vadd.f32 %v2325_v16, %v2223_v41  ;;  %2328 = vrot.lane.b32.xlu0 %v2325_v16, %s4705_s17 }
0x3400   :  { %v1790_v27 = vpop.permute.xlu1 %1789 }
0x3401   :  { %v5307_v29 = vsel %vm1756_vm3, %v1787_v49, %v1790_v27 }
0x3403   :  { %916 = vrot.lane.b32.xlu0 %v4501_v17, %s4700_s27  ;;  %v5378_v17 = vld [vmem:[%s5546_s8] ss:$0 sm:$0xff] }
0x3471   :  { %v2329_v59 = vpop.permute.xlu0 %2328 }
0x3472   :  { %v2331_v30 = vsel %vm1808_vm4, %v5307_v29, %v2329_v59 }
0x3473   :  { %3981 = vmatmul.mubr.msk.f32.vlgmr.msra.gmra.mrb[20].mxu1 %vm1816_vm5, %v2331_v30 }
0x3474   :  { %4246 = vmatpush3.bf16.msra.mxu1 %v5148_v44  ;;  %4010 = vmatprep.mubr.msk.f32.mxu1 %vm4698_vm0, %v4699_v1  ;;  %v914_v44 = vmul.f32 %v4505_v35, %v5007_v45 }
0x3475   :  { %v917_v22 = vpop.permute.xlu0 %916  ;;  %4247 = vmatprep.subr.bf16.mxu1 %v4697_v0 }
0x3476   :  { %v919_v8 = vmul.f32 %v4505_v35, %v917_v22 }
0x3478   :  { %921 = vrot.lane.b32.xlu0 %v919_v8, %s4701_s28  ;;  %4249 = vmatpush3.bf16.msra.mxu1 %v5154_v11 }
0x3479   :  { %4250 = vmatprep.subr.bf16.mxu1 %v4697_v0 }
0x347c   :  { %4252 = vmatpush3.bf16.msra.mxu1 %v5166_v50 }
0x347d   :  { %4262 = vmatprep.subr.bf16.mxu1 %v4697_v0 }
0x34ea   :  { %v922_v63 = vpop.permute.xlu0 %921 }
0x34eb   :  { %v924_v31 = vadd.f32 %v922_v63, %v914_v44 }
0x34ed   :  { %4506 = vtanh.f32 %v924_v31 }
0x34f7   :  { %v4507_v32 = vpop.eup %4506 }
0x34f8   :  { %927 = vrot.lane.b32.xlu0 %v4507_v32, %s4702_s29 }
0x34fc   :  { %1796 = vrot.lane.b32.xlu0 %v5044_v28, %s4700_s27 }
0x3546   :  { %v2401_v33 = vpop.f32.mrb[20].mxu1 }
0x3547   :  { %v2402_v11 = vadd.f32 %v5194_v58, %v2401_v33  ;;  %v3982_v47 = vpop.f32.mrb[21].mxu1 }
0x3549   :  { %4508 = vtanh.f32 %v2402_v11  ;;  %v3551_v45 = vmul.f32 -1.442695, %v2402_v11 }
0x354b   :  { %4510 = vpow2.f32 %v3551_v45 }
0x3553   :  { %v4509_v34 = vpop.eup %4508 }
0x3554   :  { %2414 = vrot.lane.b32.xlu1 %v4509_v34, %s4700_s27 }
0x3555   :  { %v4511_v36 = vpop.eup %4510 }
0x3556   :  { %v2408_v20 = vadd.f32 1.0, %v4511_v36 }
0x3558   :  { %4512 = vrcp.f32 %v2408_v20 }
0x3562   :  { %v4513_v37 = vpop.eup %4512 }
0x3563   :  { %v2412_v39 = vmul.f32 %v4513_v37, %v2319_v9  ;;  %v5355_v9 = vpack.c.bf16 %v109_v2, %v108_v61 }
0x356a   :  { %v928_v50 = vpop.permute.xlu0 %927 }
0x356b   :  { %v930_v5 = vmul.f32 %v4505_v35, %v928_v50 }
0x356d   :  { %1801 = vrot.lane.b32.xlu0 %v930_v5, %s4704_s4 }
0x356e   :  { %v1797_v26 = vpop.permute.xlu0 %1796 }
0x35c6   :  { %v2415_v38 = vpop.permute.xlu1 %2414 }
0x35c7   :  { %v2417_v28 = vmul.f32 %v4513_v37, %v2415_v38 }
0x35c9   :  { %2419 = vrot.lane.b32.xlu1 %v2417_v28, %s4701_s28 }
0x35df   :  { %v1802_v10 = vpop.permute.xlu0 %1801 }
0x363b   :  { %v2420_v40 = vpop.permute.xlu1 %2419 }
0x363c   :  { %v5329_v41 = vadd.f32 %v2420_v40, %v2412_v39 }
0x363e   :  { %4514 = vtanh.f32 %v5329_v41 }
0x3648   :  { %v4515_v24 = vpop.eup %4514 }
0x3649   :  { %2425 = vrot.lane.b32.xlu1 %v4515_v24, %s4702_s29 }
0x364d   :  { %1793 = vrot.lane.b32.xlu1 %v5012_v54, %s4704_s4  ;;  %v106_v54 = vld [vmem:[#allocation7 + $0x10] sm:$0xff] }
0x36bb   :  { %v2426_v42 = vpop.permute.xlu1 %2425 }
0x36bc   :  { %v2428_v46 = vmul.f32 %v4513_v37, %v2426_v42 }
0x36be   :  { %v5335_v51 = vadd.f32 %v2428_v46, %v2326_v3  ;;  %2431 = vrot.lane.b32.xlu1 %v2428_v46, %s4705_s17 }
0x36bf   :  { %v1794_v13 = vpop.permute.xlu1 %1793 }
0x36c0   :  { %v5343_v4 = vsel %vm1756_vm3, %v1794_v13, %v1797_v26 }
0x36c2   :  { %1804 = vrot.lane.b32.xlu1 %v5016_v55, %s4700_s27  ;;  %v5349_v55 = vpack.c.bf16 %v107_v6, %v106_v54 }
0x3730   :  { %v2432_v57 = vpop.permute.xlu1 %2431 }
0x3731   :  { %v2434_v60 = vsel %vm1808_vm4, %v5343_v4, %v2432_v57 }
0x3732   :  { %3996 = vmatmul.mubr.msk.f32.vlgmr.msra.gmra.mrb[22].mxu0 %vm1816_vm5, %v2434_v60 }
0x3733   :  { %4255 = vmatpush3.bf16.msra.mxu0 %v5340_v53  ;;  %4025 = vmatprep.mubr.msk.f32.mxu0 %vm4698_vm0, %v4699_v1 }
0x3734   :  { %4256 = vmatprep.subr.bf16.mxu0 %v4697_v0  ;;  %v1805_v7 = vpop.permute.xlu1 %1804 }
0x3735   :  { %v5359_v12 = vsel %vm1756_vm3, %v1802_v10, %v1805_v7 }
0x3736   :  { %v2636_v25 = vsel %vm1808_vm4, %v5359_v12, 0.0 }
0x3737   :  { %4258 = vmatpush3.bf16.msra.mxu0 %v5349_v55 }
0x3738   :  { %4259 = vmatprep.subr.bf16.mxu0 %v4697_v0 }
0x373b   :  { %4261 = vmatpush3.bf16.msra.mxu0 %v5355_v9 }
0x373c   :  { %4271 = vmatprep.subr.bf16.mxu0 %v4697_v0 }
0x373e   :  { %4026 = vmatmul.mubr.msk.f32.vlgmr.msra.gmra.mrb[24].mxu0 %vm1816_vm5, %v2636_v25 }
0x373f   :  { %4273 = vmatpush3.bf16.msra.mxu0 %v5340_v53  ;;  %4055 = vmatprep.mubr.msk.f32.mxu0 %vm4698_vm0, %v4699_v1 }
0x3740   :  { %4274 = vmatprep.subr.bf16.mxu0 %v4697_v0 }
0x3743   :  { %4276 = vmatpush3.bf16.msra.mxu0 %v5349_v55 }
0x3744   :  { %4277 = vmatprep.subr.bf16.mxu0 %v4697_v0 }
0x3747   :  { %4279 = vmatpush3.bf16.msra.mxu0 %v5355_v9 }
0x3748   :  { %4289 = vmatprep.subr.bf16.mxu0 %v4697_v0 }
0x3805   :  { %v2504_v14 = vpop.f32.mrb[22].mxu0 }
0x3806   :  { %v2505_v16 = vadd.f32 %v5194_v58, %v2504_v14  ;;  %v3997_v3 = vpop.f32.mrb[23].mxu0 }
0x3808   :  { %4516 = vtanh.f32 %v2505_v16  ;;  %v3553_v59 = vmul.f32 -1.442695, %v2505_v16 }
0x3811   :  { %v2712_v18 = vpop.f32.mrb[24].mxu0 }
0x3812   :  { %v4517_v19 = vpop.eup %4516  ;;  %v2713_v21 = vadd.f32 %v5378_v17, %v2712_v18  ;;  %v4027_v49 = vpop.f32.mrb[25].mxu0 }
0x3813   :  { %2517 = vrot.lane.b32.xlu0 %v4517_v19, %s4700_s27 }
0x3814   :  { %4518 = vtanh.f32 %v2713_v21  ;;  %v3558_v58 = vmul.f32 -1.442695, %v2713_v21 }
0x3815   :  { %4520 = vpow2.f32 %v3553_v59 }
0x3816   :  { %4522 = vpow2.f32 %v3558_v58 }
0x381e   :  { %v4519_v27 = vpop.eup %4518 }
0x381f   :  { %2725 = vrot.lane.b32.xlu1 %v4519_v27, %s4700_s27  ;;  %v4521_v30 = vpop.eup %4520 }
0x3820   :  { %v2511_v35 = vadd.f32 1.0, %v4521_v30  ;;  %v4523_v22 = vpop.eup %4522 }
0x3821   :  { %v2719_v8 = vadd.f32 1.0, %v4523_v22 }
0x3822   :  { %4524 = vrcp.f32 %v2511_v35 }
0x3823   :  { %4526 = vrcp.f32 %v2719_v8 }
0x382c   :  { %v4525_v44 = vpop.eup %4524 }
0x382d   :  { %v4527_v32 = vpop.eup %4526  ;;  %v2515_v47 = vmul.f32 %v4525_v44, %v5329_v41 }
0x382e   :  { %v2723_v5 = vmul.f32 0.0, %v4527_v32 }
0x3885   :  { %v2518_v63 = vpop.permute.xlu0 %2517 }
0x3886   :  { %v2520_v31 = vmul.f32 %v4525_v44, %v2518_v63 }
0x3888   :  { %2522 = vrot.lane.b32.xlu0 %v2520_v31, %s4701_s28 }
0x3891   :  { %v2726_v33 = vpop.permute.xlu1 %2725 }
0x3892   :  { %v2728_v11 = vmul.f32 %v4527_v32, %v2726_v33 }
0x3894   :  { %2730 = vrot.lane.b32.xlu1 %v2728_v11, %s4701_s28 }
0x38fa   :  { %v2523_v34 = vpop.permute.xlu0 %2522 }
0x38fb   :  { %v5386_v50 = vadd.f32 %v2523_v34, %v2515_v47 }
0x38fd   :  { %4528 = vtanh.f32 %v5386_v50 }
0x3906   :  { %v2731_v45 = vpop.permute.xlu1 %2730 }
0x3907   :  { %v4529_v36 = vpop.eup %4528  ;;  %v2733_v20 = vadd.f32 %v2731_v45, %v2723_v5 }
0x3908   :  { %2528 = vrot.lane.b32.xlu0 %v4529_v36, %s4702_s29 }
0x3909   :  { %4530 = vtanh.f32 %v2733_v20 }
0x3913   :  { %v4531_v37 = vpop.eup %4530 }
0x3914   :  { %2736 = vrot.lane.b32.xlu1 %v4531_v37, %s4702_s29 }
0x397a   :  { %v2529_v38 = vpop.permute.xlu0 %2528 }
0x397b   :  { %v2531_v28 = vmul.f32 %v4525_v44, %v2529_v38 }
0x397d   :  { %v5392_v39 = vadd.f32 %v2531_v28, %v5335_v51  ;;  %2534 = vrot.lane.b32.xlu0 %v2531_v28, %s4705_s17 }
0x3986   :  { %v2737_v40 = vpop.permute.xlu1 %2736 }
0x3987   :  { %v5395_v41 = vmul.f32 %v4527_v32, %v2737_v40 }
0x3989   :  { %2742 = vrot.lane.b32.xlu1 %v5395_v41, %s4705_s17 }
0x39ef   :  { %v2535_v24 = vpop.permute.xlu0 %2534 }
0x39f0   :  { %v2537_v42 = vsel %vm1808_vm4, %v5359_v12, %v2535_v24 }
0x39f1   :  { %4011 = vmatmul.mubr.msk.f32.vlgmr.msra.gmra.mrb[22].mxu1 %vm1816_vm5, %v2537_v42 }
0x39f2   :  { %4264 = vmatpush3.bf16.msra.mxu1 %v5340_v53  ;;  %4040 = vmatprep.mubr.msk.f32.mxu1 %vm4698_vm0, %v4699_v1 }
0x39f3   :  { %4265 = vmatprep.subr.bf16.mxu1 %v4697_v0 }
0x39f6   :  { %4267 = vmatpush3.bf16.msra.mxu1 %v5349_v55 }
0x39f7   :  { %4268 = vmatprep.subr.bf16.mxu1 %v4697_v0 }
0x39fa   :  { %4270 = vmatpush3.bf16.msra.mxu1 %v5355_v9 }
0x39fb   :  { %v2743_v46 = vpop.permute.xlu1 %2742  ;;  %4280 = vmatprep.subr.bf16.mxu1 %v4697_v0 }
0x39fc   :  { %v2745_v51 = vsel %vm1808_vm4, %v5343_v4, %v2743_v46 }
0x39fd   :  { %4041 = vmatmul.mubr.msk.f32.vlgmr.msra.gmra.mrb[24].mxu1 %vm1816_vm5, %v2745_v51 }
0x39fe   :  { %4282 = vmatpush3.bf16.msra.mxu1 %v5340_v53  ;;  %4070 = vmatprep.mubr.msk.f32.mxu1 %vm4698_vm0, %v4699_v1 }
0x39ff   :  { %4283 = vmatprep.subr.bf16.mxu1 %v4697_v0 }
0x3a02   :  { %4285 = vmatpush3.bf16.msra.mxu1 %v5349_v55 }
0x3a03   :  { %4286 = vmatprep.subr.bf16.mxu1 %v4697_v0 }
0x3a06   :  { %4288 = vmatpush3.bf16.msra.mxu1 %v5355_v9 }
0x3a07   :  { %4298 = vmatprep.subr.bf16.mxu1 %v4697_v0 }
0x3ac4   :  { %v5421_v13 = vpop.f32.mrb[22].mxu1 }
0x3ac5   :  { %v4012_v62 = vpop.f32.mrb[23].mxu1 }
0x3ad0   :  { %v2815_v52 = vpop.f32.mrb[24].mxu1 }
0x3ad1   :  { %v2816_v26 = vadd.f32 %v5378_v17, %v2815_v52  ;;  %v4042_v57 = vpop.f32.mrb[25].mxu1 }
0x3ad3   :  { %4532 = vtanh.f32 %v2816_v26  ;;  %v3560_v6 = vmul.f32 -1.442695, %v2816_v26 }
0x3ad5   :  { %4534 = vpow2.f32 %v3560_v6 }
0x3add   :  { %v4533_v54 = vpop.eup %4532 }
0x3ade   :  { %2828 = vrot.lane.b32.xlu0 %v4533_v54, %s4700_s27 }
0x3adf   :  { %v4535_v60 = vpop.eup %4534 }
0x3ae0   :  { %v2822_v61 = vadd.f32 1.0, %v4535_v60 }
0x3ae2   :  { %4536 = vrcp.f32 %v2822_v61 }
0x3aec   :  { %v4537_v2 = vpop.eup %4536 }
0x3aed   :  { %v2826_v25 = vmul.f32 %v4537_v2, %v2733_v20 }
0x3b50   :  { %v2829_v7 = vpop.permute.xlu0 %2828 }
0x3b51   :  { %v2831_v10 = vmul.f32 %v4537_v2, %v2829_v7 }
0x3b53   :  { %2833 = vrot.lane.b32.xlu1 %v2831_v10, %s4701_s28 }
0x3bc5   :  { %v2834_v14 = vpop.permute.xlu1 %2833 }
0x3bc6   :  { %v2836_v16 = vadd.f32 %v2834_v14, %v2826_v25 }
0x3bc8   :  { %4538 = vtanh.f32 %v2836_v16 }
0x3bd2   :  { %v4539_v3 = vpop.eup %4538 }
0x3bd3   :  { %2839 = vrot.lane.b32.xlu0 %v4539_v3, %s4702_s29 }
0x3c45   :  { %v2840_v18 = vpop.permute.xlu0 %2839 }
0x3c46   :  { %v2842_v19 = vmul.f32 %v4537_v2, %v2840_v18 }
0x3c48   :  { %2845 = vrot.lane.b32.xlu1 %v2842_v19, %s4705_s17  ;;  %v2843_v5 = vadd.f32 %v2842_v19, %v5395_v41 }
0x3cba   :  { %v2846_v21 = vpop.permute.xlu1 %2845 }
0x3cbb   :  { %v2848_v49 = vsel %vm1808_vm4, %v5307_v29, %v2846_v21 }
0x3cbc   :  { %4056 = vmatmul.mubr.msk.f32.vlgmr.msra.gmra.mrb[26].mxu0 %vm1816_vm5, %v2848_v49 }
0x3cbd   :  { %4291 = vmatpush3.bf16.msra.mxu0 %v5340_v53  ;;  %4085 = vmatprep.mubr.msk.f32.mxu0 %vm4698_vm0, %v4699_v1 }
0x3cbe   :  { %4292 = vmatprep.subr.bf16.mxu0 %v4697_v0 }
0x3cc1   :  { %4294 = vmatpush3.bf16.msra.mxu0 %v5349_v55 }
0x3cc2   :  { %4295 = vmatprep.subr.bf16.mxu0 %v4697_v0 }
0x3cc5   :  { %4297 = vmatpush3.bf16.msra.mxu0 %v5355_v9 }
0x3cc6   :  { %4307 = vmatprep.subr.bf16.mxu0 %v4697_v0 }
0x3d8f   :  { %v2918_v27 = vpop.f32.mrb[26].mxu0 }
0x3d90   :  { %v2919_v59 = vadd.f32 %v5378_v17, %v2918_v27  ;;  %v4057_v58 = vpop.f32.mrb[27].mxu0 }
0x3d92   :  { %4540 = vtanh.f32 %v2919_v59  ;;  %v3562_v35 = vmul.f32 -1.442695, %v2919_v59 }
0x3d94   :  { %4542 = vpow2.f32 %v3562_v35 }
0x3d9c   :  { %v4541_v30 = vpop.eup %4540 }
0x3d9d   :  { %2931 = vrot.lane.b32.xlu0 %v4541_v30, %s4700_s27 }
0x3d9e   :  { %v4543_v22 = vpop.eup %4542 }
0x3d9f   :  { %v2925_v8 = vadd.f32 1.0, %v4543_v22 }
0x3da1   :  { %4544 = vrcp.f32 %v2925_v8 }
0x3dab   :  { %v4545_v44 = vpop.eup %4544 }
0x3dac   :  { %v2929_v32 = vmul.f32 %v4545_v44, %v2836_v16 }
0x3e0f   :  { %v2932_v63 = vpop.permute.xlu0 %2931 }
0x3e10   :  { %v2934_v31 = vmul.f32 %v4545_v44, %v2932_v63 }
0x3e12   :  { %2936 = vrot.lane.b32.xlu1 %v2934_v31, %s4701_s28 }
0x3e84   :  { %v2937_v33 = vpop.permute.xlu1 %2936 }
0x3e85   :  { %v2939_v11 = vadd.f32 %v2937_v33, %v2929_v32 }
0x3e87   :  { %4546 = vtanh.f32 %v2939_v11 }
0x3e91   :  { %v4547_v47 = vpop.eup %4546 }
0x3e92   :  { %2942 = vrot.lane.b32.xlu0 %v4547_v47, %s4702_s29 }
0x3f04   :  { %v2943_v34 = vpop.permute.xlu0 %2942 }
0x3f05   :  { %v2945_v45 = vmul.f32 %v4545_v44, %v2943_v34 }
0x3f07   :  { %v2946_v36 = vadd.f32 %v2945_v45, %v2843_v5  ;;  %2948 = vrot.lane.b32.xlu1 %v2945_v45, %s4705_s17 }
0x3f79   :  { %v2949_v20 = vpop.permute.xlu1 %2948 }
0x3f7a   :  { %v2951_v37 = vsel %vm1808_vm4, %v5279_v48, %v2949_v20 }
0x3f7b   :  { %4071 = vmatmul.mubr.msk.f32.vlgmr.msra.gmra.mrb[26].mxu1 %vm1816_vm5, %v2951_v37 }
0x3f7c   :  { %4300 = vmatpush3.bf16.msra.mxu1 %v5340_v53  ;;  %4100 = vmatprep.mubr.msk.f32.mxu1 %vm4698_vm0, %v4699_v1 }
0x3f7d   :  { %4301 = vmatprep.subr.bf16.mxu1 %v4697_v0 }
0x3f80   :  { %4303 = vmatpush3.bf16.msra.mxu1 %v5349_v55 }
0x3f81   :  { %4304 = vmatprep.subr.bf16.mxu1 %v4697_v0 }
0x3f84   :  { %4306 = vmatpush3.bf16.msra.mxu1 %v5355_v9 }
0x3f85   :  { %4316 = vmatprep.subr.bf16.mxu1 %v4697_v0 }
0x404e   :  { %v3021_v38 = vpop.f32.mrb[26].mxu1 }
0x404f   :  { %v3022_v28 = vadd.f32 %v5378_v17, %v3021_v38  ;;  %v4072_v40 = vpop.f32.mrb[27].mxu1 }
0x4051   :  { %4548 = vtanh.f32 %v3022_v28  ;;  %v3564_v24 = vmul.f32 -1.442695, %v3022_v28 }
0x4053   :  { %4550 = vpow2.f32 %v3564_v24 }
0x405b   :  { %v4549_v41 = vpop.eup %4548 }
0x405c   :  { %3034 = vrot.lane.b32.xlu0 %v4549_v41, %s4700_s27 }
0x405d   :  { %v4551_v42 = vpop.eup %4550 }
0x405e   :  { %v3028_v46 = vadd.f32 1.0, %v4551_v42 }
0x4060   :  { %4552 = vrcp.f32 %v3028_v46 }
0x406a   :  { %v4553_v51 = vpop.eup %4552 }
0x406b   :  { %v3032_v26 = vmul.f32 %v4553_v51, %v2939_v11 }
0x40ce   :  { %v3035_v62 = vpop.permute.xlu0 %3034 }
0x40cf   :  { %v3037_v52 = vmul.f32 %v4553_v51, %v3035_v62 }
0x40d1   :  { %3039 = vrot.lane.b32.xlu1 %v3037_v52, %s4701_s28 }
0x4143   :  { %v3040_v57 = vpop.permute.xlu1 %3039 }
0x4144   :  { %v3042_v54 = vadd.f32 %v3040_v57, %v3032_v26 }
0x4146   :  { %4554 = vtanh.f32 %v3042_v54 }
0x4150   :  { %v4555_v6 = vpop.eup %4554 }
0x4151   :  { %3045 = vrot.lane.b32.xlu0 %v4555_v6, %s4702_s29 }
0x41c3   :  { %v3046_v60 = vpop.permute.xlu0 %3045 }
0x41c4   :  { %v3048_v61 = vmul.f32 %v4553_v51, %v3046_v60 }
0x41c6   :  { %v3049_v2 = vadd.f32 %v3048_v61, %v2946_v36  ;;  %3051 = vrot.lane.b32.xlu1 %v3048_v61, %s4705_s17 }
0x4238   :  { %v3052_v7 = vpop.permute.xlu1 %3051 }
0x4239   :  { %v3054_v10 = vsel %vm1808_vm4, %v5256_v23, %v3052_v7 }
0x423a   :  { %4086 = vmatmul.mubr.msk.f32.vlgmr.msra.gmra.mrb[28].mxu0 %vm1816_vm5, %v3054_v10  ;;  %v4597_v10 = vld [vmem:[%s5544_s6] ss:$0 sm:$0xff]  ;;  %s4706_s6 = smov [#allocation8]  }
0x423b   :  { %4309 = vmatpush3.bf16.msra.mxu0 %v5340_v53  ;;  %4115 = vmatprep.mubr.msk.f32.mxu0 %vm4698_vm0, %v4699_v1 }
0x423c   :  { %4310 = vmatprep.subr.bf16.mxu0 %v4697_v0 }
0x423f   :  { %4312 = vmatpush3.bf16.msra.mxu0 %v5349_v55 }
0x4240   :  { %4313 = vmatprep.subr.bf16.mxu0 %v4697_v0 }
0x4243   :  { %4315 = vmatpush3.bf16.msra.mxu0 %v5355_v9 }
0x430d   :  { %v3124_v25 = vpop.f32.mrb[28].mxu0 }
0x430e   :  { %v3125_v14 = vadd.f32 %v5378_v17, %v3124_v25  ;;  %v4087_v16 = vpop.f32.mrb[29].mxu0  ;;  %v2608_v25 = vadd.f32 %v4597_v10, %v5421_v13 }
0x4310   :  { %4556 = vtanh.f32 %v3125_v14  ;;  %v3566_v18 = vmul.f32 -1.442695, %v3125_v14 }
0x4312   :  { %4558 = vpow2.f32 %v3566_v18 }
0x431a   :  { %v4557_v3 = vpop.eup %4556 }
0x431b   :  { %3137 = vrot.lane.b32.xlu0 %v4557_v3, %s4700_s27  ;;  %v3555_v3 = vmul.f32 -1.442695, %v2608_v25 }
0x431c   :  { %v4559_v19 = vpop.eup %4558 }
0x431d   :  { %v3131_v21 = vadd.f32 1.0, %v4559_v19 }
0x431f   :  { %4560 = vrcp.f32 %v3131_v21 }
0x4329   :  { %v4561_v49 = vpop.eup %4560 }
0x432a   :  { %v3135_v58 = vmul.f32 %v4561_v49, %v3042_v54 }
0x438d   :  { %v3138_v27 = vpop.permute.xlu0 %3137 }
0x438e   :  { %v3140_v59 = vmul.f32 %v4561_v49, %v3138_v27 }
0x4390   :  { %3142 = vrot.lane.b32.xlu1 %v3140_v59, %s4701_s28 }
0x4402   :  { %v3143_v30 = vpop.permute.xlu1 %3142 }
0x4403   :  { %v3145_v35 = vadd.f32 %v3143_v30, %v3135_v58 }
0x4405   :  { %4562 = vtanh.f32 %v3145_v35 }
0x440f   :  { %v4563_v22 = vpop.eup %4562 }
0x4410   :  { %3148 = vrot.lane.b32.xlu0 %v4563_v22, %s4702_s29 }
0x4482   :  { %v3149_v8 = vpop.permute.xlu0 %3148 }
0x4483   :  { %v3151_v44 = vmul.f32 %v4561_v49, %v3149_v8 }
0x4485   :  { %v3152_v63 = vadd.f32 %v3151_v44, %v3049_v2  ;;  %3154 = vrot.lane.b32.xlu1 %v3151_v44, %s4705_s17 }
0x44f7   :  { %v3155_v31 = vpop.permute.xlu1 %3154 }
0x44f8   :  { %v3157_v32 = vsel %vm1808_vm4, %v5232_v15, %v3155_v31 }
0x44f9   :  { %4101 = vmatmul.mubr.msk.f32.vlgmr.msra.gmra.mrb[28].mxu1 %vm1816_vm5, %v3157_v32 }
0x44fa   :  { %4318 = vmatpush3.bf16.msra.mxu1 %v5340_v53  ;;  %4130 = vmatprep.mubr.msk.f32.mxu1 %vm4698_vm0, %v4699_v1 }
0x44fb   :  { %4319 = vmatprep.subr.bf16.mxu1 %v4697_v0 }
0x44fe   :  { %4321 = vmatpush3.bf16.msra.mxu1 %v5349_v55 }
0x44ff   :  { %4322 = vmatprep.subr.bf16.mxu1 %v4697_v0 }
0x4502   :  { %4324 = vmatpush3.bf16.msra.mxu1 %v5355_v9 }
0x45cc   :  { %v3227_v33 = vpop.f32.mrb[28].mxu1 }
0x45cd   :  { %v3228_v11 = vadd.f32 %v5378_v17, %v3227_v33  ;;  %v4102_v47 = vpop.f32.mrb[29].mxu1 }
0x45cf   :  { %4564 = vtanh.f32 %v3228_v11  ;;  %v3568_v53 = vmul.f32 -1.442695, %v3228_v11 }
0x45d1   :  { %4566 = vpow2.f32 %v3568_v53 }
0x45d9   :  { %v4565_v34 = vpop.eup %4564 }
0x45da   :  { %3240 = vrot.lane.b32.xlu0 %v4565_v34, %s4700_s27 }
0x45db   :  { %v4567_v5 = vpop.eup %4566 }
0x45dc   :  { %v3234_v1 = vadd.f32 1.0, %v4567_v5 }
0x45de   :  { %4568 = vrcp.f32 %v3234_v1 }
0x45e8   :  { %v4569_v45 = vpop.eup %4568 }
0x45e9   :  { %v3238_v0 = vmul.f32 %v4569_v45, %v3145_v35 }
0x464c   :  { %v3241_v36 = vpop.permute.xlu0 %3240 }
0x464d   :  { %v3243_v55 = vmul.f32 %v4569_v45, %v3241_v36 }
0x464f   :  { %3245 = vrot.lane.b32.xlu1 %v3243_v55, %s4701_s28 }
0x46c1   :  { %v3246_v9 = vpop.permute.xlu1 %3245 }
0x46c2   :  { %v3248_v20 = vadd.f32 %v3246_v9, %v3238_v0 }
0x46c4   :  { %4570 = vtanh.f32 %v3248_v20 }
0x46ce   :  { %v4571_v37 = vpop.eup %4570 }
0x46cf   :  { %3251 = vrot.lane.b32.xlu0 %v4571_v37, %s4702_s29 }
0x4741   :  { %v3252_v38 = vpop.permute.xlu0 %3251 }
0x4742   :  { %v3254_v28 = vmul.f32 %v4569_v45, %v3252_v38 }
0x4744   :  { %v3255_v40 = vadd.f32 %v3254_v28, %v3152_v63  ;;  %3257 = vrot.lane.b32.xlu1 %v3254_v28, %s4705_s17  ;;  %v3462_v28 = vadd.f32 %v5209_v43, %v5178_v56 }
0x47b6   :  { %v3258_v41 = vpop.permute.xlu1 %3257 }
0x47b7   :  { %v3260_v24 = vsel %vm1808_vm4, %v5209_v43, %v3258_v41 }
0x47b8   :  { %4116 = vmatmul.mubr.msk.f32.vlgmr.msra.gmra.mrb[30].mxu0 %vm1816_vm5, %v3260_v24 }
0x488b   :  { %v3330_v42 = vpop.f32.mrb[30].mxu0 }
0x488c   :  { %v3331_v46 = vadd.f32 %v5378_v17, %v3330_v42  ;;  %v4117_v51 = vpop.f32.mrb[31].mxu0 }
0x488e   :  { %4572 = vtanh.f32 %v3331_v46  ;;  %v3570_v52 = vmul.f32 -1.442695, %v3331_v46 }
0x4890   :  { %4574 = vpow2.f32 %v3570_v52 }
0x4898   :  { %v4573_v62 = vpop.eup %4572 }
0x4899   :  { %3343 = vrot.lane.b32.xlu0 %v4573_v62, %s4700_s27 }
0x489a   :  { %v4575_v26 = vpop.eup %4574 }
0x489b   :  { %v3337_v57 = vadd.f32 1.0, %v4575_v26 }
0x489d   :  { %4576 = vrcp.f32 %v3337_v57 }
0x48a7   :  { %v4577_v54 = vpop.eup %4576 }
0x48a8   :  { %v3341_v61 = vmul.f32 %v4577_v54, %v3248_v20 }
0x490b   :  { %v3344_v6 = vpop.permute.xlu0 %3343 }
0x490c   :  { %v3346_v60 = vmul.f32 %v4577_v54, %v3344_v6 }
0x490e   :  { %3348 = vrot.lane.b32.xlu1 %v3346_v60, %s4701_s28 }
0x4980   :  { %v3349_v2 = vpop.permute.xlu1 %3348 }
0x4981   :  { %v3351_v7 = vadd.f32 %v3349_v2, %v3341_v61 }
0x4983   :  { %4578 = vtanh.f32 %v3351_v7 }
0x4984   :  { %4580 = vtanh.f32 %v2608_v25 }
0x4985   :  { %4582 = vpow2.f32 %v3555_v3 }
0x498d   :  { %v4579_v14 = vpop.eup %4578 }
0x498e   :  { %3354 = vrot.lane.b32.xlu0 %v4579_v14, %s4702_s29  ;;  %v4581_v16 = vpop.eup %4580 }
0x498f   :  { %v4583_v18 = vpop.eup %4582 }
0x4990   :  { %v2614_v19 = vadd.f32 1.0, %v4583_v18 }
0x4992   :  { %2620 = vrot.lane.b32.xlu0 %v4581_v16, %s4700_s27  ;;  %4584 = vrcp.f32 %v2614_v19 }
0x499c   :  { %v4585_v59 = vpop.eup %4584 }
0x499d   :  { %v2618_v22 = vmul.f32 %v4585_v59, %v5386_v50 }
0x4a00   :  { %v3355_v21 = vpop.permute.xlu0 %3354 }
0x4a01   :  { %v3357_v49 = vmul.f32 %v4577_v54, %v3355_v21 }
0x4a03   :  { %v3358_v27 = vadd.f32 %v3357_v49, %v3255_v40  ;;  %3360 = vrot.lane.b32.xlu1 %v3357_v49, %s4705_s17  ;;  %v3463_v40 = vadd.f32 %v3462_v28, %v5232_v15 }
0x4a04   :  { %v2621_v13 = vpop.permute.xlu0 %2620 }
0x4a05   :  { %v2623_v58 = vmul.f32 %v4585_v59, %v2621_v13  ;;  %v3464_v41 = vadd.f32 %v3463_v40, %v5256_v23 }
0x4a07   :  { %2625 = vrot.lane.b32.xlu0 %v2623_v58, %s4701_s28  ;;  %v3465_v24 = vadd.f32 %v3464_v41, %v5279_v48 }
0x4a09   :  { %v3466_v42 = vadd.f32 %v3465_v24, %v5307_v29 }
0x4a0b   :  { %v3467_v46 = vadd.f32 %v3466_v42, %v5343_v4 }
0x4a0d   :  { %v3468_v51 = vadd.f32 %v3467_v46, %v5359_v12 }
0x4a75   :  { %v3361_v30 = vpop.permute.xlu1 %3360 }
0x4a76   :  { %v3363_v35 = vsel %vm1808_vm4, %v5178_v56, %v3361_v30 }
0x4a77   :  { %4131 = vmatmul.mubr.msk.f32.vlgmr.msra.gmra.mrb[30].mxu1 %vm1816_vm5, %v3363_v35 }
0x4a79   :  { %v2626_v8 = vpop.permute.xlu0 %2625 }
0x4a7a   :  { %v2628_v44 = vadd.f32 %v2626_v8, %v2618_v22 }
0x4a7c   :  { %4586 = vtanh.f32 %v2628_v44 }
0x4a86   :  { %v4587_v63 = vpop.eup %4586 }
0x4a87   :  { %2631 = vrot.lane.b32.xlu0 %v4587_v63, %s4702_s29 }
0x4af9   :  { %v2632_v31 = vpop.permute.xlu0 %2631 }
0x4afa   :  { %v2634_v32 = vmul.f32 %v4585_v59, %v2632_v31 }
0x4afc   :  { %v2635_v33 = vadd.f32 %v2634_v32, %v5392_v39 }
0x4afe   :  { %3470 = vrot.lane.b32.xlu0 %v2635_v33, %s4704_s4 }
0x4b4a   :  { %v3433_v11 = vpop.f32.mrb[30].mxu1 }
0x4b4b   :  { %v3434_v47 = vadd.f32 %v5378_v17, %v3433_v11  ;;  %v4132_v34 = vpop.f32.mrb[31].mxu1 }
0x4b4d   :  { %4588 = vtanh.f32 %v3434_v47  ;;  %v3572_v50 = vmul.f32 -1.442695, %v3434_v47 }
0x4b4f   :  { %4590 = vpow2.f32 %v3572_v50 }
0x4b57   :  { %v4589_v53 = vpop.eup %4588 }
0x4b58   :  { %3446 = vrot.lane.b32.xlu1 %v4589_v53, %s4700_s27 }
0x4b59   :  { %v4591_v5 = vpop.eup %4590 }
0x4b5a   :  { %v3440_v1 = vadd.f32 1.0, %v4591_v5 }
0x4b5c   :  { %4592 = vrcp.f32 %v3440_v1 }
0x4b66   :  { %v4593_v45 = vpop.eup %4592 }
0x4b67   :  { %v3444_v39 = vmul.f32 %v4593_v45, %v3351_v7 }
0x4b70   :  { %v3471_v62 = vpop.permute.xlu0 %3470 }
0x4bca   :  { %v3447_v36 = vpop.permute.xlu1 %3446 }
0x4bcb   :  { %v3449_v55 = vmul.f32 %v4593_v45, %v3447_v36 }
0x4bcd   :  { %3451 = vrot.lane.b32.xlu1 %v3449_v55, %s4701_s28 }
0x4c3f   :  { %v3452_v0 = vpop.permute.xlu1 %3451 }
0x4c40   :  { %v3454_v9 = vadd.f32 %v3452_v0, %v3444_v39 }
0x4c42   :  { %4594 = vtanh.f32 %v3454_v9 }
0x4c4c   :  { %v4595_v17 = vpop.eup %4594 }
0x4c4d   :  { %3457 = vrot.lane.b32.xlu1 %v4595_v17, %s4702_s29 }
0x4cbf   :  { %v3458_v20 = vpop.permute.xlu1 %3457 }
0x4cc0   :  { %v3460_v37 = vmul.f32 %v4593_v45, %v3458_v20 }
0x4cc2   :  { %v3461_v38 = vadd.f32 %v3460_v37, %v3358_v27 }
0x4cc4   :  { %3474 = vrot.lane.b32.xlu1 %v3461_v38, %s4700_s27  ;;  %s3488_s27 = sshll.u32 %s4706_s6, 4  ;;  %s3489_s27 = int_to_ptr.vmem [resolvable:$true] %s3488_s27 }
0x4cc5   :  { %s4664_s28 = scalar_lea.vmem %s3489_s27, 32  ;;  %p4669_p11 = scmp.lt.s32.totalorder %s3489_s27, %s3489_s27 }
0x4cc6   :  { %p4665_p10 = scmp.ne.s32.totalorder %s3489_s27, %s4664_s28  ;;  %p4670_p12 = scmp.lt.s32.totalorder %s4664_s28, %s4664_s28 }
0x4cc8   :  { %p4671_p13 = por %p4670_p12, %p4669_p11 }
0x4cca   :  { %p4672_p0 = pnand %p4671_p13, %p4665_p10 }
0x4d36   :  { %v3475_v52 = vpop.permute.xlu1 %3474 }
0x4d37   :  { %v3477_v26 = vsel %vm1756_vm3, %v3471_v62, %v3475_v52 }
0x4d38   :  { %v3478_v57 = vadd.f32 %v3477_v26, %v3468_v51 }
0x4d3a   :  { %v3479_v56 = vmul.f32 0.125, %v3478_v57 }
0x4d3c   :  { %3481 = vst.msk [vmem:[#allocation8] sm:$0x3] %vm3480_vm6, %v3479_v56 }
0x4d3d   :  { %4675 = shalt.err (!%p4672_p0)
}
0x4d3e   :  { %s4676_s25 = scalar_lea.hbm %s5547_s9, 32 }
0x4d3f   :  { %p4677_p1 = scmp.ne.s32.totalorder %s5547_s9, %s4676_s25  ;;  %p4680_p2 = scmp.lt.u32.totalorder %s4676_s25, %s5547_s9 }
0x4d41   :  { %p4682_p3 = pnand %p4680_p2, %p4677_p1 }
0x4d43   :  { %4685 = shalt.err (!%p4682_p3)
}
0x4d44   :  { %3491 = dma.vmem_to_hbm [thread:$0]  %s3489_s27, 32, %s5547_s9, [#allocation4]  }
0x4d45   :  { %4690 = dma.done.wait [#allocation4], 32  }
0x4d46   :  { %4691 = vsyncadd [#allocation4], 4294967264 }
0x4d47   :  { %3495 = vsyncpa [#allocation3], 1 }
0x4d48   :  { %3496 = vsyncpa [#allocation6], 1 }
0x4d49   :  { %3497 = vsyncpa [#allocation4], 1 }

</bundles_post_ra>
